<compile_context>
chip_gen: v7x
topology: tpu7x:2x2x1
jax: 0.10.0
libtpu: 0.0.40
codegen_flags: <defaults>
</compile_context>

<pallas_src>
import functools
import math

import jax
import jax.numpy as jnp
from jax import lax
from jax.experimental import pallas as pl
from jax.experimental.pallas import tpu as pltpu

_MIB = 1024 * 1024


# ----------------------------------------------------------------------------
# Small config helpers
# ----------------------------------------------------------------------------

def _vmem_limit(est_bytes):
    """Scoped-VMEM limit from an explicit estimate (+ headroom).  v5e's default
    scoped limit is only 16 MiB, so raising it matters at real model sizes."""
    return int(min(112 * _MIB, 2 * int(est_bytes) + 16 * _MIB))


def _pick_seq_tile(S, want):
    # Sequence tile: multiple of 8 that divides S; fall back to the full sequence.
    return want if (S % want == 0 and want % 8 == 0) else S


def _pick_vocab_tile(vpad):
    for tn in (2048, 1024, 512, 256, 128):
        if vpad % tn == 0:
            return tn
    return vpad


def _pick_ff_chunk(d_ff):
    return 512 if (d_ff > 512 and d_ff % 512 == 0) else d_ff


@functools.lru_cache(maxsize=1)
def _weight_pipeline_mode():
    """pl.Buffered(1) for never-changing weight blocks (halves their VMEM
    residency).  Probed once with a tiny kernel; falls back to the default
    double-buffering if this JAX/Mosaic build does not support it."""
    try:
        mode = pl.Buffered(1)

        def _probe_kernel(x_ref, o_ref):
            o_ref[...] = x_ref[...] + 1.0

        probe = pl.pallas_call(
            _probe_kernel,
            out_shape=jax.ShapeDtypeStruct((8, 128), jnp.float32),
            grid=(2,),
            in_specs=[pl.BlockSpec((8, 128), lambda i: (0, 0), pipeline_mode=mode)],
            out_specs=pl.BlockSpec((8, 128), lambda i: (0, 0)),
        )
        jax.block_until_ready(probe(jnp.zeros((8, 128), jnp.float32)))
        return mode
    except Exception:
        return None


def _const_spec(shape, mode):
    """BlockSpec for a 2-D operand whose single block never changes over a 2-D grid."""
    index_map = lambda b, s: (0, 0)
    if mode is None:
        return pl.BlockSpec(shape, index_map)
    return pl.BlockSpec(shape, index_map, pipeline_mode=mode)


# ----------------------------------------------------------------------------
# In-kernel helpers (value-level, traced inside the fused layer kernel)
# ----------------------------------------------------------------------------

def _add_layernorm(x, y, gamma, beta, eps):
    """Residual add + LayerNorm over the last dim; single fused multiplier."""
    z = x + y
    mean = jnp.mean(z, axis=-1, keepdims=True)
    zc = z - mean
    var = jnp.mean(zc * zc, axis=-1, keepdims=True)
    scale = gamma * lax.rsqrt(var + eps)          # (TQ, D) multiplier, one pass
    return zc * scale + beta


def _self_attention(xq_bf, kv_ref, wq_ref, bq_ref, wo_ref, bo_ref,
                    num_heads, seq_tile, row0, qt):
    """Causal MHA for one (TS, D) query tile; flash-style over key tiles.

    The fori_loop trip count is qt + 1, so key tiles that are entirely in the
    masked future are never read nor scored.  Per-head contexts fold directly
    through the corresponding rows of Wo (no scratch, no lane-masked stores).
    """
    TQ, D = xq_bf.shape
    H = num_heads
    dh = D // H
    scale = 1.0 / math.sqrt(dh)

    q = jnp.dot(xq_bf, wq_ref[...], preferred_element_type=jnp.float32) + bq_ref[...]
    q_bf = (q * scale).astype(jnp.bfloat16)                       # (TQ, D)

    rows = row0 + lax.broadcasted_iota(jnp.int32, (TQ, seq_tile), 0)   # global row idx
    cols = lax.broadcasted_iota(jnp.int32, (TQ, seq_tile), 1)          # local col idx

    def kv_tile_body(kt, carry):
        ms, ls, accs = carry
        start = pl.multiple_of(kt * seq_tile, seq_tile)
        kv = kv_ref[0, pl.ds(start, seq_tile), :]                 # (TS, 2D) bf16
        k_bf = kv[:, :D]
        v_bf = kv[:, D:]
        keep = (start + cols) <= rows                             # causal mask, this tile
        ms_n, ls_n, accs_n = [], [], []
        for h in range(H):                                        # static, unrolled
            sl = slice(h * dh, (h + 1) * dh)
            s = lax.dot_general(q_bf[:, sl], k_bf[:, sl],
                                (((1,), (1,)), ((), ())),
                                preferred_element_type=jnp.float32)   # (TQ, TS) f32
            s = jnp.where(keep, s, -1e30)
            m_new = jnp.maximum(ms[h], jnp.max(s, axis=-1, keepdims=True))
            alpha = jnp.exp(ms[h] - m_new)
            p = jnp.exp(s - m_new)
            ls_n.append(alpha * ls[h] + jnp.sum(p, axis=-1, keepdims=True))
            accs_n.append(alpha * accs[h]
                          + jnp.dot(p.astype(jnp.bfloat16), v_bf[:, sl],
                                    preferred_element_type=jnp.float32))
            ms_n.append(m_new)
        return tuple(ms_n), tuple(ls_n), tuple(accs_n)

    init = (tuple(jnp.full((TQ, 1), -1e30, dtype=jnp.float32) for _ in range(H)),
            tuple(jnp.zeros((TQ, 1), jnp.float32) for _ in range(H)),
            tuple(jnp.zeros((TQ, dh), jnp.float32) for _ in range(H)))
    ms, ls, accs = lax.fori_loop(0, qt + 1, kv_tile_body, init)

    out = jnp.zeros((TQ, D), jnp.float32) + bo_ref[...]
    for h in range(H):
        ctx = (accs[h] * pl.reciprocal(ls[h], approx=True)).astype(jnp.bfloat16)
        out = out + jnp.dot(ctx, wo_ref[h * dh:(h + 1) * dh, :],
                            preferred_element_type=jnp.float32)
    return out


def _cross_attention(xq_bf, kv, wq_ref, bq_ref, wo_ref, bo_ref, num_heads):
    """Unmasked MHA against the (precomputed) encoder K/V for one query tile."""
    TQ, D = xq_bf.shape
    H = num_heads
    dh = D // H
    scale = 1.0 / math.sqrt(dh)

    q = jnp.dot(xq_bf, wq_ref[...], preferred_element_type=jnp.float32) + bq_ref[...]
    q_bf = (q * scale).astype(jnp.bfloat16)
    k_bf = kv[:, :D]
    v_bf = kv[:, D:]

    out = jnp.zeros((TQ, D), jnp.float32) + bo_ref[...]
    for h in range(H):                                            # static, unrolled
        sl = slice(h * dh, (h + 1) * dh)
        s = lax.dot_general(q_bf[:, sl], k_bf[:, sl],
                            (((1,), (1,)), ((), ())),
                            preferred_element_type=jnp.float32)   # (TQ, Senc) f32
        s = s - jnp.max(s, axis=-1, keepdims=True)
        p = jnp.exp(s)
        p = p * pl.reciprocal(jnp.sum(p, axis=-1, keepdims=True), approx=True)
        ctx = jnp.dot(p.astype(jnp.bfloat16), v_bf[:, sl],
                      preferred_element_type=jnp.float32)
        out = out + jnp.dot(ctx.astype(jnp.bfloat16), wo_ref[h * dh:(h + 1) * dh, :],
                            preferred_element_type=jnp.float32)
    return out


# ----------------------------------------------------------------------------
# Kernels
# ----------------------------------------------------------------------------

def _kv_proj_kernel(x_ref, w_ref, b_ref, o_ref):
    o_ref[0] = (jnp.dot(x_ref[0], w_ref[...], preferred_element_type=jnp.float32)
                + b_ref[...]).astype(o_ref.dtype)


def _decoder_layer_kernel(
        x_ref, self_kv_ref, cross_kv_ref,
        sa_wq, sa_bq, sa_wo, sa_bo, ln1_g, ln1_b,
        ca_wq, ca_bq, ca_wo, ca_bo, ln2_g, ln2_b,
        ff_w1, ff_b1, ff_w2, ff_b2, ln3_g, ln3_b,
        o_ref,
        *, num_heads, eps, seq_tile, ff_chunk):
    xq = x_ref[0]                                   # (TS, D) bf16 query-row tile
    qt = pl.program_id(1)
    row0 = qt * seq_tile

    x = xq.astype(jnp.float32)

    # --- causal self-attention (precomputed KV, causal-prefix flash) + add + LN
    sa = _self_attention(xq, self_kv_ref, sa_wq, sa_bq, sa_wo, sa_bo,
                         num_heads, seq_tile, row0, qt)
    x = _add_layernorm(x, sa, ln1_g[...], ln1_b[...], eps)

    # --- cross-attention (precomputed encoder KV, no mask) + add + LN ---------
    ca = _cross_attention(x.astype(jnp.bfloat16), cross_kv_ref[0],
                          ca_wq, ca_bq, ca_wo, ca_bo, num_heads)
    x = _add_layernorm(x, ca, ln2_g[...], ln2_b[...], eps)

    # --- position-wise FFN, K-blocked over d_ff + add + LN --------------------
    xb = x.astype(jnp.bfloat16)
    d_ff = ff_w1.shape[-1]
    ff = jnp.zeros(x.shape, jnp.float32) + ff_b2[...]
    for c0 in range(0, d_ff, ff_chunk):             # static, unrolled
        hid = jnp.dot(xb, ff_w1[:, c0:c0 + ff_chunk],
                      preferred_element_type=jnp.float32) + ff_b1[:, c0:c0 + ff_chunk]
        hid = jnp.maximum(hid, 0.0).astype(jnp.bfloat16)
        ff = ff + jnp.dot(hid, ff_w2[c0:c0 + ff_chunk, :],
                          preferred_element_type=jnp.float32)
    x = _add_layernorm(x, ff, ln3_g[...], ln3_b[...], eps)

    o_ref[0] = x.astype(o_ref.dtype)


def _fc_out_kernel(x_ref, w_ref, b_ref, o_ref):
    """Final projection; vocab axis is tiled (lane-dense 128*k output blocks)."""
    o_ref[0] = (jnp.dot(x_ref[0], w_ref[...], preferred_element_type=jnp.float32)
                + b_ref[...])


# ----------------------------------------------------------------------------
# pallas_call wrappers
# ----------------------------------------------------------------------------

def kv_project(x, w, b, seq_tile):
    """x @ w + b -> bf16, tiled over (batch, rows).  Hoists the K/V projections
    so they are computed once per layer instead of once per query tile."""
    B, S, D = x.shape
    Dout = w.shape[1]
    ts = seq_tile if S % seq_tile == 0 else S
    mode = _weight_pipeline_mode()
    w_bufs = 1 if mode is not None else 2
    est = (2 * ts * (D + Dout)) * 2 + w_bufs * D * Dout * 2 + ts * Dout * 4
    return pl.pallas_call(
        _kv_proj_kernel,
        out_shape=jax.ShapeDtypeStruct((B, S, Dout), jnp.bfloat16),
        grid=(B, S // ts),
        in_specs=[pl.BlockSpec((1, ts, D), lambda bb, ss: (bb, ss, 0)),
                  _const_spec((D, Dout), mode),
                  _const_spec((1, Dout), mode)],
        out_specs=pl.BlockSpec((1, ts, Dout), lambda bb, ss: (bb, ss, 0)),
        compiler_params=pltpu.CompilerParams(
            dimension_semantics=("parallel", "parallel"),
            vmem_limit_bytes=_vmem_limit(est)),
        cost_estimate=pl.CostEstimate(
            flops=int(2 * B * S * D * Dout), transcendentals=0,
            bytes_accessed=int(B * S * (D + Dout) * 2 + D * Dout * 2 + Dout * 4)),
    )(x, w, b)


def _layer_cost(B, S, Senc, D, d_ff):
    proj = 4 * 2 * B * S * D * D                       # q / out projections (both attns)
    self_attn = 2 * 2 * B * S * (S // 2 + 1) * D       # causal QK^T + P@V
    cross_attn = 2 * 2 * B * S * Senc * D
    ffn = 2 * 2 * B * S * D * d_ff
    trans = B * S * (S // 2 + Senc + 8)                # exp / rsqrt / reciprocal (rough)
    byts = (3 * B * S * D * 2 + B * S * 2 * D * 2 + B * Senc * 2 * D * 2
            + (4 * D * D + 2 * D * d_ff) * 2)
    return pl.CostEstimate(flops=int(proj + self_attn + cross_attn + ffn),
                           transcendentals=int(trans), bytes_accessed=int(byts))


def _layer_vmem_bytes(ts, S, Senc, D, d_ff, w_bufs):
    act = 2 * 2 * ts * D * 2                              # x in + out tiles, 2 buffers
    kv = 2 * (S + Senc) * 2 * D * 2                       # self/cross KV blocks, 2 buffers
    weights = w_bufs * (4 * D * D + 2 * D * d_ff) * 2     # bf16 weight blocks
    temps = ts * (6 * D + _pick_ff_chunk(d_ff)) * 4 + ts * max(S, Senc) * 4 * 2
    return act + kv + weights + temps


_LAYER_PARAM_NAMES = ("sa_wq", "sa_bq", "sa_wo", "sa_bo", "ln1_g", "ln1_b",
                      "ca_wq", "ca_bq", "ca_wo", "ca_bo", "ln2_g", "ln2_b",
                      "ffn_w1", "ffn_b1", "ffn_w2", "ffn_b2", "ln3_g", "ln3_b")


def decoder_layer(x, enc, p, num_heads, seq_tile, eps=1e-5):
    B, S, D = x.shape
    Senc = enc.shape[1]
    d_ff = p["ffn_w1"].shape[1]
    ts = seq_tile
    n_s = S // ts
    mode = _weight_pipeline_mode()

    # Hoisted K/V projections: computed once per layer, not per query tile.
    self_kv = kv_project(x, p["sa_wkv"], p["sa_bkv"], ts)          # (B, S, 2D) bf16
    cross_kv = kv_project(enc, p["ca_wkv"], p["ca_bkv"], ts)       # (B, Senc, 2D) bf16

    params = [p[name] for name in _LAYER_PARAM_NAMES]
    kernel = functools.partial(
        _decoder_layer_kernel, num_heads=num_heads, eps=eps, seq_tile=ts,
        ff_chunk=_pick_ff_chunk(d_ff))

    x_spec = pl.BlockSpec((1, ts, D), lambda b, s: (b, s, 0))
    self_kv_spec = pl.BlockSpec((1, S, 2 * D), lambda b, s: (b, 0, 0))
    cross_kv_spec = pl.BlockSpec((1, Senc, 2 * D), lambda b, s: (b, 0, 0))
    param_specs = [_const_spec(a.shape, mode) for a in params]

    w_bufs = 1 if mode is not None else 2
    return pl.pallas_call(
        kernel,
        out_shape=jax.ShapeDtypeStruct((B, S, D), x.dtype),
        grid=(B, n_s),
        in_specs=[x_spec, self_kv_spec, cross_kv_spec] + param_specs,
        out_specs=x_spec,
        compiler_params=pltpu.CompilerParams(
            dimension_semantics=("parallel", "parallel"),
            vmem_limit_bytes=_vmem_limit(
                _layer_vmem_bytes(ts, S, Senc, D, d_ff, w_bufs))),
        cost_estimate=_layer_cost(B, S, Senc, D, d_ff),
    )(x, self_kv, cross_kv, *params)


def fc_out_proj(x, p, seq_tile):
    B, S, D = x.shape
    Vp = p["w"].shape[1]                               # padded to a multiple of 128
    ts = seq_tile
    tn = _pick_vocab_tile(Vp)
    est = 2 * ts * D * 2 + 2 * D * tn * 2 + 2 * (ts * tn * 4 + tn * 4)
    return pl.pallas_call(
        _fc_out_kernel,
        out_shape=jax.ShapeDtypeStruct((B, S, Vp), jnp.float32),
        grid=(B, S // ts, Vp // tn),
        in_specs=[pl.BlockSpec((1, ts, D), lambda b, s, n: (b, s, 0)),
                  pl.BlockSpec((D, tn), lambda b, s, n: (0, n)),
                  pl.BlockSpec((1, tn), lambda b, s, n: (0, n))],
        out_specs=pl.BlockSpec((1, ts, tn), lambda b, s, n: (b, s, n)),
        compiler_params=pltpu.CompilerParams(
            dimension_semantics=("parallel", "parallel", "parallel"),
            vmem_limit_bytes=_vmem_limit(est)),
        cost_estimate=pl.CostEstimate(
            flops=int(2 * B * S * D * Vp), transcendentals=0,
            bytes_accessed=int(B * S * D * 2 + D * Vp * 2 + Vp * 4 + B * S * Vp * 4)),
    )(x, p["w"], p["b"])


# ----------------------------------------------------------------------------
# Parameter init (deterministic, synthetic) and glue
# ----------------------------------------------------------------------------

def _linear_wb(key, d_in, d_out):
    kw, kb = jax.random.split(key)
    bound = 1.0 / math.sqrt(d_in)
    w = jax.random.uniform(kw, (d_in, d_out), jnp.float32, -bound, bound)
    b = jax.random.uniform(kb, (1, d_out), jnp.float32, -bound, bound)
    return w, b


def init_decoder_params(key, output_dim, d_model, d_ff, num_layers):
    keys = jax.random.split(key, 2 + num_layers)
    # Modest embedding scale keeps the bf16 kernel vs. f32 reference comparison
    # well-conditioned; forward semantics are unchanged.
    emb = 0.1 * jax.random.normal(keys[0], (output_dim, d_model), jnp.float32)

    # fc_out, zero-padded to a lane-dense (multiple-of-128) output width.
    w, b = _linear_wb(keys[1], d_model, output_dim)
    vpad = ((output_dim + 127) // 128) * 128
    w_pad = jnp.zeros((d_model, vpad), jnp.float32).at[:, :output_dim].set(w)
    b_pad = jnp.zeros((1, vpad), jnp.float32).at[:, :output_dim].set(b)
    fc = {"w": w_pad.astype(jnp.bfloat16), "b": b_pad}

    def attn_params(k0, k1, k2, k3):
        wq, bq = _linear_wb(k0, d_model, d_model)
        wk, bk = _linear_wb(k1, d_model, d_model)
        wv, bv = _linear_wb(k2, d_model, d_model)
        wo, bo = _linear_wb(k3, d_model, d_model)
        return {"wq": wq.astype(jnp.bfloat16), "bq": bq,
                "wkv": jnp.concatenate([wk, wv], axis=1).astype(jnp.bfloat16),
                "bkv": jnp.concatenate([bk, bv], axis=1),
                "wo": wo.astype(jnp.bfloat16), "bo": bo}

    def ln_params():
        return (jnp.ones((1, d_model), jnp.float32),
                jnp.zeros((1, d_model), jnp.float32))

    layers = []
    for l in range(num_layers):
        lk = jax.random.split(keys[2 + l], 10)
        sa = attn_params(lk[0], lk[1], lk[2], lk[3])
        ca = attn_params(lk[4], lk[5], lk[6], lk[7])
        w1, b1 = _linear_wb(lk[8], d_model, d_ff)
        w2, b2 = _linear_wb(lk[9], d_ff, d_model)
        g1, be1 = ln_params(); g2, be2 = ln_params(); g3, be3 = ln_params()
        layers.append({
            "sa_wq": sa["wq"], "sa_bq": sa["bq"], "sa_wkv": sa["wkv"],
            "sa_bkv": sa["bkv"], "sa_wo": sa["wo"], "sa_bo": sa["bo"],
            "ln1_g": g1, "ln1_b": be1,
            "ca_wq": ca["wq"], "ca_bq": ca["bq"], "ca_wkv": ca["wkv"],
            "ca_bkv": ca["bkv"], "ca_wo": ca["wo"], "ca_bo": ca["bo"],
            "ln2_g": g2, "ln2_b": be2,
            "ffn_w1": w1.astype(jnp.bfloat16), "ffn_b1": b1,
            "ffn_w2": w2.astype(jnp.bfloat16), "ffn_b2": b2,
            "ln3_g": g3, "ln3_b": be3,
        })
    return {"emb": emb, "fc_out": fc, "layers": layers}


def positional_encoding(seq_len, d_model):
    pos = jnp.arange(seq_len, dtype=jnp.float32)[:, None]
    div = jnp.exp(jnp.arange(0, d_model, 2, dtype=jnp.float32)
                  * (-math.log(10000.0) / d_model))
    pe = jnp.zeros((seq_len, d_model), jnp.float32)
    pe = pe.at[:, 0::2].set(jnp.sin(pos * div))
    pe = pe.at[:, 1::2].set(jnp.cos(pos * div))
    return pe


def decoder_forward(trg, enc_output, params, num_heads, seq_tile=256):
    # Note: on v7x (64 MiB VMEM) a seq_tile of 128 is recommended for large D/d_ff.
    d_model = params["emb"].shape[1]
    output_dim = params["emb"].shape[0]
    B, S = trg.shape

    # Glue: embedding gather + scale + positional encoding; dropout(p) -> identity.
    x = params["emb"][trg] * math.sqrt(d_model)
    x = x + positional_encoding(S, d_model)[None]
    x = x.astype(jnp.bfloat16)
    enc = enc_output.astype(jnp.bfloat16)

    ts = _pick_seq_tile(S, seq_tile)
    for layer in params["layers"]:
        x = decoder_layer(x, enc, layer, num_heads, ts)

    logits = fc_out_proj(x, params["fc_out"], ts)
    return logits[..., :output_dim]                 # strip the lane padding


# ----------------------------------------------------------------------------
# Pure-JAX (f32) reference for a numerical cross-check
# ----------------------------------------------------------------------------

def decoder_forward_ref(trg, enc_output, params, num_heads):
    f32 = lambda a: a.astype(jnp.float32)
    d_model = params["emb"].shape[1]
    output_dim = params["emb"].shape[0]
    B, S = trg.shape
    x = params["emb"][trg] * math.sqrt(d_model)
    x = x + positional_encoding(S, d_model)[None]
    enc = f32(enc_output)

    def mha(xq, xkv, wq, bq, wkv, bkv, wo, bo, causal):
        D = xq.shape[-1]; H = num_heads; dh = D // H
        q = xq @ f32(wq) + f32(bq)
        kv = xkv @ f32(wkv) + f32(bkv)
        k, v = kv[..., :D], kv[..., D:]
        sp = lambda t: t.reshape(t.shape[0], t.shape[1], H, dh).transpose(0, 2, 1, 3)
        qh, kh, vh = sp(q), sp(k), sp(v)
        s = jnp.einsum('bhqd,bhkd->bhqk', qh, kh) / math.sqrt(dh)
        if causal:
            mask = jnp.tril(jnp.ones((xq.shape[1], xkv.shape[1]), bool))
            s = jnp.where(mask, s, -1e30)
        p = jax.nn.softmax(s, axis=-1)
        ctx = jnp.einsum('bhqk,bhkd->bhqd', p, vh)
        ctx = ctx.transpose(0, 2, 1, 3).reshape(xq.shape[0], xq.shape[1], D)
        return ctx @ f32(wo) + f32(bo)

    def ln(z, g, b):
        mu = z.mean(-1, keepdims=True)
        var = ((z - mu) ** 2).mean(-1, keepdims=True)
        return (z - mu) / jnp.sqrt(var + 1e-5) * f32(g) + f32(b)

    for p_ in params["layers"]:
        sa = mha(x, x, p_["sa_wq"], p_["sa_bq"], p_["sa_wkv"], p_["sa_bkv"],
                 p_["sa_wo"], p_["sa_bo"], causal=True)
        x = ln(x + sa, p_["ln1_g"], p_["ln1_b"])
        ca = mha(x, enc, p_["ca_wq"], p_["ca_bq"], p_["ca_wkv"], p_["ca_bkv"],
                 p_["ca_wo"], p_["ca_bo"], causal=False)
        x = ln(x + ca, p_["ln2_g"], p_["ln2_b"])
        hid = jnp.maximum(x @ f32(p_["ffn_w1"]) + f32(p_["ffn_b1"]), 0.0)
        ff = hid @ f32(p_["ffn_w2"]) + f32(p_["ffn_b2"])
        x = ln(x + ff, p_["ln3_g"], p_["ln3_b"])

    logits = x @ f32(params["fc_out"]["w"]) + f32(params["fc_out"]["b"])
    return logits[..., :output_dim]


# ----------------------------------------------------------------------------

def _run_config(cfg):
    key = jax.random.PRNGKey(0)
    k_param, k_trg, k_enc = jax.random.split(key, 3)
    params = init_decoder_params(k_param, cfg["output_dim"], cfg["d_model"],
                                 cfg["d_ff"], cfg["num_layers"])
    trg = jax.random.randint(k_trg, (cfg["B"], cfg["S_trg"]), 0, cfg["output_dim"])
    enc_output = jax.random.normal(
        k_enc, (cfg["B"], cfg["S_src"], cfg["d_model"]), jnp.float32)

    fwd = jax.jit(functools.partial(decoder_forward, num_heads=cfg["num_heads"],
                                    seq_tile=cfg["seq_tile"]))
    out = jax.block_until_ready(fwd(trg, enc_output, params))
    assert out.shape == (cfg["B"], cfg["S_trg"], cfg["output_dim"])
    assert bool(jnp.all(jnp.isfinite(out)))

    ref = decoder_forward_ref(trg, enc_output, params, cfg["num_heads"])
    max_err = float(jnp.max(jnp.abs(out - ref)))
    assert max_err < 0.15, f"kernel/reference mismatch: max abs err {max_err:.4f}"


if __name__ == "__main__":
    _weight_pipeline_mode()   # probe Buffered(1) support once, eagerly
    configs = [
        # Tiny config: unaligned head_dim (8) / d_model (32), 2 layers, 2 seq tiles
        # -> exercises the causal flash loop and the generic per-head path.
        dict(output_dim=16, d_model=32, num_heads=4, d_ff=64, num_layers=2,
             B=2, S_trg=16, S_src=10, seq_tile=8),
        # Lane-aligned config: head_dim=128, d_ff=1024 -> exercises the K-blocked
        # FFN (two 512-wide chunks) and aligned lane slicing.
        dict(output_dim=100, d_model=256, num_heads=2, d_ff=1024, num_layers=1,
             B=1, S_trg=16, S_src=8, seq_tile=8),
    ]
    for cfg in configs:
        _run_config(cfg)
    print("KERNEL_OK")
</pallas_src>

<mosaic_0001>
module attributes {stable_mosaic.version = 11 : i64} {
  func.func @_probe_kernel(%arg0: i32, %arg1: memref<8x128xf32, #tpu.memory_space<vmem>>, %arg2: memref<8x128xf32, #tpu.memory_space<vmem>>) attributes {dimension_semantics = [#tpu.dimension_semantics<arbitrary>], iteration_bounds = array<i64: 2>, scalar_prefetch = 0 : i64, scratch_operands = 0 : i64, tpu.core_type = #tpu.core_type<tc>, window_params = [{pipeline_mode = #tpu.pipeline_mode<synchronous>, transform_indices = @transform_0, window_bounds = array<i64: 8, 128>}, {pipeline_mode = #tpu.pipeline_mode<synchronous>, transform_indices = @transform_1, window_bounds = array<i64: 8, 128>}]} {
    %c0 = arith.constant 0 : index
    %c0_0 = arith.constant 0 : index
    %0 = vector.load %arg1[%c0, %c0_0] : memref<8x128xf32, #tpu.memory_space<vmem>>, vector<8x128xf32>
    %cst = arith.constant 1.000000e+00 : f32
    %1 = vector.broadcast %cst : f32 to vector<8x128xf32>
    %2 = arith.addf %0, %1 : vector<8x128xf32>
    %c0_1 = arith.constant 0 : index
    %c0_2 = arith.constant 0 : index
    %3 = vector.load %arg2[%c0_1, %c0_2] : memref<8x128xf32, #tpu.memory_space<vmem>>, vector<8x128xf32>
    tpu.vector_store %arg2[%c0_1, %c0_2], %2 {strides = array<i32>} : memref<8x128xf32, #tpu.memory_space<vmem>>, vector<8x128xf32>,
    return
  }
  func.func @transform_0(%arg0: i32) -> (i32, i32) {
    %c0_i32 = arith.constant 0 : i32
    %c0_i32_0 = arith.constant 0 : i32
    %c0_i32_1 = arith.constant 0 : i32
    return %c0_i32, %c0_i32_0 : i32, i32
  }
  func.func @transform_1(%arg0: i32) -> (i32, i32) {
    %c0_i32 = arith.constant 0 : i32
    %c0_i32_0 = arith.constant 0 : i32
    %c0_i32_1 = arith.constant 0 : i32
    return %c0_i32, %c0_i32_0 : i32, i32
  }
}

module attributes {stable_mosaic.version = 11 : i64} {
  func.func @_kv_proj_kernel(%arg0: i32, %arg1: i32, %arg2: memref<1x8x32xbf16, #tpu.memory_space<vmem>>, %arg3: memref<32x64xbf16, #tpu.memory_space<vmem>>, %arg4: memref<1x64xf32, #tpu.memory_space<vmem>>, %arg5: memref<1x8x64xbf16, #tpu.memory_space<vmem>>) attributes {dimension_semantics = [#tpu.dimension_semantics<parallel>, #tpu.dimension_semantics<parallel>], iteration_bounds = array<i64: 2, 2>, scalar_prefetch = 0 : i64, scratch_operands = 0 : i64, tpu.core_type = #tpu.core_type<tc>, window_params = [{transform_indices = @transform_0, window_bounds = array<i64: 1, 8, 32>}, {pipeline_mode = #tpu.pipeline_mode<synchronous>, transform_indices = @transform_1, window_bounds = array<i64: 32, 64>}, {pipeline_mode = #tpu.pipeline_mode<synchronous>, transform_indices = @transform_2, window_bounds = array<i64: 1, 64>}, {transform_indices = @transform_3, window_bounds = array<i64: 1, 8, 64>}]} {
    %c0 = arith.constant 0 : index
    %c0_0 = arith.constant 0 : index
    %c0_1 = arith.constant 0 : index
    %0 = vector.load %arg2[%c0, %c0_0, %c0_1] : memref<1x8x32xbf16, #tpu.memory_space<vmem>>, vector<1x8x32xbf16>
    %1 = vector.shape_cast %0 : vector<1x8x32xbf16> to vector<8x32xbf16>
    %c0_2 = arith.constant 0 : index
    %c0_3 = arith.constant 0 : index
    %2 = vector.load %arg3[%c0_2, %c0_3] : memref<32x64xbf16, #tpu.memory_space<vmem>>, vector<32x64xbf16>
    %cst = arith.constant dense<0.000000e+00> : vector<8x64xf32>
    %3 = tpu.matmul %1, %2, %cst {dimension_numbers = #tpu.dot_dimension_numbers<[1], [0], [0], [1], [0, 0, 1, 1], [], []>} : vector<8x32xbf16>, vector<32x64xbf16>, vector<8x64xf32> -> vector<8x64xf32>
    %c0_4 = arith.constant 0 : index
    %c0_5 = arith.constant 0 : index
    %4 = vector.load %arg4[%c0_4, %c0_5] : memref<1x64xf32, #tpu.memory_space<vmem>>, vector<1x64xf32>
    %5 = vector.broadcast %4 : vector<1x64xf32> to vector<8x64xf32>
    %6 = arith.addf %3, %5 : vector<8x64xf32>
    %7 = arith.truncf %6 : vector<8x64xf32> to vector<8x64xbf16>
    %c0_6 = arith.constant 0 : index
    %c0_7 = arith.constant 0 : index
    %c0_8 = arith.constant 0 : index
    %8 = vector.load %arg5[%c0_6, %c0_7, %c0_8] : memref<1x8x64xbf16, #tpu.memory_space<vmem>>, vector<1x8x64xbf16>
    %9 = vector.shape_cast %8 : vector<1x8x64xbf16> to vector<8x64xbf16>
    %10 = vector.shape_cast %7 : vector<8x64xbf16> to vector<1x8x64xbf16>
    tpu.vector_store %arg5[%c0_6, %c0_7, %c0_8], %10 {strides = array<i32>} : memref<1x8x64xbf16, #tpu.memory_space<vmem>>, vector<1x8x64xbf16>,
    return
  }
  func.func @transform_0(%arg0: i32, %arg1: i32) -> (i32, i32, i32) {
    %c0_i32 = arith.constant 0 : i32
    %c0_i32_0 = arith.constant 0 : i32
    return %arg0, %arg1, %c0_i32 : i32, i32, i32
  }
  func.func @transform_1(%arg0: i32, %arg1: i32) -> (i32, i32) {
    %c0_i32 = arith.constant 0 : i32
    %c0_i32_0 = arith.constant 0 : i32
    %c0_i32_1 = arith.constant 0 : i32
    return %c0_i32, %c0_i32_0 : i32, i32
  }
  func.func @transform_2(%arg0: i32, %arg1: i32) -> (i32, i32) {
    %c0_i32 = arith.constant 0 : i32
    %c0_i32_0 = arith.constant 0 : i32
    %c0_i32_1 = arith.constant 0 : i32
    return %c0_i32, %c0_i32_0 : i32, i32
  }
  func.func @transform_3(%arg0: i32, %arg1: i32) -> (i32, i32, i32) {
    %c0_i32 = arith.constant 0 : i32
    %c0_i32_0 = arith.constant 0 : i32
    return %arg0, %arg1, %c0_i32 : i32, i32, i32
  }
}

module attributes {stable_mosaic.version = 11 : i64} {
  func.func @_kv_proj_kernel(%arg0: i32, %arg1: i32, %arg2: memref<1x10x32xbf16, #tpu.memory_space<vmem>>, %arg3: memref<32x64xbf16, #tpu.memory_space<vmem>>, %arg4: memref<1x64xf32, #tpu.memory_space<vmem>>, %arg5: memref<1x10x64xbf16, #tpu.memory_space<vmem>>) attributes {dimension_semantics = [#tpu.dimension_semantics<parallel>, #tpu.dimension_semantics<parallel>], iteration_bounds = array<i64: 2, 1>, scalar_prefetch = 0 : i64, scratch_operands = 0 : i64, tpu.core_type = #tpu.core_type<tc>, window_params = [{transform_indices = @transform_0, window_bounds = array<i64: 1, 10, 32>}, {pipeline_mode = #tpu.pipeline_mode<synchronous>, transform_indices = @transform_1, window_bounds = array<i64: 32, 64>}, {pipeline_mode = #tpu.pipeline_mode<synchronous>, transform_indices = @transform_2, window_bounds = array<i64: 1, 64>}, {transform_indices = @transform_3, window_bounds = array<i64: 1, 10, 64>}]} {
    %c0 = arith.constant 0 : index
    %c0_0 = arith.constant 0 : index
    %c0_1 = arith.constant 0 : index
    %0 = vector.load %arg2[%c0, %c0_0, %c0_1] : memref<1x10x32xbf16, #tpu.memory_space<vmem>>, vector<1x10x32xbf16>
    %1 = vector.shape_cast %0 : vector<1x10x32xbf16> to vector<10x32xbf16>
    %c0_2 = arith.constant 0 : index
    %c0_3 = arith.constant 0 : index
    %2 = vector.load %arg3[%c0_2, %c0_3] : memref<32x64xbf16, #tpu.memory_space<vmem>>, vector<32x64xbf16>
    %cst = arith.constant dense<0.000000e+00> : vector<10x64xf32>
    %3 = tpu.matmul %1, %2, %cst {dimension_numbers = #tpu.dot_dimension_numbers<[1], [0], [0], [1], [0, 0, 1, 1], [], []>} : vector<10x32xbf16>, vector<32x64xbf16>, vector<10x64xf32> -> vector<10x64xf32>
    %c0_4 = arith.constant 0 : index
    %c0_5 = arith.constant 0 : index
    %4 = vector.load %arg4[%c0_4, %c0_5] : memref<1x64xf32, #tpu.memory_space<vmem>>, vector<1x64xf32>
    %5 = vector.broadcast %4 : vector<1x64xf32> to vector<10x64xf32>
    %6 = arith.addf %3, %5 : vector<10x64xf32>
    %7 = arith.truncf %6 : vector<10x64xf32> to vector<10x64xbf16>
    %c0_6 = arith.constant 0 : index
    %c0_7 = arith.constant 0 : index
    %c0_8 = arith.constant 0 : index
    %8 = vector.load %arg5[%c0_6, %c0_7, %c0_8] : memref<1x10x64xbf16, #tpu.memory_space<vmem>>, vector<1x10x64xbf16>
    %9 = vector.shape_cast %8 : vector<1x10x64xbf16> to vector<10x64xbf16>
    %10 = vector.shape_cast %7 : vector<10x64xbf16> to vector<1x10x64xbf16>
    tpu.vector_store %arg5[%c0_6, %c0_7, %c0_8], %10 {strides = array<i32>} : memref<1x10x64xbf16, #tpu.memory_space<vmem>>, vector<1x10x64xbf16>,
    return
  }
  func.func @transform_0(%arg0: i32, %arg1: i32) -> (i32, i32, i32) {
    %c0_i32 = arith.constant 0 : i32
    %c0_i32_0 = arith.constant 0 : i32
    return %arg0, %arg1, %c0_i32 : i32, i32, i32
  }
  func.func @transform_1(%arg0: i32, %arg1: i32) -> (i32, i32) {
    %c0_i32 = arith.constant 0 : i32
    %c0_i32_0 = arith.constant 0 : i32
    %c0_i32_1 = arith.constant 0 : i32
    return %c0_i32, %c0_i32_0 : i32, i32
  }
  func.func @transform_2(%arg0: i32, %arg1: i32) -> (i32, i32) {
    %c0_i32 = arith.constant 0 : i32
    %c0_i32_0 = arith.constant 0 : i32
    %c0_i32_1 = arith.constant 0 : i32
    return %c0_i32, %c0_i32_0 : i32, i32
  }
  func.func @transform_3(%arg0: i32, %arg1: i32) -> (i32, i32, i32) {
    %c0_i32 = arith.constant 0 : i32
    %c0_i32_0 = arith.constant 0 : i32
    return %arg0, %arg1, %c0_i32 : i32, i32, i32
  }
}

module attributes {stable_mosaic.version = 11 : i64} {
  func.func @_fc_out_kernel(%arg0: i32, %arg1: i32, %arg2: i32, %arg3: memref<1x8x32xbf16, #tpu.memory_space<vmem>>, %arg4: memref<32x128xbf16, #tpu.memory_space<vmem>>, %arg5: memref<1x128xf32, #tpu.memory_space<vmem>>, %arg6: memref<1x8x128xf32, #tpu.memory_space<vmem>>) attributes {dimension_semantics = [#tpu.dimension_semantics<parallel>, #tpu.dimension_semantics<parallel>, #tpu.dimension_semantics<parallel>], iteration_bounds = array<i64: 2, 2, 1>, scalar_prefetch = 0 : i64, scratch_operands = 0 : i64, tpu.core_type = #tpu.core_type<tc>, window_params = [{transform_indices = @transform_0, window_bounds = array<i64: 1, 8, 32>}, {transform_indices = @transform_1, window_bounds = array<i64: 32, 128>}, {transform_indices = @transform_2, window_bounds = array<i64: 1, 128>}, {transform_indices = @transform_3, window_bounds = array<i64: 1, 8, 128>}]} {
    %c0 = arith.constant 0 : index
    %c0_0 = arith.constant 0 : index
    %c0_1 = arith.constant 0 : index
    %0 = vector.load %arg3[%c0, %c0_0, %c0_1] : memref<1x8x32xbf16, #tpu.memory_space<vmem>>, vector<1x8x32xbf16>
    %1 = vector.shape_cast %0 : vector<1x8x32xbf16> to vector<8x32xbf16>
    %c0_2 = arith.constant 0 : index
    %c0_3 = arith.constant 0 : index
    %2 = vector.load %arg4[%c0_2, %c0_3] : memref<32x128xbf16, #tpu.memory_space<vmem>>, vector<32x128xbf16>
    %cst = arith.constant dense<0.000000e+00> : vector<8x128xf32>
    %3 = tpu.matmul %1, %2, %cst {dimension_numbers = #tpu.dot_dimension_numbers<[1], [0], [0], [1], [0, 0, 1, 1], [], []>} : vector<8x32xbf16>, vector<32x128xbf16>, vector<8x128xf32> -> vector<8x128xf32>
    %c0_4 = arith.constant 0 : index
    %c0_5 = arith.constant 0 : index
    %4 = vector.load %arg5[%c0_4, %c0_5] : memref<1x128xf32, #tpu.memory_space<vmem>>, vector<1x128xf32>
    %5 = vector.broadcast %4 : vector<1x128xf32> to vector<8x128xf32>
    %6 = arith.addf %3, %5 : vector<8x128xf32>
    %c0_6 = arith.constant 0 : index
    %c0_7 = arith.constant 0 : index
    %c0_8 = arith.constant 0 : index
    %7 = vector.load %arg6[%c0_6, %c0_7, %c0_8] : memref<1x8x128xf32, #tpu.memory_space<vmem>>, vector<1x8x128xf32>
    %8 = vector.shape_cast %7 : vector<1x8x128xf32> to vector<8x128xf32>
    %9 = vector.shape_cast %6 : vector<8x128xf32> to vector<1x8x128xf32>
    tpu.vector_store %arg6[%c0_6, %c0_7, %c0_8], %9 {strides = array<i32>} : memref<1x8x128xf32, #tpu.memory_space<vmem>>, vector<1x8x128xf32>,
    return
  }
  func.func @transform_0(%arg0: i32, %arg1: i32, %arg2: i32) -> (i32, i32, i32) {
    %c0_i32 = arith.constant 0 : i32
    %c0_i32_0 = arith.constant 0 : i32
    return %arg0, %arg1, %c0_i32 : i32, i32, i32
  }
  func.func @transform_1(%arg0: i32, %arg1: i32, %arg2: i32) -> (i32, i32) {
    %c0_i32 = arith.constant 0 : i32
    %c0_i32_0 = arith.constant 0 : i32
    return %c0_i32, %arg2 : i32, i32
  }
  func.func @transform_2(%arg0: i32, %arg1: i32, %arg2: i32) -> (i32, i32) {
    %c0_i32 = arith.constant 0 : i32
    %c0_i32_0 = arith.constant 0 : i32
    return %c0_i32, %arg2 : i32, i32
  }
  func.func @transform_3(%arg0: i32, %arg1: i32, %arg2: i32) -> (i32, i32, i32) {
    %c0_i32 = arith.constant 0 : i32
    return %arg0, %arg1, %arg2 : i32, i32, i32
  }
}

module attributes {stable_mosaic.version = 11 : i64} {
  func.func @_decoder_layer_kernel(%arg0: i32, %arg1: i32, %arg2: memref<1x8x32xbf16, #tpu.memory_space<vmem>>, %arg3: memref<1x16x64xbf16, #tpu.memory_space<vmem>>, %arg4: memref<1x10x64xbf16, #tpu.memory_space<vmem>>, %arg5: memref<32x32xbf16, #tpu.memory_space<vmem>>, %arg6: memref<1x32xf32, #tpu.memory_space<vmem>>, %arg7: memref<32x32xbf16, #tpu.memory_space<vmem>>, %arg8: memref<1x32xf32, #tpu.memory_space<vmem>>, %arg9: memref<1x32xf32, #tpu.memory_space<vmem>>, %arg10: memref<1x32xf32, #tpu.memory_space<vmem>>, %arg11: memref<32x32xbf16, #tpu.memory_space<vmem>>, %arg12: memref<1x32xf32, #tpu.memory_space<vmem>>, %arg13: memref<32x32xbf16, #tpu.memory_space<vmem>>, %arg14: memref<1x32xf32, #tpu.memory_space<vmem>>, %arg15: memref<1x32xf32, #tpu.memory_space<vmem>>, %arg16: memref<1x32xf32, #tpu.memory_space<vmem>>, %arg17: memref<32x64xbf16, #tpu.memory_space<vmem>>, %arg18: memref<1x64xf32, #tpu.memory_space<vmem>>, %arg19: memref<64x32xbf16, #tpu.memory_space<vmem>>, %arg20: memref<1x32xf32, #tpu.memory_space<vmem>>, %arg21: memref<1x32xf32, #tpu.memory_space<vmem>>, %arg22: memref<1x32xf32, #tpu.memory_space<vmem>>, %arg23: memref<1x8x32xbf16, #tpu.memory_space<vmem>>) attributes {dimension_semantics = [#tpu.dimension_semantics<parallel>, #tpu.dimension_semantics<parallel>], iteration_bounds = array<i64: 2, 2>, scalar_prefetch = 0 : i64, scratch_operands = 0 : i64, tpu.core_type = #tpu.core_type<tc>, window_params = [{transform_indices = @transform_0, window_bounds = array<i64: 1, 8, 32>}, {transform_indices = @transform_1, window_bounds = array<i64: 1, 16, 64>}, {transform_indices = @transform_2, window_bounds = array<i64: 1, 10, 64>}, {pipeline_mode = #tpu.pipeline_mode<synchronous>, transform_indices = @transform_3, window_bounds = array<i64: 32, 32>}, {pipeline_mode = #tpu.pipeline_mode<synchronous>, transform_indices = @transform_4, window_bounds = array<i64: 1, 32>}, {pipeline_mode = #tpu.pipeline_mode<synchronous>, transform_indices = @transform_5, window_bounds = array<i64: 32, 32>}, {pipeline_mode = #tpu.pipeline_mode<synchronous>, transform_indices = @transform_6, window_bounds = array<i64: 1, 32>}, {pipeline_mode = #tpu.pipeline_mode<synchronous>, transform_indices = @transform_7, window_bounds = array<i64: 1, 32>}, {pipeline_mode = #tpu.pipeline_mode<synchronous>, transform_indices = @transform_8, window_bounds = array<i64: 1, 32>}, {pipeline_mode = #tpu.pipeline_mode<synchronous>, transform_indices = @transform_9, window_bounds = array<i64: 32, 32>}, {pipeline_mode = #tpu.pipeline_mode<synchronous>, transform_indices = @transform_10, window_bounds = array<i64: 1, 32>}, {pipeline_mode = #tpu.pipeline_mode<synchronous>, transform_indices = @transform_11, window_bounds = array<i64: 32, 32>}, {pipeline_mode = #tpu.pipeline_mode<synchronous>, transform_indices = @transform_12, window_bounds = array<i64: 1, 32>}, {pipeline_mode = #tpu.pipeline_mode<synchronous>, transform_indices = @transform_13, window_bounds = array<i64: 1, 32>}, {pipeline_mode = #tpu.pipeline_mode<synchronous>, transform_indices = @transform_14, window_bounds = array<i64: 1, 32>}, {pipeline_mode = #tpu.pipeline_mode<synchronous>, transform_indices = @transform_15, window_bounds = array<i64: 32, 64>}, {pipeline_mode = #tpu.pipeline_mode<synchronous>, transform_indices = @transform_16, window_bounds = array<i64: 1, 64>}, {pipeline_mode = #tpu.pipeline_mode<synchronous>, transform_indices = @transform_17, window_bounds = array<i64: 64, 32>}, {pipeline_mode = #tpu.pipeline_mode<synchronous>, transform_indices = @transform_18, window_bounds = array<i64: 1, 32>}, {pipeline_mode = #tpu.pipeline_mode<synchronous>, transform_indices = @transform_19, window_bounds = array<i64: 1, 32>}, {pipeline_mode = #tpu.pipeline_mode<synchronous>, transform_indices = @transform_20, window_bounds = array<i64: 1, 32>}, {transform_indices = @transform_21, window_bounds = array<i64: 1, 8, 32>}]} {
    %c0 = arith.constant 0 : index
    %c0_0 = arith.constant 0 : index
    %c0_1 = arith.constant 0 : index
    %0 = vector.load %arg2[%c0, %c0_0, %c0_1] : memref<1x8x32xbf16, #tpu.memory_space<vmem>>, vector<1x8x32xbf16>
    %1 = vector.shape_cast %0 : vector<1x8x32xbf16> to vector<8x32xbf16>
    %c8_i32 = arith.constant 8 : i32
    %2 = arith.muli %arg1, %c8_i32 : i32
    %3 = arith.extf %1 : vector<8x32xbf16> to vector<8x32xf32>
    %c0_2 = arith.constant 0 : index
    %c0_3 = arith.constant 0 : index
    %4 = vector.load %arg5[%c0_2, %c0_3] : memref<32x32xbf16, #tpu.memory_space<vmem>>, vector<32x32xbf16>
    %cst = arith.constant dense<0.000000e+00> : vector<8x32xf32>
    %5 = tpu.matmul %1, %4, %cst {dimension_numbers = #tpu.dot_dimension_numbers<[1], [0], [0], [1], [0, 0, 1, 1], [], []>} : vector<8x32xbf16>, vector<32x32xbf16>, vector<8x32xf32> -> vector<8x32xf32>
    %c0_4 = arith.constant 0 : index
    %c0_5 = arith.constant 0 : index
    %6 = vector.load %arg6[%c0_4, %c0_5] : memref<1x32xf32, #tpu.memory_space<vmem>>, vector<1x32xf32>
    %7 = vector.broadcast %6 : vector<1x32xf32> to vector<8x32xf32>
    %8 = arith.addf %5, %7 : vector<8x32xf32>
    %cst_6 = arith.constant 0.353553385 : f32
    %9 = vector.broadcast %cst_6 : f32 to vector<8x32xf32>
    %10 = arith.mulf %8, %9 : vector<8x32xf32>
    %11 = arith.truncf %10 : vector<8x32xf32> to vector<8x32xbf16>
    %12 = tpu.iota {dimensions = array<i32: 0>} : vector<8x8xi32>
    %13 = vector.broadcast %2 : i32 to vector<8x8xi32>
    %14 = arith.addi %13, %12 : vector<8x8xi32>
    %15 = tpu.iota {dimensions = array<i32: 1>} : vector<8x8xi32>
    %cst_7 = arith.constant -1.000000e+30 : f32
    %16 = vector.broadcast %cst_7 : f32 to vector<8x1xf32>
    %cst_8 = arith.constant -1.000000e+30 : f32
    %17 = vector.broadcast %cst_8 : f32 to vector<8x1xf32>
    %cst_9 = arith.constant -1.000000e+30 : f32
    %18 = vector.broadcast %cst_9 : f32 to vector<8x1xf32>
    %cst_10 = arith.constant -1.000000e+30 : f32
    %19 = vector.broadcast %cst_10 : f32 to vector<8x1xf32>
    %cst_11 = arith.constant 0.000000e+00 : f32
    %20 = vector.broadcast %cst_11 : f32 to vector<8x1xf32>
    %cst_12 = arith.constant 0.000000e+00 : f32
    %21 = vector.broadcast %cst_12 : f32 to vector<8x1xf32>
    %cst_13 = arith.constant 0.000000e+00 : f32
    %22 = vector.broadcast %cst_13 : f32 to vector<8x1xf32>
    %cst_14 = arith.constant 0.000000e+00 : f32
    %23 = vector.broadcast %cst_14 : f32 to vector<8x1xf32>
    %cst_15 = arith.constant 0.000000e+00 : f32
    %24 = vector.broadcast %cst_15 : f32 to vector<8x8xf32>
    %cst_16 = arith.constant 0.000000e+00 : f32
    %25 = vector.broadcast %cst_16 : f32 to vector<8x8xf32>
    %cst_17 = arith.constant 0.000000e+00 : f32
    %26 = vector.broadcast %cst_17 : f32 to vector<8x8xf32>
    %cst_18 = arith.constant 0.000000e+00 : f32
    %27 = vector.broadcast %cst_18 : f32 to vector<8x8xf32>
    %c1_i32 = arith.constant 1 : i32
    %28 = arith.addi %arg1, %c1_i32 : i32
    %c0_i32 = arith.constant 0 : i32
    %29 = arith.subi %28, %c0_i32 : i32
    %30 = arith.addi %c0_i32, %29 : i32
    %c1_i32_19 = arith.constant 1 : i32
    %31:12 = scf.for %arg24 = %c0_i32 to %30 step %c1_i32_19 iter_args(%arg25 = %16, %arg26 = %17, %arg27 = %18, %arg28 = %19, %arg29 = %20, %arg30 = %21, %arg31 = %22, %arg32 = %23, %arg33 = %24, %arg34 = %25, %arg35 = %26, %arg36 = %27) -> (vector<8x1xf32>, vector<8x1xf32>, vector<8x1xf32>, vector<8x1xf32>, vector<8x1xf32>, vector<8x1xf32>, vector<8x1xf32>, vector<8x1xf32>, vector<8x8xf32>, vector<8x8xf32>, vector<8x8xf32>, vector<8x8xf32>)  : i32 {
      %c8_i32_114 = arith.constant 8 : i32
      %250 = arith.muli %arg24, %c8_i32_114 : i32
      %251 = tpu.assume_multiple %250, 8 : i32
      %c0_115 = arith.constant 0 : index
      %252 = arith.index_cast %251 : i32 to index
      %c0_116 = arith.constant 0 : index
      %253 = vector.load %arg3[%c0_115, %252, %c0_116] : memref<1x16x64xbf16, #tpu.memory_space<vmem>>, vector<1x8x64xbf16>
      %254 = vector.shape_cast %253 : vector<1x8x64xbf16> to vector<8x64xbf16>
      %255 = vector.extract_strided_slice %254 {offsets = [0, 0], sizes = [8, 32], strides = [1, 1]} : vector<8x64xbf16> to vector<8x32xbf16>
      %256 = vector.extract_strided_slice %254 {offsets = [0, 32], sizes = [8, 32], strides = [1, 1]} : vector<8x64xbf16> to vector<8x32xbf16>
      %257 = vector.broadcast %251 : i32 to vector<8x8xi32>
      %258 = arith.addi %257, %15 : vector<8x8xi32>
      %259 = arith.cmpi sle, %258, %14 : vector<8x8xi32>
      %260 = vector.extract_strided_slice %11 {offsets = [0, 0], sizes = [8, 8], strides = [1, 1]} : vector<8x32xbf16> to vector<8x8xbf16>
      %261 = vector.extract_strided_slice %255 {offsets = [0, 0], sizes = [8, 8], strides = [1, 1]} : vector<8x32xbf16> to vector<8x8xbf16>
      %cst_117 = arith.constant dense<0.000000e+00> : vector<8x8xf32>
      %262 = tpu.matmul %260, %261, %cst_117 {dimension_numbers = #tpu.dot_dimension_numbers<[1], [1], [0], [0], [0, 0, 1, 0], [], []>} : vector<8x8xbf16>, vector<8x8xbf16>, vector<8x8xf32> -> vector<8x8xf32>
      %cst_118 = arith.constant -1.000000e+30 : f32
      %263 = vector.broadcast %cst_118 : f32 to vector<8x8xf32>
      %264 = arith.select %259, %262, %263 : vector<8x8xi1>, vector<8x8xf32>
      %cst_119 = arith.constant dense<0xFF800000> : vector<8xf32>
      %265 = vector.multi_reduction <maximumf>, %264, %cst_119 [1] : vector<8x8xf32> to vector<8xf32>
      %266 = vector.shape_cast %265 : vector<8xf32> to vector<8x1xf32>
      %267 = arith.maximumf %arg25, %266 : vector<8x1xf32>
      %268 = arith.subf %arg25, %267 : vector<8x1xf32>
      %269 = math.exp %268 : vector<8x1xf32>
      %270 = vector.broadcast %267 : vector<8x1xf32> to vector<8x8xf32>
      %271 = arith.subf %264, %270 : vector<8x8xf32>
      %272 = math.exp %271 : vector<8x8xf32>
      %273 = arith.mulf %269, %arg29 : vector<8x1xf32>
      %cst_120 = arith.constant dense<0.000000e+00> : vector<8xf32>
      %274 = vector.multi_reduction <add>, %272, %cst_120 [1] : vector<8x8xf32> to vector<8xf32>
      %275 = vector.shape_cast %274 : vector<8xf32> to vector<8x1xf32>
      %276 = arith.addf %273, %275 : vector<8x1xf32>
      %277 = vector.broadcast %269 : vector<8x1xf32> to vector<8x8xf32>
      %278 = arith.mulf %277, %arg33 : vector<8x8xf32>
      %279 = arith.truncf %272 : vector<8x8xf32> to vector<8x8xbf16>
      %280 = vector.extract_strided_slice %256 {offsets = [0, 0], sizes = [8, 8], strides = [1, 1]} : vector<8x32xbf16> to vector<8x8xbf16>
      %cst_121 = arith.constant dense<0.000000e+00> : vector<8x8xf32>
      %281 = tpu.matmul %279, %280, %cst_121 {dimension_numbers = #tpu.dot_dimension_numbers<[1], [0], [0], [1], [0, 0, 1, 1], [], []>} : vector<8x8xbf16>, vector<8x8xbf16>, vector<8x8xf32> -> vector<8x8xf32>
      %282 = arith.addf %278, %281 : vector<8x8xf32>
      %283 = vector.extract_strided_slice %11 {offsets = [0, 8], sizes = [8, 8], strides = [1, 1]} : vector<8x32xbf16> to vector<8x8xbf16>
      %284 = vector.extract_strided_slice %255 {offsets = [0, 8], sizes = [8, 8], strides = [1, 1]} : vector<8x32xbf16> to vector<8x8xbf16>
      %cst_122 = arith.constant dense<0.000000e+00> : vector<8x8xf32>
      %285 = tpu.matmul %283, %284, %cst_122 {dimension_numbers = #tpu.dot_dimension_numbers<[1], [1], [0], [0], [0, 0, 1, 0], [], []>} : vector<8x8xbf16>, vector<8x8xbf16>, vector<8x8xf32> -> vector<8x8xf32>
      %cst_123 = arith.constant -1.000000e+30 : f32
      %286 = vector.broadcast %cst_123 : f32 to vector<8x8xf32>
      %287 = arith.select %259, %285, %286 : vector<8x8xi1>, vector<8x8xf32>
      %cst_124 = arith.constant dense<0xFF800000> : vector<8xf32>
      %288 = vector.multi_reduction <maximumf>, %287, %cst_124 [1] : vector<8x8xf32> to vector<8xf32>
      %289 = vector.shape_cast %288 : vector<8xf32> to vector<8x1xf32>
      %290 = arith.maximumf %arg26, %289 : vector<8x1xf32>
      %291 = arith.subf %arg26, %290 : vector<8x1xf32>
      %292 = math.exp %291 : vector<8x1xf32>
      %293 = vector.broadcast %290 : vector<8x1xf32> to vector<8x8xf32>
      %294 = arith.subf %287, %293 : vector<8x8xf32>
      %295 = math.exp %294 : vector<8x8xf32>
      %296 = arith.mulf %292, %arg30 : vector<8x1xf32>
      %cst_125 = arith.constant dense<0.000000e+00> : vector<8xf32>
      %297 = vector.multi_reduction <add>, %295, %cst_125 [1] : vector<8x8xf32> to vector<8xf32>
      %298 = vector.shape_cast %297 : vector<8xf32> to vector<8x1xf32>
      %299 = arith.addf %296, %298 : vector<8x1xf32>
      %300 = vector.broadcast %292 : vector<8x1xf32> to vector<8x8xf32>
      %301 = arith.mulf %300, %arg34 : vector<8x8xf32>
      %302 = arith.truncf %295 : vector<8x8xf32> to vector<8x8xbf16>
      %303 = vector.extract_strided_slice %256 {offsets = [0, 8], sizes = [8, 8], strides = [1, 1]} : vector<8x32xbf16> to vector<8x8xbf16>
      %cst_126 = arith.constant dense<0.000000e+00> : vector<8x8xf32>
      %304 = tpu.matmul %302, %303, %cst_126 {dimension_numbers = #tpu.dot_dimension_numbers<[1], [0], [0], [1], [0, 0, 1, 1], [], []>} : vector<8x8xbf16>, vector<8x8xbf16>, vector<8x8xf32> -> vector<8x8xf32>
      %305 = arith.addf %301, %304 : vector<8x8xf32>
      %306 = vector.extract_strided_slice %11 {offsets = [0, 16], sizes = [8, 8], strides = [1, 1]} : vector<8x32xbf16> to vector<8x8xbf16>
      %307 = vector.extract_strided_slice %255 {offsets = [0, 16], sizes = [8, 8], strides = [1, 1]} : vector<8x32xbf16> to vector<8x8xbf16>
      %cst_127 = arith.constant dense<0.000000e+00> : vector<8x8xf32>
      %308 = tpu.matmul %306, %307, %cst_127 {dimension_numbers = #tpu.dot_dimension_numbers<[1], [1], [0], [0], [0, 0, 1, 0], [], []>} : vector<8x8xbf16>, vector<8x8xbf16>, vector<8x8xf32> -> vector<8x8xf32>
      %cst_128 = arith.constant -1.000000e+30 : f32
      %309 = vector.broadcast %cst_128 : f32 to vector<8x8xf32>
      %310 = arith.select %259, %308, %309 : vector<8x8xi1>, vector<8x8xf32>
      %cst_129 = arith.constant dense<0xFF800000> : vector<8xf32>
      %311 = vector.multi_reduction <maximumf>, %310, %cst_129 [1] : vector<8x8xf32> to vector<8xf32>
      %312 = vector.shape_cast %311 : vector<8xf32> to vector<8x1xf32>
      %313 = arith.maximumf %arg27, %312 : vector<8x1xf32>
      %314 = arith.subf %arg27, %313 : vector<8x1xf32>
      %315 = math.exp %314 : vector<8x1xf32>
      %316 = vector.broadcast %313 : vector<8x1xf32> to vector<8x8xf32>
      %317 = arith.subf %310, %316 : vector<8x8xf32>
      %318 = math.exp %317 : vector<8x8xf32>
      %319 = arith.mulf %315, %arg31 : vector<8x1xf32>
      %cst_130 = arith.constant dense<0.000000e+00> : vector<8xf32>
      %320 = vector.multi_reduction <add>, %318, %cst_130 [1] : vector<8x8xf32> to vector<8xf32>
      %321 = vector.shape_cast %320 : vector<8xf32> to vector<8x1xf32>
      %322 = arith.addf %319, %321 : vector<8x1xf32>
      %323 = vector.broadcast %315 : vector<8x1xf32> to vector<8x8xf32>
      %324 = arith.mulf %323, %arg35 : vector<8x8xf32>
      %325 = arith.truncf %318 : vector<8x8xf32> to vector<8x8xbf16>
      %326 = vector.extract_strided_slice %256 {offsets = [0, 16], sizes = [8, 8], strides = [1, 1]} : vector<8x32xbf16> to vector<8x8xbf16>
      %cst_131 = arith.constant dense<0.000000e+00> : vector<8x8xf32>
      %327 = tpu.matmul %325, %326, %cst_131 {dimension_numbers = #tpu.dot_dimension_numbers<[1], [0], [0], [1], [0, 0, 1, 1], [], []>} : vector<8x8xbf16>, vector<8x8xbf16>, vector<8x8xf32> -> vector<8x8xf32>
      %328 = arith.addf %324, %327 : vector<8x8xf32>
      %329 = vector.extract_strided_slice %11 {offsets = [0, 24], sizes = [8, 8], strides = [1, 1]} : vector<8x32xbf16> to vector<8x8xbf16>
      %330 = vector.extract_strided_slice %255 {offsets = [0, 24], sizes = [8, 8], strides = [1, 1]} : vector<8x32xbf16> to vector<8x8xbf16>
      %cst_132 = arith.constant dense<0.000000e+00> : vector<8x8xf32>
      %331 = tpu.matmul %329, %330, %cst_132 {dimension_numbers = #tpu.dot_dimension_numbers<[1], [1], [0], [0], [0, 0, 1, 0], [], []>} : vector<8x8xbf16>, vector<8x8xbf16>, vector<8x8xf32> -> vector<8x8xf32>
      %cst_133 = arith.constant -1.000000e+30 : f32
      %332 = vector.broadcast %cst_133 : f32 to vector<8x8xf32>
      %333 = arith.select %259, %331, %332 : vector<8x8xi1>, vector<8x8xf32>
      %cst_134 = arith.constant dense<0xFF800000> : vector<8xf32>
      %334 = vector.multi_reduction <maximumf>, %333, %cst_134 [1] : vector<8x8xf32> to vector<8xf32>
      %335 = vector.shape_cast %334 : vector<8xf32> to vector<8x1xf32>
      %336 = arith.maximumf %arg28, %335 : vector<8x1xf32>
      %337 = arith.subf %arg28, %336 : vector<8x1xf32>
      %338 = math.exp %337 : vector<8x1xf32>
      %339 = vector.broadcast %336 : vector<8x1xf32> to vector<8x8xf32>
      %340 = arith.subf %333, %339 : vector<8x8xf32>
      %341 = math.exp %340 : vector<8x8xf32>
      %342 = arith.mulf %338, %arg32 : vector<8x1xf32>
      %cst_135 = arith.constant dense<0.000000e+00> : vector<8xf32>
      %343 = vector.multi_reduction <add>, %341, %cst_135 [1] : vector<8x8xf32> to vector<8xf32>
      %344 = vector.shape_cast %343 : vector<8xf32> to vector<8x1xf32>
      %345 = arith.addf %342, %344 : vector<8x1xf32>
      %346 = vector.broadcast %338 : vector<8x1xf32> to vector<8x8xf32>
      %347 = arith.mulf %346, %arg36 : vector<8x8xf32>
      %348 = arith.truncf %341 : vector<8x8xf32> to vector<8x8xbf16>
      %349 = vector.extract_strided_slice %256 {offsets = [0, 24], sizes = [8, 8], strides = [1, 1]} : vector<8x32xbf16> to vector<8x8xbf16>
      %cst_136 = arith.constant dense<0.000000e+00> : vector<8x8xf32>
      %350 = tpu.matmul %348, %349, %cst_136 {dimension_numbers = #tpu.dot_dimension_numbers<[1], [0], [0], [1], [0, 0, 1, 1], [], []>} : vector<8x8xbf16>, vector<8x8xbf16>, vector<8x8xf32> -> vector<8x8xf32>
      %351 = arith.addf %347, %350 : vector<8x8xf32>
      scf.yield %267, %290, %313, %336, %276, %299, %322, %345, %282, %305, %328, %351 : vector<8x1xf32>, vector<8x1xf32>, vector<8x1xf32>, vector<8x1xf32>, vector<8x1xf32>, vector<8x1xf32>, vector<8x1xf32>, vector<8x1xf32>, vector<8x8xf32>, vector<8x8xf32>, vector<8x8xf32>, vector<8x8xf32>
    }
    %cst_20 = arith.constant 0.000000e+00 : f32
    %32 = vector.broadcast %cst_20 : f32 to vector<8x32xf32>
    %c0_21 = arith.constant 0 : index
    %c0_22 = arith.constant 0 : index
    %33 = vector.load %arg8[%c0_21, %c0_22] : memref<1x32xf32, #tpu.memory_space<vmem>>, vector<1x32xf32>
    %34 = vector.broadcast %33 : vector<1x32xf32> to vector<8x32xf32>
    %35 = arith.addf %32, %34 : vector<8x32xf32>
    %36 = tpu.reciprocal %31#4 {approx = true} : vector<8x1xf32> -> vector<8x1xf32>
    %37 = vector.broadcast %36 : vector<8x1xf32> to vector<8x8xf32>
    %38 = arith.mulf %31#8, %37 : vector<8x8xf32>
    %39 = arith.truncf %38 : vector<8x8xf32> to vector<8x8xbf16>
    %c0_23 = arith.constant 0 : index
    %c0_24 = arith.constant 0 : index
    %40 = vector.load %arg7[%c0_23, %c0_24] : memref<32x32xbf16, #tpu.memory_space<vmem>>, vector<8x32xbf16>
    %cst_25 = arith.constant dense<0.000000e+00> : vector<8x32xf32>
    %41 = tpu.matmul %39, %40, %cst_25 {dimension_numbers = #tpu.dot_dimension_numbers<[1], [0], [0], [1], [0, 0, 1, 1], [], []>} : vector<8x8xbf16>, vector<8x32xbf16>, vector<8x32xf32> -> vector<8x32xf32>
    %42 = arith.addf %35, %41 : vector<8x32xf32>
    %43 = tpu.reciprocal %31#5 {approx = true} : vector<8x1xf32> -> vector<8x1xf32>
    %44 = vector.broadcast %43 : vector<8x1xf32> to vector<8x8xf32>
    %45 = arith.mulf %31#9, %44 : vector<8x8xf32>
    %46 = arith.truncf %45 : vector<8x8xf32> to vector<8x8xbf16>
    %c8 = arith.constant 8 : index
    %c0_26 = arith.constant 0 : index
    %47 = vector.load %arg7[%c8, %c0_26] : memref<32x32xbf16, #tpu.memory_space<vmem>>, vector<8x32xbf16>
    %cst_27 = arith.constant dense<0.000000e+00> : vector<8x32xf32>
    %48 = tpu.matmul %46, %47, %cst_27 {dimension_numbers = #tpu.dot_dimension_numbers<[1], [0], [0], [1], [0, 0, 1, 1], [], []>} : vector<8x8xbf16>, vector<8x32xbf16>, vector<8x32xf32> -> vector<8x32xf32>
    %49 = arith.addf %42, %48 : vector<8x32xf32>
    %50 = tpu.reciprocal %31#6 {approx = true} : vector<8x1xf32> -> vector<8x1xf32>
    %51 = vector.broadcast %50 : vector<8x1xf32> to vector<8x8xf32>
    %52 = arith.mulf %31#10, %51 : vector<8x8xf32>
    %53 = arith.truncf %52 : vector<8x8xf32> to vector<8x8xbf16>
    %c16 = arith.constant 16 : index
    %c0_28 = arith.constant 0 : index
    %54 = vector.load %arg7[%c16, %c0_28] : memref<32x32xbf16, #tpu.memory_space<vmem>>, vector<8x32xbf16>
    %cst_29 = arith.constant dense<0.000000e+00> : vector<8x32xf32>
    %55 = tpu.matmul %53, %54, %cst_29 {dimension_numbers = #tpu.dot_dimension_numbers<[1], [0], [0], [1], [0, 0, 1, 1], [], []>} : vector<8x8xbf16>, vector<8x32xbf16>, vector<8x32xf32> -> vector<8x32xf32>
    %56 = arith.addf %49, %55 : vector<8x32xf32>
    %57 = tpu.reciprocal %31#7 {approx = true} : vector<8x1xf32> -> vector<8x1xf32>
    %58 = vector.broadcast %57 : vector<8x1xf32> to vector<8x8xf32>
    %59 = arith.mulf %31#11, %58 : vector<8x8xf32>
    %60 = arith.truncf %59 : vector<8x8xf32> to vector<8x8xbf16>
    %c24 = arith.constant 24 : index
    %c0_30 = arith.constant 0 : index
    %61 = vector.load %arg7[%c24, %c0_30] : memref<32x32xbf16, #tpu.memory_space<vmem>>, vector<8x32xbf16>
    %cst_31 = arith.constant dense<0.000000e+00> : vector<8x32xf32>
    %62 = tpu.matmul %60, %61, %cst_31 {dimension_numbers = #tpu.dot_dimension_numbers<[1], [0], [0], [1], [0, 0, 1, 1], [], []>} : vector<8x8xbf16>, vector<8x32xbf16>, vector<8x32xf32> -> vector<8x32xf32>
    %63 = arith.addf %56, %62 : vector<8x32xf32>
    %c0_32 = arith.constant 0 : index
    %c0_33 = arith.constant 0 : index
    %64 = vector.load %arg9[%c0_32, %c0_33] : memref<1x32xf32, #tpu.memory_space<vmem>>, vector<1x32xf32>
    %c0_34 = arith.constant 0 : index
    %c0_35 = arith.constant 0 : index
    %65 = vector.load %arg10[%c0_34, %c0_35] : memref<1x32xf32, #tpu.memory_space<vmem>>, vector<1x32xf32>
    %66 = arith.addf %3, %63 : vector<8x32xf32>
    %cst_36 = arith.constant dense<0.000000e+00> : vector<8xf32>
    %67 = vector.multi_reduction <add>, %66, %cst_36 [1] : vector<8x32xf32> to vector<8xf32>
    %68 = vector.shape_cast %67 : vector<8xf32> to vector<8x1xf32>
    %cst_37 = arith.constant 3.200000e+01 : f32
    %69 = vector.broadcast %cst_37 : f32 to vector<8x1xf32>
    %70 = arith.divf %68, %69 : vector<8x1xf32>
    %71 = vector.broadcast %70 : vector<8x1xf32> to vector<8x32xf32>
    %72 = arith.subf %66, %71 : vector<8x32xf32>
    %73 = arith.mulf %72, %72 : vector<8x32xf32>
    %cst_38 = arith.constant dense<0.000000e+00> : vector<8xf32>
    %74 = vector.multi_reduction <add>, %73, %cst_38 [1] : vector<8x32xf32> to vector<8xf32>
    %75 = vector.shape_cast %74 : vector<8xf32> to vector<8x1xf32>
    %cst_39 = arith.constant 3.200000e+01 : f32
    %76 = vector.broadcast %cst_39 : f32 to vector<8x1xf32>
    %77 = arith.divf %75, %76 : vector<8x1xf32>
    %cst_40 = arith.constant 9.99999974E-6 : f32
    %78 = vector.broadcast %cst_40 : f32 to vector<8x1xf32>
    %79 = arith.addf %77, %78 : vector<8x1xf32>
    %80 = math.rsqrt %79 : vector<8x1xf32>
    %81 = vector.broadcast %64 : vector<1x32xf32> to vector<8x32xf32>
    %82 = vector.broadcast %80 : vector<8x1xf32> to vector<8x32xf32>
    %83 = arith.mulf %81, %82 : vector<8x32xf32>
    %84 = arith.mulf %72, %83 : vector<8x32xf32>
    %85 = vector.broadcast %65 : vector<1x32xf32> to vector<8x32xf32>
    %86 = arith.addf %84, %85 : vector<8x32xf32>
    %87 = arith.truncf %86 : vector<8x32xf32> to vector<8x32xbf16>
    %c0_41 = arith.constant 0 : index
    %c0_42 = arith.constant 0 : index
    %c0_43 = arith.constant 0 : index
    %88 = vector.load %arg4[%c0_41, %c0_42, %c0_43] : memref<1x10x64xbf16, #tpu.memory_space<vmem>>, vector<1x10x64xbf16>
    %89 = vector.shape_cast %88 : vector<1x10x64xbf16> to vector<10x64xbf16>
    %c0_44 = arith.constant 0 : index
    %c0_45 = arith.constant 0 : index
    %90 = vector.load %arg11[%c0_44, %c0_45] : memref<32x32xbf16, #tpu.memory_space<vmem>>, vector<32x32xbf16>
    %cst_46 = arith.constant dense<0.000000e+00> : vector<8x32xf32>
    %91 = tpu.matmul %87, %90, %cst_46 {dimension_numbers = #tpu.dot_dimension_numbers<[1], [0], [0], [1], [0, 0, 1, 1], [], []>} : vector<8x32xbf16>, vector<32x32xbf16>, vector<8x32xf32> -> vector<8x32xf32>
    %c0_47 = arith.constant 0 : index
    %c0_48 = arith.constant 0 : index
    %92 = vector.load %arg12[%c0_47, %c0_48] : memref<1x32xf32, #tpu.memory_space<vmem>>, vector<1x32xf32>
    %93 = vector.broadcast %92 : vector<1x32xf32> to vector<8x32xf32>
    %94 = arith.addf %91, %93 : vector<8x32xf32>
    %cst_49 = arith.constant 0.353553385 : f32
    %95 = vector.broadcast %cst_49 : f32 to vector<8x32xf32>
    %96 = arith.mulf %94, %95 : vector<8x32xf32>
    %97 = arith.truncf %96 : vector<8x32xf32> to vector<8x32xbf16>
    %98 = vector.extract_strided_slice %89 {offsets = [0, 0], sizes = [10, 32], strides = [1, 1]} : vector<10x64xbf16> to vector<10x32xbf16>
    %99 = vector.extract_strided_slice %89 {offsets = [0, 32], sizes = [10, 32], strides = [1, 1]} : vector<10x64xbf16> to vector<10x32xbf16>
    %cst_50 = arith.constant 0.000000e+00 : f32
    %100 = vector.broadcast %cst_50 : f32 to vector<8x32xf32>
    %c0_51 = arith.constant 0 : index
    %c0_52 = arith.constant 0 : index
    %101 = vector.load %arg14[%c0_51, %c0_52] : memref<1x32xf32, #tpu.memory_space<vmem>>, vector<1x32xf32>
    %102 = vector.broadcast %101 : vector<1x32xf32> to vector<8x32xf32>
    %103 = arith.addf %100, %102 : vector<8x32xf32>
    %104 = vector.extract_strided_slice %97 {offsets = [0, 0], sizes = [8, 8], strides = [1, 1]} : vector<8x32xbf16> to vector<8x8xbf16>
    %105 = vector.extract_strided_slice %98 {offsets = [0, 0], sizes = [10, 8], strides = [1, 1]} : vector<10x32xbf16> to vector<10x8xbf16>
    %cst_53 = arith.constant dense<0.000000e+00> : vector<8x10xf32>
    %106 = tpu.matmul %104, %105, %cst_53 {dimension_numbers = #tpu.dot_dimension_numbers<[1], [1], [0], [0], [0, 0, 1, 0], [], []>} : vector<8x8xbf16>, vector<10x8xbf16>, vector<8x10xf32> -> vector<8x10xf32>
    %cst_54 = arith.constant dense<0xFF800000> : vector<8xf32>
    %107 = vector.multi_reduction <maximumf>, %106, %cst_54 [1] : vector<8x10xf32> to vector<8xf32>
    %108 = vector.shape_cast %107 : vector<8xf32> to vector<8x1xf32>
    %109 = vector.broadcast %108 : vector<8x1xf32> to vector<8x10xf32>
    %110 = arith.subf %106, %109 : vector<8x10xf32>
    %111 = math.exp %110 : vector<8x10xf32>
    %cst_55 = arith.constant dense<0.000000e+00> : vector<8xf32>
    %112 = vector.multi_reduction <add>, %111, %cst_55 [1] : vector<8x10xf32> to vector<8xf32>
    %113 = vector.shape_cast %112 : vector<8xf32> to vector<8x1xf32>
    %114 = tpu.reciprocal %113 {approx = true} : vector<8x1xf32> -> vector<8x1xf32>
    %115 = vector.broadcast %114 : vector<8x1xf32> to vector<8x10xf32>
    %116 = arith.mulf %111, %115 : vector<8x10xf32>
    %117 = arith.truncf %116 : vector<8x10xf32> to vector<8x10xbf16>
    %118 = vector.extract_strided_slice %99 {offsets = [0, 0], sizes = [10, 8], strides = [1, 1]} : vector<10x32xbf16> to vector<10x8xbf16>
    %cst_56 = arith.constant dense<0.000000e+00> : vector<8x8xf32>
    %119 = tpu.matmul %117, %118, %cst_56 {dimension_numbers = #tpu.dot_dimension_numbers<[1], [0], [0], [1], [0, 0, 1, 1], [], []>} : vector<8x10xbf16>, vector<10x8xbf16>, vector<8x8xf32> -> vector<8x8xf32>
    %120 = arith.truncf %119 : vector<8x8xf32> to vector<8x8xbf16>
    %c0_57 = arith.constant 0 : index
    %c0_58 = arith.constant 0 : index
    %121 = vector.load %arg13[%c0_57, %c0_58] : memref<32x32xbf16, #tpu.memory_space<vmem>>, vector<8x32xbf16>
    %cst_59 = arith.constant dense<0.000000e+00> : vector<8x32xf32>
    %122 = tpu.matmul %120, %121, %cst_59 {dimension_numbers = #tpu.dot_dimension_numbers<[1], [0], [0], [1], [0, 0, 1, 1], [], []>} : vector<8x8xbf16>, vector<8x32xbf16>, vector<8x32xf32> -> vector<8x32xf32>
    %123 = arith.addf %103, %122 : vector<8x32xf32>
    %124 = vector.extract_strided_slice %97 {offsets = [0, 8], sizes = [8, 8], strides = [1, 1]} : vector<8x32xbf16> to vector<8x8xbf16>
    %125 = vector.extract_strided_slice %98 {offsets = [0, 8], sizes = [10, 8], strides = [1, 1]} : vector<10x32xbf16> to vector<10x8xbf16>
    %cst_60 = arith.constant dense<0.000000e+00> : vector<8x10xf32>
    %126 = tpu.matmul %124, %125, %cst_60 {dimension_numbers = #tpu.dot_dimension_numbers<[1], [1], [0], [0], [0, 0, 1, 0], [], []>} : vector<8x8xbf16>, vector<10x8xbf16>, vector<8x10xf32> -> vector<8x10xf32>
    %cst_61 = arith.constant dense<0xFF800000> : vector<8xf32>
    %127 = vector.multi_reduction <maximumf>, %126, %cst_61 [1] : vector<8x10xf32> to vector<8xf32>
    %128 = vector.shape_cast %127 : vector<8xf32> to vector<8x1xf32>
    %129 = vector.broadcast %128 : vector<8x1xf32> to vector<8x10xf32>
    %130 = arith.subf %126, %129 : vector<8x10xf32>
    %131 = math.exp %130 : vector<8x10xf32>
    %cst_62 = arith.constant dense<0.000000e+00> : vector<8xf32>
    %132 = vector.multi_reduction <add>, %131, %cst_62 [1] : vector<8x10xf32> to vector<8xf32>
    %133 = vector.shape_cast %132 : vector<8xf32> to vector<8x1xf32>
    %134 = tpu.reciprocal %133 {approx = true} : vector<8x1xf32> -> vector<8x1xf32>
    %135 = vector.broadcast %134 : vector<8x1xf32> to vector<8x10xf32>
    %136 = arith.mulf %131, %135 : vector<8x10xf32>
    %137 = arith.truncf %136 : vector<8x10xf32> to vector<8x10xbf16>
    %138 = vector.extract_strided_slice %99 {offsets = [0, 8], sizes = [10, 8], strides = [1, 1]} : vector<10x32xbf16> to vector<10x8xbf16>
    %cst_63 = arith.constant dense<0.000000e+00> : vector<8x8xf32>
    %139 = tpu.matmul %137, %138, %cst_63 {dimension_numbers = #tpu.dot_dimension_numbers<[1], [0], [0], [1], [0, 0, 1, 1], [], []>} : vector<8x10xbf16>, vector<10x8xbf16>, vector<8x8xf32> -> vector<8x8xf32>
    %140 = arith.truncf %139 : vector<8x8xf32> to vector<8x8xbf16>
    %c8_64 = arith.constant 8 : index
    %c0_65 = arith.constant 0 : index
    %141 = vector.load %arg13[%c8_64, %c0_65] : memref<32x32xbf16, #tpu.memory_space<vmem>>, vector<8x32xbf16>
    %cst_66 = arith.constant dense<0.000000e+00> : vector<8x32xf32>
    %142 = tpu.matmul %140, %141, %cst_66 {dimension_numbers = #tpu.dot_dimension_numbers<[1], [0], [0], [1], [0, 0, 1, 1], [], []>} : vector<8x8xbf16>, vector<8x32xbf16>, vector<8x32xf32> -> vector<8x32xf32>
    %143 = arith.addf %123, %142 : vector<8x32xf32>
    %144 = vector.extract_strided_slice %97 {offsets = [0, 16], sizes = [8, 8], strides = [1, 1]} : vector<8x32xbf16> to vector<8x8xbf16>
    %145 = vector.extract_strided_slice %98 {offsets = [0, 16], sizes = [10, 8], strides = [1, 1]} : vector<10x32xbf16> to vector<10x8xbf16>
    %cst_67 = arith.constant dense<0.000000e+00> : vector<8x10xf32>
    %146 = tpu.matmul %144, %145, %cst_67 {dimension_numbers = #tpu.dot_dimension_numbers<[1], [1], [0], [0], [0, 0, 1, 0], [], []>} : vector<8x8xbf16>, vector<10x8xbf16>, vector<8x10xf32> -> vector<8x10xf32>
    %cst_68 = arith.constant dense<0xFF800000> : vector<8xf32>
    %147 = vector.multi_reduction <maximumf>, %146, %cst_68 [1] : vector<8x10xf32> to vector<8xf32>
    %148 = vector.shape_cast %147 : vector<8xf32> to vector<8x1xf32>
    %149 = vector.broadcast %148 : vector<8x1xf32> to vector<8x10xf32>
    %150 = arith.subf %146, %149 : vector<8x10xf32>
    %151 = math.exp %150 : vector<8x10xf32>
    %cst_69 = arith.constant dense<0.000000e+00> : vector<8xf32>
    %152 = vector.multi_reduction <add>, %151, %cst_69 [1] : vector<8x10xf32> to vector<8xf32>
    %153 = vector.shape_cast %152 : vector<8xf32> to vector<8x1xf32>
    %154 = tpu.reciprocal %153 {approx = true} : vector<8x1xf32> -> vector<8x1xf32>
    %155 = vector.broadcast %154 : vector<8x1xf32> to vector<8x10xf32>
    %156 = arith.mulf %151, %155 : vector<8x10xf32>
    %157 = arith.truncf %156 : vector<8x10xf32> to vector<8x10xbf16>
    %158 = vector.extract_strided_slice %99 {offsets = [0, 16], sizes = [10, 8], strides = [1, 1]} : vector<10x32xbf16> to vector<10x8xbf16>
    %cst_70 = arith.constant dense<0.000000e+00> : vector<8x8xf32>
    %159 = tpu.matmul %157, %158, %cst_70 {dimension_numbers = #tpu.dot_dimension_numbers<[1], [0], [0], [1], [0, 0, 1, 1], [], []>} : vector<8x10xbf16>, vector<10x8xbf16>, vector<8x8xf32> -> vector<8x8xf32>
    %160 = arith.truncf %159 : vector<8x8xf32> to vector<8x8xbf16>
    %c16_71 = arith.constant 16 : index
    %c0_72 = arith.constant 0 : index
    %161 = vector.load %arg13[%c16_71, %c0_72] : memref<32x32xbf16, #tpu.memory_space<vmem>>, vector<8x32xbf16>
    %cst_73 = arith.constant dense<0.000000e+00> : vector<8x32xf32>
    %162 = tpu.matmul %160, %161, %cst_73 {dimension_numbers = #tpu.dot_dimension_numbers<[1], [0], [0], [1], [0, 0, 1, 1], [], []>} : vector<8x8xbf16>, vector<8x32xbf16>, vector<8x32xf32> -> vector<8x32xf32>
    %163 = arith.addf %143, %162 : vector<8x32xf32>
    %164 = vector.extract_strided_slice %97 {offsets = [0, 24], sizes = [8, 8], strides = [1, 1]} : vector<8x32xbf16> to vector<8x8xbf16>
    %165 = vector.extract_strided_slice %98 {offsets = [0, 24], sizes = [10, 8], strides = [1, 1]} : vector<10x32xbf16> to vector<10x8xbf16>
    %cst_74 = arith.constant dense<0.000000e+00> : vector<8x10xf32>
    %166 = tpu.matmul %164, %165, %cst_74 {dimension_numbers = #tpu.dot_dimension_numbers<[1], [1], [0], [0], [0, 0, 1, 0], [], []>} : vector<8x8xbf16>, vector<10x8xbf16>, vector<8x10xf32> -> vector<8x10xf32>
    %cst_75 = arith.constant dense<0xFF800000> : vector<8xf32>
    %167 = vector.multi_reduction <maximumf>, %166, %cst_75 [1] : vector<8x10xf32> to vector<8xf32>
    %168 = vector.shape_cast %167 : vector<8xf32> to vector<8x1xf32>
    %169 = vector.broadcast %168 : vector<8x1xf32> to vector<8x10xf32>
    %170 = arith.subf %166, %169 : vector<8x10xf32>
    %171 = math.exp %170 : vector<8x10xf32>
    %cst_76 = arith.constant dense<0.000000e+00> : vector<8xf32>
    %172 = vector.multi_reduction <add>, %171, %cst_76 [1] : vector<8x10xf32> to vector<8xf32>
    %173 = vector.shape_cast %172 : vector<8xf32> to vector<8x1xf32>
    %174 = tpu.reciprocal %173 {approx = true} : vector<8x1xf32> -> vector<8x1xf32>
    %175 = vector.broadcast %174 : vector<8x1xf32> to vector<8x10xf32>
    %176 = arith.mulf %171, %175 : vector<8x10xf32>
    %177 = arith.truncf %176 : vector<8x10xf32> to vector<8x10xbf16>
    %178 = vector.extract_strided_slice %99 {offsets = [0, 24], sizes = [10, 8], strides = [1, 1]} : vector<10x32xbf16> to vector<10x8xbf16>
    %cst_77 = arith.constant dense<0.000000e+00> : vector<8x8xf32>
    %179 = tpu.matmul %177, %178, %cst_77 {dimension_numbers = #tpu.dot_dimension_numbers<[1], [0], [0], [1], [0, 0, 1, 1], [], []>} : vector<8x10xbf16>, vector<10x8xbf16>, vector<8x8xf32> -> vector<8x8xf32>
    %180 = arith.truncf %179 : vector<8x8xf32> to vector<8x8xbf16>
    %c24_78 = arith.constant 24 : index
    %c0_79 = arith.constant 0 : index
    %181 = vector.load %arg13[%c24_78, %c0_79] : memref<32x32xbf16, #tpu.memory_space<vmem>>, vector<8x32xbf16>
    %cst_80 = arith.constant dense<0.000000e+00> : vector<8x32xf32>
    %182 = tpu.matmul %180, %181, %cst_80 {dimension_numbers = #tpu.dot_dimension_numbers<[1], [0], [0], [1], [0, 0, 1, 1], [], []>} : vector<8x8xbf16>, vector<8x32xbf16>, vector<8x32xf32> -> vector<8x32xf32>
    %183 = arith.addf %163, %182 : vector<8x32xf32>
    %c0_81 = arith.constant 0 : index
    %c0_82 = arith.constant 0 : index
    %184 = vector.load %arg15[%c0_81, %c0_82] : memref<1x32xf32, #tpu.memory_space<vmem>>, vector<1x32xf32>
    %c0_83 = arith.constant 0 : index
    %c0_84 = arith.constant 0 : index
    %185 = vector.load %arg16[%c0_83, %c0_84] : memref<1x32xf32, #tpu.memory_space<vmem>>, vector<1x32xf32>
    %186 = arith.addf %86, %183 : vector<8x32xf32>
    %cst_85 = arith.constant dense<0.000000e+00> : vector<8xf32>
    %187 = vector.multi_reduction <add>, %186, %cst_85 [1] : vector<8x32xf32> to vector<8xf32>
    %188 = vector.shape_cast %187 : vector<8xf32> to vector<8x1xf32>
    %cst_86 = arith.constant 3.200000e+01 : f32
    %189 = vector.broadcast %cst_86 : f32 to vector<8x1xf32>
    %190 = arith.divf %188, %189 : vector<8x1xf32>
    %191 = vector.broadcast %190 : vector<8x1xf32> to vector<8x32xf32>
    %192 = arith.subf %186, %191 : vector<8x32xf32>
    %193 = arith.mulf %192, %192 : vector<8x32xf32>
    %cst_87 = arith.constant dense<0.000000e+00> : vector<8xf32>
    %194 = vector.multi_reduction <add>, %193, %cst_87 [1] : vector<8x32xf32> to vector<8xf32>
    %195 = vector.shape_cast %194 : vector<8xf32> to vector<8x1xf32>
    %cst_88 = arith.constant 3.200000e+01 : f32
    %196 = vector.broadcast %cst_88 : f32 to vector<8x1xf32>
    %197 = arith.divf %195, %196 : vector<8x1xf32>
    %cst_89 = arith.constant 9.99999974E-6 : f32
    %198 = vector.broadcast %cst_89 : f32 to vector<8x1xf32>
    %199 = arith.addf %197, %198 : vector<8x1xf32>
    %200 = math.rsqrt %199 : vector<8x1xf32>
    %201 = vector.broadcast %184 : vector<1x32xf32> to vector<8x32xf32>
    %202 = vector.broadcast %200 : vector<8x1xf32> to vector<8x32xf32>
    %203 = arith.mulf %201, %202 : vector<8x32xf32>
    %204 = arith.mulf %192, %203 : vector<8x32xf32>
    %205 = vector.broadcast %185 : vector<1x32xf32> to vector<8x32xf32>
    %206 = arith.addf %204, %205 : vector<8x32xf32>
    %207 = arith.truncf %206 : vector<8x32xf32> to vector<8x32xbf16>
    %cst_90 = arith.constant 0.000000e+00 : f32
    %208 = vector.broadcast %cst_90 : f32 to vector<8x32xf32>
    %c0_91 = arith.constant 0 : index
    %c0_92 = arith.constant 0 : index
    %209 = vector.load %arg20[%c0_91, %c0_92] : memref<1x32xf32, #tpu.memory_space<vmem>>, vector<1x32xf32>
    %210 = vector.broadcast %209 : vector<1x32xf32> to vector<8x32xf32>
    %211 = arith.addf %208, %210 : vector<8x32xf32>
    %c0_93 = arith.constant 0 : index
    %c0_94 = arith.constant 0 : index
    %212 = vector.load %arg17[%c0_93, %c0_94] : memref<32x64xbf16, #tpu.memory_space<vmem>>, vector<32x64xbf16>
    %cst_95 = arith.constant dense<0.000000e+00> : vector<8x64xf32>
    %213 = tpu.matmul %207, %212, %cst_95 {dimension_numbers = #tpu.dot_dimension_numbers<[1], [0], [0], [1], [0, 0, 1, 1], [], []>} : vector<8x32xbf16>, vector<32x64xbf16>, vector<8x64xf32> -> vector<8x64xf32>
    %c0_96 = arith.constant 0 : index
    %c0_97 = arith.constant 0 : index
    %214 = vector.load %arg18[%c0_96, %c0_97] : memref<1x64xf32, #tpu.memory_space<vmem>>, vector<1x64xf32>
    %215 = vector.broadcast %214 : vector<1x64xf32> to vector<8x64xf32>
    %216 = arith.addf %213, %215 : vector<8x64xf32>
    %cst_98 = arith.constant 0.000000e+00 : f32
    %217 = vector.broadcast %cst_98 : f32 to vector<8x64xf32>
    %218 = arith.maximumf %216, %217 : vector<8x64xf32>
    %219 = arith.truncf %218 : vector<8x64xf32> to vector<8x64xbf16>
    %c0_99 = arith.constant 0 : index
    %c0_100 = arith.constant 0 : index
    %220 = vector.load %arg19[%c0_99, %c0_100] : memref<64x32xbf16, #tpu.memory_space<vmem>>, vector<64x32xbf16>
    %cst_101 = arith.constant dense<0.000000e+00> : vector<8x32xf32>
    %221 = tpu.matmul %219, %220, %cst_101 {dimension_numbers = #tpu.dot_dimension_numbers<[1], [0], [0], [1], [0, 0, 1, 1], [], []>} : vector<8x64xbf16>, vector<64x32xbf16>, vector<8x32xf32> -> vector<8x32xf32>
    %222 = arith.addf %211, %221 : vector<8x32xf32>
    %c0_102 = arith.constant 0 : index
    %c0_103 = arith.constant 0 : index
    %223 = vector.load %arg21[%c0_102, %c0_103] : memref<1x32xf32, #tpu.memory_space<vmem>>, vector<1x32xf32>
    %c0_104 = arith.constant 0 : index
    %c0_105 = arith.constant 0 : index
    %224 = vector.load %arg22[%c0_104, %c0_105] : memref<1x32xf32, #tpu.memory_space<vmem>>, vector<1x32xf32>
    %225 = arith.addf %206, %222 : vector<8x32xf32>
    %cst_106 = arith.constant dense<0.000000e+00> : vector<8xf32>
    %226 = vector.multi_reduction <add>, %225, %cst_106 [1] : vector<8x32xf32> to vector<8xf32>
    %227 = vector.shape_cast %226 : vector<8xf32> to vector<8x1xf32>
    %cst_107 = arith.constant 3.200000e+01 : f32
    %228 = vector.broadcast %cst_107 : f32 to vector<8x1xf32>
    %229 = arith.divf %227, %228 : vector<8x1xf32>
    %230 = vector.broadcast %229 : vector<8x1xf32> to vector<8x32xf32>
    %231 = arith.subf %225, %230 : vector<8x32xf32>
    %232 = arith.mulf %231, %231 : vector<8x32xf32>
    %cst_108 = arith.constant dense<0.000000e+00> : vector<8xf32>
    %233 = vector.multi_reduction <add>, %232, %cst_108 [1] : vector<8x32xf32> to vector<8xf32>
    %234 = vector.shape_cast %233 : vector<8xf32> to vector<8x1xf32>
    %cst_109 = arith.constant 3.200000e+01 : f32
    %235 = vector.broadcast %cst_109 : f32 to vector<8x1xf32>
    %236 = arith.divf %234, %235 : vector<8x1xf32>
    %cst_110 = arith.constant 9.99999974E-6 : f32
    %237 = vector.broadcast %cst_110 : f32 to vector<8x1xf32>
    %238 = arith.addf %236, %237 : vector<8x1xf32>
    %239 = math.rsqrt %238 : vector<8x1xf32>
    %240 = vector.broadcast %223 : vector<1x32xf32> to vector<8x32xf32>
    %241 = vector.broadcast %239 : vector<8x1xf32> to vector<8x32xf32>
    %242 = arith.mulf %240, %241 : vector<8x32xf32>
    %243 = arith.mulf %231, %242 : vector<8x32xf32>
    %244 = vector.broadcast %224 : vector<1x32xf32> to vector<8x32xf32>
    %245 = arith.addf %243, %244 : vector<8x32xf32>
    %246 = arith.truncf %245 : vector<8x32xf32> to vector<8x32xbf16>
    %c0_111 = arith.constant 0 : index
    %c0_112 = arith.constant 0 : index
    %c0_113 = arith.constant 0 : index
    %247 = vector.load %arg23[%c0_111, %c0_112, %c0_113] : memref<1x8x32xbf16, #tpu.memory_space<vmem>>, vector<1x8x32xbf16>
    %248 = vector.shape_cast %247 : vector<1x8x32xbf16> to vector<8x32xbf16>
    %249 = vector.shape_cast %246 : vector<8x32xbf16> to vector<1x8x32xbf16>
    tpu.vector_store %arg23[%c0_111, %c0_112, %c0_113], %249 {strides = array<i32>} : memref<1x8x32xbf16, #tpu.memory_space<vmem>>, vector<1x8x32xbf16>,
    return
  }
  func.func @transform_0(%arg0: i32, %arg1: i32) -> (i32, i32, i32) {
    %c0_i32 = arith.constant 0 : i32
    %c0_i32_0 = arith.constant 0 : i32
    return %arg0, %arg1, %c0_i32 : i32, i32, i32
  }
  func.func @transform_1(%arg0: i32, %arg1: i32) -> (i32, i32, i32) {
    %c0_i32 = arith.constant 0 : i32
    %c0_i32_0 = arith.constant 0 : i32
    %c0_i32_1 = arith.constant 0 : i32
    return %arg0, %c0_i32, %c0_i32_0 : i32, i32, i32
  }
  func.func @transform_2(%arg0: i32, %arg1: i32) -> (i32, i32, i32) {
    %c0_i32 = arith.constant 0 : i32
    %c0_i32_0 = arith.constant 0 : i32
    %c0_i32_1 = arith.constant 0 : i32
    return %arg0, %c0_i32, %c0_i32_0 : i32, i32, i32
  }
  func.func @transform_3(%arg0: i32, %arg1: i32) -> (i32, i32) {
    %c0_i32 = arith.constant 0 : i32
    %c0_i32_0 = arith.constant 0 : i32
    %c0_i32_1 = arith.constant 0 : i32
    return %c0_i32, %c0_i32_0 : i32, i32
  }
  func.func @transform_4(%arg0: i32, %arg1: i32) -> (i32, i32) {
    %c0_i32 = arith.constant 0 : i32
    %c0_i32_0 = arith.constant 0 : i32
    %c0_i32_1 = arith.constant 0 : i32
    return %c0_i32, %c0_i32_0 : i32, i32
  }
  func.func @transform_5(%arg0: i32, %arg1: i32) -> (i32, i32) {
    %c0_i32 = arith.constant 0 : i32
    %c0_i32_0 = arith.constant 0 : i32
    %c0_i32_1 = arith.constant 0 : i32
    return %c0_i32, %c0_i32_0 : i32, i32
  }
  func.func @transform_6(%arg0: i32, %arg1: i32) -> (i32, i32) {
    %c0_i32 = arith.constant 0 : i32
    %c0_i32_0 = arith.constant 0 : i32
    %c0_i32_1 = arith.constant 0 : i32
    return %c0_i32, %c0_i32_0 : i32, i32
  }
  func.func @transform_7(%arg0: i32, %arg1: i32) -> (i32, i32) {
    %c0_i32 = arith.constant 0 : i32
    %c0_i32_0 = arith.constant 0 : i32
    %c0_i32_1 = arith.constant 0 : i32
    return %c0_i32, %c0_i32_0 : i32, i32
  }
  func.func @transform_8(%arg0: i32, %arg1: i32) -> (i32, i32) {
    %c0_i32 = arith.constant 0 : i32
    %c0_i32_0 = arith.constant 0 : i32
    %c0_i32_1 = arith.constant 0 : i32
    return %c0_i32, %c0_i32_0 : i32, i32
  }
  func.func @transform_9(%arg0: i32, %arg1: i32) -> (i32, i32) {
    %c0_i32 = arith.constant 0 : i32
    %c0_i32_0 = arith.constant 0 : i32
    %c0_i32_1 = arith.constant 0 : i32
    return %c0_i32, %c0_i32_0 : i32, i32
  }
  func.func @transform_10(%arg0: i32, %arg1: i32) -> (i32, i32) {
    %c0_i32 = arith.constant 0 : i32
    %c0_i32_0 = arith.constant 0 : i32
    %c0_i32_1 = arith.constant 0 : i32
    return %c0_i32, %c0_i32_0 : i32, i32
  }
  func.func @transform_11(%arg0: i32, %arg1: i32) -> (i32, i32) {
    %c0_i32 = arith.constant 0 : i32
    %c0_i32_0 = arith.constant 0 : i32
    %c0_i32_1 = arith.constant 0 : i32
    return %c0_i32, %c0_i32_0 : i32, i32
  }
  func.func @transform_12(%arg0: i32, %arg1: i32) -> (i32, i32) {
    %c0_i32 = arith.constant 0 : i32
    %c0_i32_0 = arith.constant 0 : i32
    %c0_i32_1 = arith.constant 0 : i32
    return %c0_i32, %c0_i32_0 : i32, i32
  }
  func.func @transform_13(%arg0: i32, %arg1: i32) -> (i32, i32) {
    %c0_i32 = arith.constant 0 : i32
    %c0_i32_0 = arith.constant 0 : i32
    %c0_i32_1 = arith.constant 0 : i32
    return %c0_i32, %c0_i32_0 : i32, i32
  }
  func.func @transform_14(%arg0: i32, %arg1: i32) -> (i32, i32) {
    %c0_i32 = arith.constant 0 : i32
    %c0_i32_0 = arith.constant 0 : i32
    %c0_i32_1 = arith.constant 0 : i32
    return %c0_i32, %c0_i32_0 : i32, i32
  }
  func.func @transform_15(%arg0: i32, %arg1: i32) -> (i32, i32) {
    %c0_i32 = arith.constant 0 : i32
    %c0_i32_0 = arith.constant 0 : i32
    %c0_i32_1 = arith.constant 0 : i32
    return %c0_i32, %c0_i32_0 : i32, i32
  }
  func.func @transform_16(%arg0: i32, %arg1: i32) -> (i32, i32) {
    %c0_i32 = arith.constant 0 : i32
    %c0_i32_0 = arith.constant 0 : i32
    %c0_i32_1 = arith.constant 0 : i32
    return %c0_i32, %c0_i32_0 : i32, i32
  }
  func.func @transform_17(%arg0: i32, %arg1: i32) -> (i32, i32) {
    %c0_i32 = arith.constant 0 : i32
    %c0_i32_0 = arith.constant 0 : i32
    %c0_i32_1 = arith.constant 0 : i32
    return %c0_i32, %c0_i32_0 : i32, i32
  }
  func.func @transform_18(%arg0: i32, %arg1: i32) -> (i32, i32) {
    %c0_i32 = arith.constant 0 : i32
    %c0_i32_0 = arith.constant 0 : i32
    %c0_i32_1 = arith.constant 0 : i32
    return %c0_i32, %c0_i32_0 : i32, i32
  }
  func.func @transform_19(%arg0: i32, %arg1: i32) -> (i32, i32) {
    %c0_i32 = arith.constant 0 : i32
    %c0_i32_0 = arith.constant 0 : i32
    %c0_i32_1 = arith.constant 0 : i32
    return %c0_i32, %c0_i32_0 : i32, i32
  }
  func.func @transform_20(%arg0: i32, %arg1: i32) -> (i32, i32) {
    %c0_i32 = arith.constant 0 : i32
    %c0_i32_0 = arith.constant 0 : i32
    %c0_i32_1 = arith.constant 0 : i32
    return %c0_i32, %c0_i32_0 : i32, i32
  }
  func.func @transform_21(%arg0: i32, %arg1: i32) -> (i32, i32, i32) {
    %c0_i32 = arith.constant 0 : i32
    %c0_i32_0 = arith.constant 0 : i32
    return %arg0, %arg1, %c0_i32 : i32, i32, i32
  }
}

</mosaic_0001>

<bundles_post_ra>
// kernel: tpu_custom_call.1
= control target key start
LH: loop header
LB: loop body
LE: loop exit
PB: predicated region body
PF: predicated region fallthrough
CT: control target
= control target key end

     0   :  { %6 = vsyncpa [#allocation3], 0  ;;  %s341_s0 = inlined_call_operand.hbm [shape: f32[8,128], index: 0, kind: input, shape index: {}]   ;;  %s342_s1 = inlined_call_operand.hbm [shape: f32[8,128], index: 1, kind: output, shape index: {}]  }
   0x1   :  { %7 = vsyncpa [#allocation4], 0  ;;  %s262_s6 = smov 0  }
   0x2 LB: > { %s145_s7 = sadd.s32 4294967295, %s248_s6   ;;  %p146_p0 = scmp.ge.s32.totalorder %s248_s6, 1  ;;  %s248_s6 = sphi %s262_s6, %s13_s6  }
   0x3   : > { %p60_p1 = scmp.lt.s32.totalorder %s248_s6, 3  ;;  %p276_p3 = scmp.eq.s32.totalorder %s145_s7, 0 }
   0x4   : > { %s250_s10 = smov [#allocation2]   ;;  %s180_s15 = scalar_lea.hbm %s341_s0, 128 }
   0x5   : > { %p270_p2 = pnand %p146_p0, %p60_p1  ;;  %s73_s11 = sshll.u32 %s250_s10, 4  ;;  %s74_s11 = int_to_ptr.vmem [resolvable:$true] %s73_s11 }
   0x6   : > { %s347_s9 = scalar_select %p276_p3, 1, 0 }
   0x7   : > { %s346_s8 = scalar_select %p270_p2, 1, 0 }
   0x8   : > { %p162_p4 = pneg %p270_p2  ;;  %p181_p6 = scmp.ne.s32.totalorder %s341_s0, %s180_s15 }
   0x9   : > { %p187_p10 = scmp.lt.u32.totalorder %s180_s15, %s341_s0 }
   0xa   : > { %p284_p5 = pnand %p276_p3, %p162_p4 }
   0xc   : > { %p182_p7 = pneg %p284_p5 }
   0xe   : > { %p183_p8 = pnand %p182_p7, %p181_p6 }
  0x10   : > { %p184_p9 = pneg %p183_p8 }
  0x12   : > { %p189_p11 = pnand %p187_p10, %p184_p9 }
  0x14   : > { %192 = shalt.err (!%p189_p11)
}
  0x15   : > { %s193_s20 = scalar_lea.vmem %s74_s11, 128  ;;  %p201_p1 = scmp.lt.s32.totalorder %s74_s11, %s74_s11 }
  0x16   : > { %p194_p12 = scmp.ne.s32.totalorder %s74_s11, %s193_s20  ;;  %p202_p4 = scmp.lt.s32.totalorder %s193_s20, %s193_s20 }
  0x18   : > { %p196_p13 = pnand %p194_p12, %p182_p7  ;;  %p203_p3 = por %p202_p4, %p201_p1 }
  0x1a   : > { %p197_p0 = pneg %p196_p13 }
  0x1c   : > { %p204_p2 = pnand %p203_p3, %p197_p0 }
  0x1e   : > { %207 = shalt.err (!%p204_p2)
}
  0x1f   : > { %165 = dma.hbm_to_vmem [thread:$0]  (!%p284_p5), %s341_s0, 128, %s74_s11, [#allocation3]  }
  0x20   : > { %p349_p6 = scmp.ne.s32.totalorder %s346_s8, 0 }
  0x21   : > { %p350_p8 = scmp.ne.s32.totalorder (!%p349_p6), %s347_s9, 0 }
  0x22   : > { %86 = sbr.rel (%p349_p6) target bundleno = 67 (0x43), region = 24 }
  0x29   : > { %239 = dma.done.wait (%p350_p8), [#allocation3], 128  }
  0x2a   : > { %241 = vsyncadd (%p350_p8), [#allocation3], 4294967168  ;;  %s251_s23 = smov [#allocation5]   ;;  %v96_v0 = vld [vmem:[#allocation2] sm:$0xff]  ;;  %p312_p2 = scmp.eq.s32.totalorder %s145_s7, 1 }
  0x2b   : > { %s106_s24 = sshll.u32 %s251_s23, 4  ;;  %v97_v1 = vadd.f32 1.0, %v96_v0  ;;  %s107_s24 = int_to_ptr.vmem [resolvable:$true] %s106_s24 }
  0x2c   : > { %s208_s26 = scalar_lea.vmem %s107_s24, 128  ;;  %p215_p9 = scmp.lt.s32.totalorder %s107_s24, %s107_s24 }
  0x2d   : > { %98 = vst [vmem:[#allocation5] sm:$0xff] %v97_v1  ;;  %p209_p3 = scmp.ne.s32.totalorder %s107_s24, %s208_s26  ;;  %p216_p10 = scmp.lt.s32.totalorder %s208_s26, %s208_s26 }
  0x2f   : > { %p210_p5 = pnand %p209_p3, %p312_p2  ;;  %p217_p11 = por %p216_p10, %p215_p9 }
  0x31   : > { %p211_p7 = pneg %p210_p5 }
  0x33   : > { %p218_p12 = pnand %p217_p11, %p211_p7 }
  0x35   : > { %221 = shalt.err (!%p218_p12)
}
  0x36   : > { %s222_s29 = scalar_lea.hbm %s342_s1, 128 }
  0x37   : > { %p223_p13 = scmp.ne.s32.totalorder %s342_s1, %s222_s29  ;;  %p228_p4 = scmp.lt.u32.totalorder %s222_s29, %s342_s1 }
  0x39   : > { %p224_p0 = pnand %p223_p13, %p312_p2 }
  0x3b   : > { %p225_p1 = pneg %p224_p0 }
  0x3d   : > { %p230_p6 = pnand %p228_p4, %p225_p1 }
  0x3f   : > { %233 = shalt.err (!%p230_p6)
}
  0x40   : > { %159 = dma.vmem_to_hbm [thread:$0]  (%p312_p2), %s107_s24, 128, %s342_s1, [#allocation4]  }
  0x41   : > { %243 = dma.done.wait (%p312_p2), [#allocation4], 128  }
  0x42   : > { %245 = vsyncadd (%p312_p2), [#allocation4], 4294967168 }
  0x43 PF: > { %s13_s6 = sadd.s32 1, %s248_s6  }
  0x44   : > { %p10_p8 = scmp.ge.s32.totalorder %s13_s6, 4  }
  0x46   :  { %12 = sbr.rel (!%p10_p8) target bundleno = 2 (0x2), region = 53 }
  0x4d   :  { %119 = vsyncpa [#allocation3], 1 }
  0x4e   :  { %121 = vsyncpa [#allocation3 + $0x1], 1 }
  0x4f   :  { %122 = vsyncpa [#allocation4], 1 }
  0x50   :  { %124 = vsyncpa [#allocation4 + $0x1], 1 }

// kernel: decoder_forward.7
= control target key start
LH: loop header
LB: loop body
LE: loop exit
PB: predicated region body
PF: predicated region fallthrough
CT: control target
= control target key end

     0   :  { %s492_s12 = smov 0   ;;  %s494_s13 = smov 0   ;;  %s552_s0 = inlined_call_operand.vmem [shape: bf16[2,16,32], index: 0, kind: input, shape index: {}]   ;;  %s553_s1 = inlined_call_operand.vmem [shape: bf16[32,64], index: 1, kind: input, shape index: {}]   ;;  %s554_s2 = inlined_call_operand.vmem [shape: f32[1,64], index: 2, kind: input, shape index: {}]   ;;  %s555_s3 = inlined_call_operand.vmem [shape: bf16[2,16,64], index: 3, kind: output, shape index: {}]  }
   0x1   :  { %s496_s14 = smov 0   ;;  %s498_s15 = smov 0  }
   0x2   :  { %s500_s16 = smov 0  }
   0x3 LB: > { %s22_s17 = sadd.s32 1, %s460_s14  ;;  %s25_s18 = sadd.s32 1, %s464_s15  ;;  %s468_s16 = sphi %s500_s16, %s13_s16   ;;  %s464_s15 = sphi %s498_s15, %s559_s15   ;;  %s460_s14 = sphi %s496_s14, %s558_s14   ;;  %s456_s13 = sphi %s494_s13, %s557_s13   ;;  %s452_s12 = sphi %s492_s12, %s556_s12  }
   0x4   : > { %p23_p0 = scmp.ge.s32.totalorder %s22_s17, 2  ;;  %p364_p1 = scmp.ge.s32.totalorder %s468_s16, 1 }
   0x5   : > { %p156_p2 = scmp.lt.s32.totalorder %s468_s16, 5 }
   0x6   : > { %s561_s17 = smov (%p23_p0, %s22_s17), 0  ;;  %s563_s18 = smov (!%p23_p0, %s25_s18), %s464_s15 }
   0x7   : > { %p157_p3 = pnand %p364_p1, %p156_p2  ;;  %p27_p4 = scmp.ge.s32.totalorder %s563_s18, 2 }
   0x8   : > { %v428_v0 = vld [vmem:[%s553_s1] sm:$0xff] (!%p157_p3)   ;;  %v470_v1 = vmov (!%p157_p3), 0.0   ;;  %v429_v2 = vld [vmem:[%s553_s1 + $0x8] sm:$0xff] (!%p157_p3)   ;;  %vm471_vm0 = vmmov (!%p157_p3), 0   ;;  %p186_p5 = scmp.lt.s32.totalorder (!%p157_p3), %s456_s13, 1  ;;  %p188_p6 = scmp.lt.s32.totalorder (!%p157_p3), %s452_s12, 1 }
   0x9   : > { %s565_s18 = smov (%p27_p4, %s563_s18), 0  ;;  %160 = sbr.rel (%p157_p3) target bundleno = 239 (0xef), region = 32 }
   0xa   : > { %378 = vmatprep.subr.bf16.mxu0 (!%p157_p3), %v470_v1  ;;  %382 = vmatprep.mubr.msk.bf16.mxu0 (!%p157_p3), %vm471_vm0, %v470_v1  ;;  %vm227_vm1 = vcmask (!%p157_p3), 261120   ;;  %v369_v4 = vld [vmem:[%s554_s2] ss:$0 sm:$0xff] (!%p157_p3)  ;;  %vm272_vm2 = vcmask (!%p157_p3), 519168  }
   0xb   : > { %379 = vmatpush3.bf16.msra.mxu0 (!%p157_p3), %v428_v0 }
   0xc   : > { %380 = vmatprep.subr.bf16.mxu0 (!%p157_p3), %v470_v1 }
   0xf   : > { %381 = vmatpush3.bf16.msra.mxu0 (!%p157_p3), %v429_v2 }
  0x10   : > { %s567_s13 = smov (!%p186_p5, %s456_s13), 1  ;;  %s569_s12 = smov (!%p188_p6, %s452_s12), 1 }
  0x11   : > { %s365_s23 = sshll.u32 %s567_s13, 1 }
  0x12   : > { %s191_s24 = sadd.s32 %s365_s23, %s569_s12 }
  0x13   : > { %s366_s25 = sshll.u32 %s191_s24, 2 }
  0x14   : > { %s193_s28 = scalar_lea.vmem %s552_s0, %s366_s25  ;;  %s201_s6 = scalar_lea.vmem %s555_s3, %s366_s25 }
  0x15   : > { %v203_v3 = vld [vmem:[%s193_s28] sm:$0xf] }
  0x16   : > { %383 = vmatmul.mubr.msk.bf16.vlgmr.msra.gmra.mrb[0].mxu0 %vm227_vm1, %v203_v3 }
  0xe9   : > { %v265_v5 = vpop.f32.mrb[0].mxu0 }
  0xea   : > { %v266_v6 = vadd.f32 %v369_v4, %v265_v5  ;;  %v384_v7 = vpop.f32.mrb[1].mxu0 }
  0xeb   : > { %v268_v8 = vpop.f32.mrb[2].mxu0 }
  0xec   : > { %v271_v9 = vpack.c.bf16 %v266_v6, %v266_v6  ;;  %v385_v10 = vpop.f32.mrb[3].mxu0 }
  0xee   : > { %273 = vst.msk [vmem:[%s201_s6] sm:$0xf] %vm272_vm2, %v271_v9 }
  0xef PF: > { %s13_s16 = sadd.s32 1, %s468_s16   ;;  %s556_s12 = smov %s460_s14 }
  0xf0   : > { %p10_p7 = scmp.ge.s32.totalorder %s13_s16, 6   ;;  %s557_s13 = smov %s464_s15 }
  0xf1   : > { %s558_s14 = smov %s561_s17  ;;  %s559_s15 = smov %s565_s18 }
  0xf2   :  { %12 = sbr.rel (!%p10_p7) target bundleno = 3 (0x3), region = 62 }

// kernel: decoder_forward.8
= control target key start
LH: loop header
LB: loop body
LE: loop exit
PB: predicated region body
PF: predicated region fallthrough
CT: control target
= control target key end

     0   :  { %s493_s12 = smov 0   ;;  %s495_s13 = smov 0   ;;  %s535_s0 = inlined_call_operand.vmem [shape: bf16[2,10,32], index: 0, kind: input, shape index: {}]   ;;  %s536_s1 = inlined_call_operand.vmem [shape: bf16[32,64], index: 1, kind: input, shape index: {}]   ;;  %s537_s2 = inlined_call_operand.vmem [shape: f32[1,64], index: 2, kind: input, shape index: {}]   ;;  %s538_s3 = inlined_call_operand.vmem [shape: bf16[2,10,64], index: 3, kind: output, shape index: {}]  }
   0x1   :  { %s497_s14 = smov 0  }
   0x2 LB: > { %s25_s15 = sadd.s32 1, %s465_s13  ;;  %p389_p0 = scmp.ge.s32.totalorder %s469_s14, 1  ;;  %s469_s14 = sphi %s497_s14, %s13_s14   ;;  %s465_s13 = sphi %s495_s13, %s540_s13   ;;  %s461_s12 = sphi %s493_s12, %s539_s12  }
   0x3   : > { %p27_p1 = scmp.ge.s32.totalorder %s25_s15, 2  ;;  %p158_p2 = scmp.lt.s32.totalorder %s469_s14, 3 }
   0x5   : > { %s542_s15 = smov (%p27_p1, %s25_s15), 0  ;;  %p159_p3 = pnand %p389_p0, %p158_p2 }
   0x6   : > { %v444_v0 = vld [vmem:[%s536_s1] sm:$0xff] (!%p159_p3)   ;;  %v471_v1 = vmov (!%p159_p3), 0.0   ;;  %v445_v2 = vld [vmem:[%s536_s1 + $0x8] sm:$0xff] (!%p159_p3)   ;;  %vm472_vm0 = vmmov (!%p159_p3), 0   ;;  %p191_p4 = scmp.lt.s32.totalorder (!%p159_p3), %s461_s12, 1  ;;  %vm241_vm1 = vcmask (!%p159_p3), 261120  }
   0x7   : > { %162 = sbr.rel (%p159_p3) target bundleno = 237 (0xed), region = 32  ;;  %410 = vmatprep.subr.bf16.mxu0 (!%p159_p3), %v471_v1  ;;  %414 = vmatprep.mubr.msk.bf16.mxu0 (!%p159_p3), %vm472_vm0, %v471_v1  ;;  %v394_v4 = vld [vmem:[%s537_s2] ss:$0 sm:$0xff] (!%p159_p3)  ;;  %vm294_vm2 = vcmask (!%p159_p3), 519168   ;;  %vm296_vm3 = vcmask (!%p159_p3), 516096  }
   0x8   : > { %411 = vmatpush3.bf16.msra.mxu0 (!%p159_p3), %v444_v0 }
   0x9   : > { %412 = vmatprep.subr.bf16.mxu0 (!%p159_p3), %v471_v1 }
   0xc   : > { %413 = vmatpush3.bf16.msra.mxu0 (!%p159_p3), %v445_v2 }
   0xe   : > { %s544_s12 = smov (!%p191_p4, %s461_s12), 1 }
   0xf   : > { %s403_s20 = sshll.u32 %s544_s12, 3 }
  0x10   : > { %s198_s23 = scalar_lea.vmem %s535_s0, %s403_s20  ;;  %s208_s28 = scalar_lea.vmem %s538_s3, %s403_s20 }
  0x11   : > { %v446_v3 = vld [vmem:[%s198_s23] sm:$0x1f]  }
  0x12   : > { %415 = vmatmul.mubr.msk.bf16.vlgmr.msra.gmra.mrb[0].mxu0 %vm241_vm1, %v446_v3 }
  0xe5   : > { %v279_v5 = vpop.f32.mrb[0].mxu0 }
  0xe6   : > { %v280_v6 = vadd.f32 %v394_v4, %v279_v5  ;;  %v416_v7 = vpop.f32.mrb[1].mxu0 }
  0xe7   : > { %v282_v8 = vpop.f32.mrb[2].mxu0 }
  0xe8   : > { %v405_v9 = vpack.c.bf16 %v280_v6, %v280_v6  ;;  %v283_v10 = vadd.f32 %v394_v4, %v282_v8  ;;  %v417_v11 = vpop.f32.mrb[3].mxu0 }
  0xea   : > { %295 = vst.msk [vmem:[%s208_s28] sm:$0xf] %vm294_vm2, %v405_v9  ;;  %v406_v12 = vpack.c.bf16 %v283_v10, %v283_v10 }
  0xec   : > { %297 = vst.msk [vmem:[%s208_s28 + $0x4] sm:$0x1] %vm296_vm3, %v406_v12 }
  0xed PF: > { %s13_s14 = sadd.s32 1, %s469_s14   ;;  %s539_s12 = smov %s465_s13 }
  0xee   : > { %p10_p5 = scmp.ge.s32.totalorder %s13_s14, 4   ;;  %s540_s13 = smov %s542_s15 }
  0xf0   :  { %12 = sbr.rel (!%p10_p5) target bundleno = 2 (0x2), region = 62 }

// kernel: decoder_forward.13
= control target key start
LH: loop header
LB: loop body
LE: loop exit
PB: predicated region body
PF: predicated region fallthrough
CT: control target
= control target key end

     0   :  { %s800_s0 = inlined_call_operand.vmem [shape: bf16[2,16,32], index: 0, kind: input, shape index: {}]   ;;  %s801_s1 = inlined_call_operand.vmem [shape: bf16[32,128], index: 1, kind: input, shape index: {}]   ;;  %s802_s2 = inlined_call_operand.vmem [shape: f32[1,128], index: 2, kind: input, shape index: {}]   ;;  %s803_s3 = inlined_call_operand.hbm [shape: f32[2,16,128], index: 3, kind: output, shape index: {}]  }
   0x1   :  { %804 = sst [smem:[#allocation5_spill]] %s801_s1 }
   0x2   :  { %8 = vsyncpa [#allocation3], 0 }
   0x3   :  { %10 = vsyncpa [#allocation3 + $0x1], 0  ;;  %s654_s12 = smov 0   ;;  %s656_s13 = smov 0  }
   0x4   :  { %s658_s14 = smov 0   ;;  %s660_s15 = smov 0  }
   0x5   :  { %s662_s16 = smov 0   ;;  %s664_s17 = smov 0  }
   0x6   :  { %s666_s18 = smov 0   ;;  %s668_s19 = smov 0  }
   0x7 LB: > { %s430_s20 = sadd.s32 4294967295, %s629_s19   ;;  %s431_s21 = sadd.s32 4294967294, %s629_s19   ;;  %s629_s19 = sphi %s668_s19, %s16_s19   ;;  %s625_s18 = sphi %s666_s18, %s814_s18   ;;  %s621_s17 = sphi %s664_s17, %s813_s17   ;;  %s617_s16 = sphi %s662_s16, %s812_s16   ;;  %s613_s15 = sphi %s660_s15, %s811_s15   ;;  %s609_s14 = sphi %s658_s14, %s810_s14   ;;  %s605_s13 = sphi %s656_s13, %s809_s13   ;;  %s601_s12 = sphi %s654_s12, %s808_s12  }
   0x8   : > { %s31_s22 = sadd.s32 1, %s621_s17  ;;  %s35_s23 = sadd.s32 1, %s625_s18 }
   0x9   : > { %p33_p0 = scmp.ge.s32.totalorder %s31_s22, 2  ;;  %p136_p1 = scmp.ne.s32.totalorder %s609_s14, %s605_s13 }
   0xa   : > { %p137_p2 = scmp.eq.s32.totalorder %s430_s20, 3  ;;  %p142_p5 = scmp.ne.s32.totalorder %s605_s13, %s601_s12 }
   0xb   : > { %s816_s22 = smov (%p33_p0, %s31_s22), 0  ;;  %s818_s23 = smov (!%p33_p0, %s35_s23), %s625_s18 }
   0xc   : > { %s120_s24 = ssub.s32 %s621_s17, %s816_s22  ;;  %p705_p3 = por %p137_p2, %p136_p1 }
   0xd   : > { %p37_p4 = scmp.ge.s32.totalorder %s818_s23, 2  ;;  %p143_p6 = scmp.eq.s32.totalorder %s431_s21, 3 }
   0xe   : > { %p436_p7 = scmp.ge.s32.totalorder %s629_s19, 1  ;;  %p185_p9 = scmp.lt.s32.totalorder %s629_s19, 5 }
   0xf   : > { %s820_s23 = smov (%p37_p4, %s818_s23), 0  ;;  %p714_p8 = por %p143_p6, %p142_p5 }
  0x10   : > { %s119_s27 = ssub.s32 %s625_s18, %s820_s23  ;;  %s126_s28 = sadd.s32 1, %s609_s14 }
  0x11   : > { %s121_s29 = sor.u32 %s120_s24, %s119_s27  ;;  %p186_p10 = pnand %p436_p7, %p185_p9 }
  0x12   : > { %p124_p11 = scmp.eq.s32.totalorder %s121_s29, 0  ;;  %s807_s1 = sld [smem:[#allocation5_spill]] (!%p186_p10)  ;;  %v631_v1 = vmov (!%p186_p10), 0.0   ;;  %vm632_vm0 = vmmov (!%p186_p10), 0   ;;  %vm259_vm1 = vcmask (!%p186_p10), 261120  }
  0x13   : > { %189 = sbr.rel (%p186_p10) target bundleno = 261 (0x105), region = 32  ;;  %452 = vmatprep.subr.bf16.mxu0 (!%p186_p10), %v631_v1  ;;  %456 = vmatprep.mubr.msk.bf16.mxu0 (!%p186_p10), %vm632_vm0, %v631_v1  ;;  %p219_p12 = scmp.lt.s32.totalorder (!%p186_p10), %s617_s16, 1  ;;  %v440_v4 = vld [vmem:[%s802_s2] ss:$0 sm:$0xff] (!%p186_p10) }
  0x14   : > { %s723_s30 = scalar_select %p124_p11, %s609_s14, %s126_s28  }
  0x15   : > { %p221_p13 = scmp.lt.s32.totalorder (!%p186_p10), %s613_s15, 1  ;;  %s216_s28 = sand.u32 (!%p186_p10), 1, %s605_s13  }
  0x16   : > { %s437_s29 = sshll.u32 (!%p186_p10), %s216_s28, 3  ;;  %s445_s4 = sshll.u32 (!%p186_p10), %s617_s16, 1 }
  0x17   : > { %s317_s5 = sadd.s32 (!%p186_p10), %s613_s15, %s445_s4  ;;  %s633_s21 = smov (!%p186_p10), [#allocation2]  }
  0x18   : > { %v533_v0 = vld [vmem:[%s807_s1] sm:$0xff] (!%p186_p10)   ;;  %v534_v2 = vld [vmem:[%s807_s1 + $0x8] sm:$0xff] (!%p186_p10)   ;;  %s446_s1 = sshll.u32 (!%p186_p10), %s317_s5, 7  ;;  %s539_s24 = sshll.u32 (!%p186_p10), %s633_s21, 4  ;;  %s540_s24 = int_to_ptr.vmem [resolvable:$false] %s539_s24 }
  0x19   : > { %453 = vmatpush3.bf16.msra.mxu0 (!%p186_p10), %v533_v0 }
  0x1a   : > { %454 = vmatprep.subr.bf16.mxu0 %v631_v1  ;;  %s220_s8 = scalar_select %p219_p12, %s617_s16, 1 }
  0x1b   : > { %s222_s9 = scalar_select %p221_p13, %s613_s15, 1 }
  0x1c   : > { %s438_s10 = sshll.u32 %s220_s8, 1  ;;  %s218_s8 = scalar_lea.vmem [#allocation2], %s437_s29 }
  0x1d   : > { %455 = vmatpush3.bf16.msra.mxu0 %v534_v2  ;;  %s224_s11 = sadd.s32 %s438_s10, %s222_s9  ;;  %s321_s9 = sshll.u32 %s218_s8, 4  ;;  %s749_s9 = int_to_ptr.vmem [resolvable:$true] %s321_s9 }
  0x1e   : > { %s439_s20 = sshll.u32 %s224_s11, 2  ;;  %s305_s15 = scalar_lea.sflag [#allocation3], %s216_s28 }
  0x1f   : > { %s226_s27 = scalar_lea.vmem %s800_s0, %s439_s20  ;;  %s747_s20 = scalar_lea.hbm %s803_s3, %s446_s1 }
  0x20   : > { %v235_v3 = vld [vmem:[%s226_s27] sm:$0xf]  ;;  %s535_s16 = scalar_lea.vmem %s749_s9, 128  ;;  %s541_s27 = scalar_lea.vmem %s540_s24, 256 }
  0x21   : > { %457 = vmatmul.mubr.msk.bf16.vlgmr.msra.gmra.mrb[0].mxu0 %vm259_vm1, %v235_v3  ;;  %p536_p0 = scmp.ne.s32.totalorder %s749_s9, %s535_s16  ;;  %p542_p4 = scmp.lt.s32.totalorder %s749_s9, %s540_s24 }
  0x22   : > { %p543_p5 = scmp.lt.s32.totalorder %s541_s27, %s535_s16 }
  0x23   : > { %p537_p1 = pnand %p536_p0, %p705_p3 }
  0x24   : > { %p544_p6 = por %p543_p5, %p542_p4 }
  0x25   : > { %p538_p2 = pneg %p537_p1 }
  0x27   : > { %p545_p7 = pnand %p544_p6, %p538_p2 }
  0xf4   : > { %v297_v5 = vpop.f32.mrb[0].mxu0 }
  0xf5   : > { %v298_v6 = vadd.f32 %v440_v4, %v297_v5  ;;  %v458_v7 = vpop.f32.mrb[1].mxu0 }
  0xf6   : > { %v300_v8 = vpop.f32.mrb[2].mxu0 }
  0xf7   : > { %303 = vst [vmem:[%s218_s8] sm:$0xff] %v298_v6  ;;  %v459_v9 = vpop.f32.mrb[3].mxu0 }
  0xf8   : > { %548 = shalt.err (!%p545_p7)
}
  0xf9   : > { %s549_s1 = scalar_lea.hbm %s747_s20, 128  ;;  %s553_s4 = scalar_lea.hbm %s803_s3, 512 }
  0xfa   : > { %p550_p9 = scmp.ne.s32.totalorder %s747_s20, %s549_s1  ;;  %p554_p12 = scmp.lt.u32.totalorder %s747_s20, %s803_s3 }
  0xfb   : > { %p555_p13 = scmp.lt.u32.totalorder %s553_s4, %s549_s1  ;;  %p557_p1 = scmp.lt.u32.totalorder %s549_s1, %s747_s20 }
  0xfc   : > { %p551_p10 = pnand %p550_p9, %p705_p3 }
  0xfd   : > { %p556_p0 = por %p555_p13, %p554_p12 }
  0xfe   : > { %p552_p11 = pneg %p551_p10 }
  0xff   : > { %p558_p2 = por %p557_p1, %p556_p0 }
 0x101   : > { %p559_p4 = pnand %p558_p2, %p552_p11 }
 0x103   : > { %562 = shalt.err (!%p559_p4)
}
 0x104   : > { %460 = dma.vmem_to_hbm [thread:$0]  (%p705_p3), %s749_s9, 128, %s747_s20, %s305_s15  }
 0x105 PF: > { %p466_p5 = scmp.ge.s32.totalorder %s629_s19, 2  ;;  %s333_s7 = sand.u32 1, %s601_s12  }
 0x106   : > { %s334_s8 = scalar_lea.sflag [#allocation3], %s333_s7 }
 0x107   : > { %p463_p6 = pnand %p466_p5, %p714_p8 }
 0x109   : > { %596 = dma.done.wait (!%p463_p6), %s334_s8, 128  }
 0x10a   : > { %598 = vsyncadd (!%p463_p6), %s334_s8, 4294967168  ;;  %s16_s19 = sadd.s32 1, %s629_s19   ;;  %s808_s12 = smov %s605_s13 }
 0x10b   : > { %p13_p7 = scmp.ge.s32.totalorder %s16_s19, 6   ;;  %s809_s13 = smov %s609_s14 }
 0x10c   : > { %s810_s14 = smov %s723_s30  ;;  %s811_s15 = smov %s621_s17 }
 0x10d   : > { %s812_s16 = smov %s625_s18  ;;  %s813_s17 = smov %s816_s22 }
 0x10e   : > { %s814_s18 = smov %s820_s23  ;;  %15 = sbr.rel (!%p13_p7) target bundleno = 7 (0x7), region = 73 }
 0x115   :  { %339 = vsyncpa [#allocation3], 1 }
 0x116   :  { %341 = vsyncpa [#allocation3 + $0x1], 1 }

// kernel: decoder_forward.9
= control target key start
LH: loop header
LB: loop body
LE: loop exit
PB: predicated region body
PF: predicated region fallthrough
CT: control target
= control target key end

     0   :  { %s3576_s25 = smov 0   ;;  %s3578_s26 = smov 0   ;;  %s4149_s0 = inlined_call_operand.vmem [shape: bf16[2,16,32], index: 0, kind: input, shape index: {}]   ;;  %s4150_s1 = inlined_call_operand.vmem [shape: bf16[2,16,64], index: 1, kind: input, shape index: {}]   ;;  %s4151_s2 = inlined_call_operand.vmem [shape: bf16[2,10,64], index: 2, kind: input, shape index: {}]   ;;  %s4152_s3 = inlined_call_operand.vmem [shape: bf16[32,32], index: 3, kind: input, shape index: {}]   ;;  %s4153_s4 = inlined_call_operand.vmem [shape: f32[1,32], index: 4, kind: input, shape index: {}]   ;;  %s4154_s5 = inlined_call_operand.vmem [shape: bf16[32,32], index: 5, kind: input, shape index: {}]   ;;  %s4155_s6 = inlined_call_operand.vmem [shape: f32[1,32], index: 6, kind: input, shape index: {}]   ;;  %s4156_s7 = inlined_call_operand.vmem [shape: f32[1,32], index: 7, kind: input, shape index: {}]   ;;  %s4157_s8 = inlined_call_operand.vmem [shape: f32[1,32], index: 8, kind: input, shape index: {}]   ;;  %s4158_s9 = inlined_call_operand.vmem [shape: bf16[32,32], index: 9, kind: input, shape index: {}]   ;;  %s4159_s10 = inlined_call_operand.vmem [shape: f32[1,32], index: 10, kind: input, shape index: {}]   ;;  %s4160_s11 = inlined_call_operand.vmem [shape: bf16[32,32], index: 11, kind: input, shape index: {}]   ;;  %s4161_s12 = inlined_call_operand.vmem [shape: f32[1,32], index: 12, kind: input, shape index: {}]   ;;  %s4162_s13 = inlined_call_operand.vmem [shape: f32[1,32], index: 13, kind: input, shape index: {}]   ;;  %s4163_s14 = inlined_call_operand.vmem [shape: f32[1,32], index: 14, kind: input, shape index: {}]   ;;  %s4164_s15 = inlined_call_operand.vmem [shape: bf16[32,64], index: 15, kind: input, shape index: {}]   ;;  %s4165_s16 = inlined_call_operand.vmem [shape: f32[1,64], index: 16, kind: input, shape index: {}]   ;;  %s4166_s17 = inlined_call_operand.vmem [shape: bf16[64,32], index: 17, kind: input, shape index: {}]   ;;  %s4167_s18 = inlined_call_operand.vmem [shape: f32[1,32], index: 18, kind: input, shape index: {}]   ;;  %s4168_s19 = inlined_call_operand.vmem [shape: f32[1,32], index: 19, kind: input, shape index: {}]   ;;  %s4169_s20 = inlined_call_operand.vmem [shape: f32[1,32], index: 20, kind: input, shape index: {}]   ;;  %s4170_s21 = inlined_call_operand.vmem [shape: bf16[2,16,32], index: 21, kind: output, shape index: {}]  }
   0x1   :  { %4177 = sst [smem:[#allocation7_spill]] %s4149_s0  ;;  %s3580_s27 = smov 0  }
   0x2   :  { %4178 = sst [smem:[#allocation8_spill]] %s4150_s1 }
   0x3   :  { %4179 = sst [smem:[#allocation9_spill]] %s4151_s2  ;;  %s3574_s2 = smov 0  }
   0x4   :  { %4180 = sst [smem:[#allocation10_spill]] %s4152_s3  ;;  %s3582_s3 = smov 0  }
   0x5   :  { %4181 = sst [smem:[#allocation11_spill]] %s4153_s4 }
   0x6   :  { %4182 = sst [smem:[#allocation12_spill]] %s4154_s5 }
   0x7   :  { %4183 = sst [smem:[#allocation13_spill]] %s4163_s14 }
   0x8   :  { %4184 = sst [smem:[#allocation14_spill]] %s4165_s16 }
   0x9   :  { %4185 = sst [smem:[#allocation15_spill]] %s4167_s18 }
   0xa   :  { %4186 = sst [smem:[#allocation16_spill]] %s4168_s19 }
   0xb   :  { %4187 = sst [smem:[#allocation17_spill]] %s4169_s20 }
   0xc LB: > { %4188 = sst [smem:[#allocation2_spill]] %s3352_s26  ;;  %s40_s28 = sadd.s32 1, %s3352_s26  ;;  %s3360_s3 = sphi %s3582_s3, %s31_s3   ;;  %s3356_s27 = sphi %s3580_s27, %s4229_s27   ;;  %s3352_s26 = sphi %s3578_s26, %s4228_s26   ;;  %s3348_s25 = sphi %s3576_s25, %s4227_s25   ;;  %s3344_s2 = sphi %s3574_s2, %s4226_s2  }
   0xd   : > { %4189 = sst [smem:[#allocation3_spill]] %s3356_s27  ;;  %s43_s29 = sadd.s32 1, %s3356_s27 }
   0xe   : > { %4190 = sst [smem:[#allocation4_spill]] %s3360_s3  ;;  %p41_p0 = scmp.ge.s32.totalorder %s40_s28, 2 }
   0xf   : > { %p2643_p1 = scmp.ge.s32.totalorder %s3360_s3, 1  ;;  %p626_p2 = scmp.lt.s32.totalorder %s3360_s3, 5 }
  0x10   : > { %s4231_s28 = smov (%p41_p0, %s40_s28), 0  ;;  %s4233_s29 = smov (!%p41_p0, %s43_s29), %s3356_s27 }
  0x11   : > { %4191 = sst [smem:[#allocation5_spill]] %s4231_s28  ;;  %p627_p3 = pnand %p2643_p1, %p626_p2 }
  0x12   : > { %p45_p4 = scmp.ge.s32.totalorder %s4233_s29, 2  ;;  %v3446_v0 = vmov (!%p627_p3), 0.0   ;;  %s4193_s30 = sld [smem:[#allocation10_spill]] (!%p627_p3)  ;;  %vm3447_vm0 = vmmov (!%p627_p3), 0   ;;  %vm755_vm1 = vcmask (!%p627_p3), 261120   ;;  %v801_v5 = vlaneseq (!%p627_p3) }
  0x13   : > { %630 = sbr.rel (%p627_p3) target bundleno = 5663 (0x161f), region = 104  ;;  %2774 = vmatprep.subr.bf16.mxu0 (!%p627_p3), %v3446_v0  ;;  %2778 = vmatprep.mubr.msk.bf16.mxu0 (!%p627_p3), %vm3447_vm0, %v3446_v0  ;;  %p702_p5 = scmp.lt.s32.totalorder (!%p627_p3), %s3348_s25, 1  ;;  %v3654_v18 = vmov (!%p627_p3), 0.0   ;;  %v3656_v19 = vmov (!%p627_p3), 0.0   ;;  %v3658_v20 = vmov (!%p627_p3), 0.0   ;;  %v3660_v21 = vmov (!%p627_p3), 0.0  }
  0x14   : > { %s4235_s29 = smov (%p45_p4, %s4233_s29), 0  ;;  %p704_p6 = scmp.lt.s32.totalorder (!%p627_p3), %s3344_s2, 1  ;;  %v802_v6 = vshrl.u32 (!%p627_p3), %v801_v5, 7  ;;  %v3644_v9 = vand.u32 (!%p627_p3), 127, %v801_v5  ;;  %v3662_v22 = vmov (!%p627_p3), 0.0   ;;  %v3664_v23 = vmov (!%p627_p3), 0.0  }
  0x15   : > { %4192 = sst [smem:[#allocation6_spill]] %s4235_s29  ;;  %s4194_s28 = sld [smem:[#allocation8_spill]] (!%p627_p3)  ;;  %v3666_v24 = vmov (!%p627_p3), 0.0   ;;  %v3668_v25 = vmov (!%p627_p3), 0.0  }
  0x16   : > { %s4195_s5 = sld [smem:[#allocation9_spill]] (!%p627_p3)  ;;  %s4196_s18 = sld [smem:[#allocation7_spill]] (!%p627_p3) }
  0x17   : > { %s2652_s20 = sshll.u32 (!%p627_p3), %s3344_s2, 3 }
  0x18   : > { %v3180_v1 = vld [vmem:[%s4193_s30] sm:$0xff] (!%p627_p3)   ;;  %v3181_v2 = vld [vmem:[%s4193_s30 + $0x8] sm:$0xff] (!%p627_p3)   ;;  %v803_v7 = vstv (!%p627_p3), %s2652_s20 }
  0x19   : > { %2775 = vmatpush3.bf16.msra.mxu0 (!%p627_p3), %v3180_v1  ;;  %v3642_v8 = vadd.s32 (!%p627_p3), %v803_v7, %v802_v6 }
  0x1a   : > { %2776 = vmatprep.subr.bf16.mxu0 %v3446_v0  ;;  %s4237_s25 = smov (!%p702_p5, %s3348_s25), 1 }
  0x1b   : > { %s705_s23 = scalar_select %p704_p6, %s3344_s2, 1 }
  0x1c   : > { %s2644_s1 = sshll.u32 %s4237_s25, 1  ;;  %s2710_s24 = sshll.u32 %s4237_s25, 3 }
  0x1d   : > { %2777 = vmatpush3.bf16.msra.mxu0 %v3181_v2  ;;  %s707_s0 = sadd.s32 %s2644_s1, %s705_s23  ;;  %s3621_s27 = scalar_lea.vmem %s4194_s28, %s2710_s24 }
  0x1e   : > { %s2645_s26 = sshll.u32 %s707_s0, 2  ;;  %s3626_s22 = scalar_lea.vmem %s4195_s5, %s2710_s24 }
  0x1f   : > { %s709_s16 = scalar_lea.vmem %s4196_s18, %s2645_s26  ;;  %s3634_s23 = scalar_lea.vmem %s4170_s21, %s2645_s26 }
  0x20   : > { %v3636_v3 = vld [vmem:[%s709_s16] sm:$0xf]  ;;  %s807_s18 = sadd.s32 1, %s3344_s2  ;;  %s4197_s26 = sld [smem:[#allocation11_spill]] }
  0x21   : > { %v731_v4 = vunpack.c.l.bf16 %v3636_v3  ;;  %2779 = vmatmul.mubr.msk.bf16.vlgmr.msra.gmra.mrb[0].mxu0 %vm755_vm1, %v3636_v3  ;;  %p2657_p7 = scmp.le.s32.totalorder %s807_s18, 0 }
  0x22   : > { %v3670_v26 = vmov (!%p2657_p7), 0.0   ;;  %v3672_v27 = vmov (!%p2657_p7), 0.0   ;;  %v3674_v28 = vmov (!%p2657_p7), 0.0   ;;  %v3676_v29 = vmov (!%p2657_p7), 0.0   ;;  %s3694_s16 = smov (!%p2657_p7), 0  }
  0x23   : > { %v3678_v30 = vmov (!%p2657_p7), 0.0   ;;  %v3680_v31 = vmov (!%p2657_p7), 0.0   ;;  %v3682_v32 = vmov (!%p2657_p7), 0.0   ;;  %v3684_v33 = vmov (!%p2657_p7), 0.0  }
  0x24   : > { %v3686_v34 = vmov (!%p2657_p7), -1e+30   ;;  %v3688_v35 = vmov (!%p2657_p7), -1e+30   ;;  %v3690_v36 = vmov (!%p2657_p7), -1e+30  }
  0x25   : > { %v3692_v37 = vmov (!%p2657_p7), -1e+30  }
  0x26   : > { %v2653_v10 = vld [vmem:[%s4197_s26] ss:$0 sm:$0xff] }
  0xf3   : > { %2569 = sbr.rel (%p2657_p7) target bundleno = 1252 (0x4e4), region = 142 }
  0xf4   : > { %v793_v11 = vpop.f32.mrb[0].mxu0 }
  0xf5   : > { %v794_v12 = vadd.f32 %v2653_v10, %v793_v11  ;;  %v2780_v13 = vpop.f32.mrb[1].mxu0 }
  0xf6   : > { %v796_v14 = vpop.f32.mrb[2].mxu0 }
  0xf7   : > { %v799_v15 = vmul.f32 0.35355338, %v794_v12  ;;  %v2781_v16 = vpop.f32.mrb[3].mxu0 }
  0xf9   : > { %v3650_v17 = vpack.c.bf16 %v799_v15, %v799_v15 }
  0xfa LB: >> { %v3448_v38 = vmov 0.0   ;;  %vm3449_vm2 = vmmov 0   ;;  %s2658_s3 = sshll.u32 %s3412_s16, 3  ;;  %vm835_vm3 = vcmask 64512   ;;  %s3450_s1 = smov 120   ;;  %vm908_vm5 = vcmask 1043456   ;;  %s3412_s16 = sphi %s3694_s16, %s811_s16   ;;  %v3408_v37 = vphi %v3692_v37, %v4211_v37   ;;  %v3404_v36 = vphi %v3690_v36, %v4210_v36   ;;  %v3400_v35 = vphi %v3688_v35, %v4209_v35   ;;  %v3396_v34 = vphi %v3686_v34, %v4208_v34   ;;  %v3392_v33 = vphi %v3684_v33, %v4207_v33   ;;  %v3388_v32 = vphi %v3682_v32, %v4206_v32   ;;  %v3384_v31 = vphi %v3680_v31, %v4205_v31   ;;  %v3380_v30 = vphi %v3678_v30, %v4204_v30   ;;  %v3376_v29 = vphi %v3676_v29, %v4203_v29   ;;  %v3372_v28 = vphi %v3674_v28, %v4202_v28   ;;  %v3368_v27 = vphi %v3672_v27, %v4201_v27   ;;  %v3364_v26 = vphi %v3670_v26, %v4200_v26  }
  0xfb   : >> { %2782 = vmatprep.subr.bf16.mxu0 %v3448_v38  ;;  %2784 = vmatprep.mubr.msk.bf16.mxu0 %vm3449_vm2, %v3448_v38  ;;  %s827_s28 = sshra.s32 %s2658_s3, 3  ;;  %s3451_s24 = smov 112   ;;  %v832_v42 = vstv %s2658_s3 }
  0xfc   : >> { %2788 = vmatprep.subr.bf16.mxu1 %v3448_v38  ;;  %2790 = vmatprep.mubr.msk.bf16.mxu1 %vm3449_vm2, %v3448_v38  ;;  %s2659_s29 = sshll.u32 %s827_s28, 2  ;;  %s3452_s0 = smov 104   ;;  %v3758_v43 = vadd.s32 %v832_v42, %v3644_v9 }
  0xfd   : >> { %s830_s30 = scalar_lea.vmem %s3621_s27, %s2659_s29  ;;  %s3453_s4 = smov 96  }
  0xfe   : >> { %v831_v39 = vld [vmem:[%s830_s30] sm:$0xf]  ;;  %vm834_vm4 = vcmp.le.s32.totalorder %v3758_v43, %v3642_v8  ;;  %s3454_s5 = smov 88   ;;  %s3455_s25 = smov 72  }
  0xff   : >> { %v840_v40 = vsel %vm835_vm3, %v831_v39, 0  ;;  %v3749_v41 = vcombine.low %v831_v39, %v831_v39  ;;  %s3456_s20 = smov 80   ;;  %s811_s16 = sadd.s32 1, %s3412_s16  }
 0x100   : >> { %2783 = vmatpush3.bf16.xpose.msra.mxu0 %v840_v40  ;;  %p3856_p8 = scmp.ge.s32.totalorder %s811_s16, %s807_s18 }
 0x101   : >> { %2800 = vmatprep.subr.bf16.mxu0 %v3448_v38  ;;  %956 = vrot.lane.b32.xlu1 %v3749_v41, %s3450_s1 }
 0x105   : >> { %954 = vrot.lane.b32.xlu1 %v3650_v17, %s3450_s1 }
 0x107   : >> { %2785 = vmatmul.mubr.msk.bf16.vlgmr.msra.gmra.mrb[0].mxu0 %vm835_vm3, %v3650_v17 }
 0x108   : >> { %2802 = vmatprep.mubr.msk.bf16.mxu0 %vm3449_vm2, %v3448_v38 }
 0x109   : >> { %1073 = vrot.lane.b32.xlu1 %v3749_v41, %s3451_s24 }
 0x10d   : >> { %1071 = vrot.lane.b32.xlu1 %v3650_v17, %s3451_s24 }
 0x111   : >> { %1190 = vrot.lane.b32.xlu1 %v3749_v41, %s3452_s0 }
 0x115   : >> { %1188 = vrot.lane.b32.xlu1 %v3650_v17, %s3452_s0 }
 0x173   : >> { %v957_v57 = vpop.permute.xlu1 %956 }
 0x174   : >> { %v962_v60 = vsel %vm835_vm3, %v957_v57, 0 }
 0x177   : >> { %v955_v58 = vpop.permute.xlu1 %954 }
 0x17b   : >> { %v1074_v62 = vpop.permute.xlu1 %1073 }
 0x17c   : >> { %v1079_v1 = vsel %vm835_vm3, %v1074_v62, 0 }
 0x17f   : >> { %v1072_v63 = vpop.permute.xlu1 %1071 }
 0x183   : >> { %v1191_v2 = vpop.permute.xlu1 %1190 }
 0x184   : >> { %v1196_v5 = vsel %vm835_vm3, %v1191_v2, 0 }
 0x187   : >> { %v1189_v6 = vpop.permute.xlu1 %1188 }
 0x1da   : >> { %v876_v44 = vpop.f32.mrb[0].mxu0 }
 0x1db   : >> { %v882_v45 = vsel %vm834_vm4, %v876_v44, -1e+30  ;;  %v2786_v46 = vpop.f32.mrb[1].mxu0 }
 0x1dc   : >> { %v879_v47 = vpop.f32.mrb[2].mxu0  ;;  %v883_v48 = vsel %vm835_vm3, %v882_v45, -inf }
 0x1dd   : >> { %884 = vmax.xlane.f32.xlu0 %v883_v48  ;;  %v2787_v49 = vpop.f32.mrb[3].mxu0 }
 0x1f3   : >> { %903 = vrot.lane.b32.xlu0 %v3749_v41, %s3453_s4 }
 0x26a   : >> { %v885_v50 = vpop.xlane.xlu0 %884 }
 0x26b   : >> { %v3768_v51 = vmax.f32 %v3408_v37, %v885_v50  }
 0x26d   : >> { %v887_v52 = vsub.f32 %v3408_v37, %v3768_v51  ;;  %v890_v53 = vsub.f32 %v882_v45, %v3768_v51 }
 0x26e   : >> { %v904_v54 = vpop.permute.xlu0 %903 }
 0x26f   : >> { %v891_v55 = vmul.f32 1.442695, %v890_v53  ;;  %v910_v56 = vsel %vm908_vm5, %v904_v54, 0  ;;  %v888_v7 = vmul.f32 1.442695, %v887_v52 }
 0x270   : >> { %2789 = vmatpush3.bf16.msra.mxu1 %v910_v56 }
 0x271   : >> { %2794 = vmatprep.subr.bf16.mxu1 %v3448_v38  ;;  %3183 = vpow2.f32 %v891_v55 }
 0x272   : >> { %3185 = vpow2.f32 %v888_v7 }
 0x27b   : >> { %v3184_v59 = vpop.eup %3183 }
 0x27c   : >> { %v899_v61 = vpack.c.bf16 %v3184_v59, %v3184_v59  ;;  %v3790_v10 = vpop.eup %3185  ;;  %v894_v49 = vsel %vm835_vm3, %v3184_v59, 0.0 }
 0x27d   : >> { %v898_v11 = vmul.f32 %v3376_v29, %v3790_v10 }
 0x27e   : >> { %2791 = vmatmul.mubr.msk.bf16.vlgmr.msra.gmra.mrb[0].mxu1 %vm835_vm3, %v899_v61 }
 0x27f   : >> { %2795 = vmatpush3.bf16.xpose.msra.mxu1 %v962_v60  ;;  %2796 = vmatprep.mubr.msk.bf16.mxu1 %vm3449_vm2, %v3448_v38 }
 0x280   : >> { %2806 = vmatprep.subr.bf16.mxu1 %v3448_v38 }
 0x286   : >> { %2797 = vmatmul.mubr.msk.bf16.vlgmr.msra.gmra.mrb[4].mxu1 %vm835_vm3, %v955_v58 }
 0x287   : >> { %2807 = vmatpush3.bf16.xpose.msra.mxu1 %v1079_v1  ;;  %2808 = vmatprep.mubr.msk.bf16.mxu1 %vm3449_vm2, %v3448_v38 }
 0x288   : >> { %2818 = vmatprep.subr.bf16.mxu1 %v3448_v38 }
 0x28e   : >> { %2809 = vmatmul.mubr.msk.bf16.vlgmr.msra.gmra.mrb[8].mxu1 %vm835_vm3, %v1072_v63 }
 0x28f   : >> { %2819 = vmatpush3.bf16.xpose.msra.mxu1 %v1196_v5  ;;  %2820 = vmatprep.mubr.msk.bf16.mxu1 %vm3449_vm2, %v3448_v38 }
 0x296   : >> { %2821 = vmatmul.mubr.msk.bf16.vlgmr.msra.gmra.mrb[12].mxu1 %vm835_vm3, %v1189_v6 }
 0x351   : >> { %v946_v12 = vpop.f32.mrb[0].mxu1 }
 0x352   : >> { %v3794_v29 = vadd.f32 %v946_v12, %v898_v11   ;;  %v2792_v14 = vpop.f32.mrb[1].mxu1 }
 0x353   : >> { %v949_v15 = vpop.f32.mrb[2].mxu1 }
 0x354   : >> { %v4198_v13 = vmov %v3794_v29  ;;  %v2793_v16 = vpop.f32.mrb[3].mxu1 }
 0x359   : >> { %v998_v18 = vpop.f32.mrb[4].mxu1 }
 0x35a   : >> { %v1004_v19 = vsel %vm834_vm4, %v998_v18, -1e+30  ;;  %v2798_v20 = vpop.f32.mrb[5].mxu1 }
 0x35b   : >> { %v1001_v21 = vpop.f32.mrb[6].mxu1  ;;  %v1005_v22 = vsel %vm835_vm3, %v1004_v19, -inf  ;;  %v893_v20 = vmul.f32 %v3392_v33, %v3790_v10 }
 0x35c   : >> { %1006 = vmax.xlane.f32.xlu1 %v1005_v22  ;;  %v2799_v23 = vpop.f32.mrb[7].mxu1 }
 0x361   : >> { %v1115_v24 = vpop.f32.mrb[8].mxu1 }
 0x362   : >> { %v1121_v25 = vsel %vm834_vm4, %v1115_v24, -1e+30  ;;  %v2810_v29 = vpop.f32.mrb[9].mxu1 }
 0x363   : >> { %v1118_v37 = vpop.f32.mrb[10].mxu1  ;;  %v1122_v39 = vsel %vm835_vm3, %v1121_v25, -inf }
 0x364   : >> { %1123 = vmax.xlane.f32.xlu0 %v1122_v39  ;;  %v2811_v40 = vpop.f32.mrb[11].mxu1 }
 0x369   : >> { %v1232_v42 = vpop.f32.mrb[12].mxu1 }
 0x36a   : >> { %v1238_v44 = vsel %vm834_vm4, %v1232_v42, -1e+30  ;;  %v2822_v45 = vpop.f32.mrb[13].mxu1 }
 0x36b   : >> { %v1235_v46 = vpop.f32.mrb[14].mxu1  ;;  %v1239_v47 = vsel %vm835_vm3, %v1238_v44, -inf }
 0x36c   : >> { %1240 = vmax.xlane.f32.xlu0 %v1239_v47  ;;  %v2823_v48 = vpop.f32.mrb[15].mxu1 }
 0x36d   : >> { %1022 = vrot.lane.b32.xlu1 %v3749_v41, %s3454_s5 }
 0x371   : >> { %1256 = vrot.lane.b32.xlu1 %v3749_v41, %s3455_s25 }
 0x382   : >> { %1139 = vrot.lane.b32.xlu0 %v3749_v41, %s3456_s20 }
 0x395   : >> { %895 = vadd.xlane.f32.xlu1 %v894_v49 }
 0x3e9   : >> { %v1007_v43 = vpop.xlane.xlu1 %1006 }
 0x3ea   : >> { %v3813_v50 = vmax.f32 %v3404_v36, %v1007_v43  }
 0x3ec   : >> { %v1009_v52 = vsub.f32 %v3404_v36, %v3813_v50  ;;  %v1012_v53 = vsub.f32 %v1004_v19, %v3813_v50 }
 0x3ed   : >> { %v1023_v54 = vpop.permute.xlu1 %1022 }
 0x3ee   : >> { %v1013_v55 = vmul.f32 1.442695, %v1012_v53  ;;  %v1028_v56 = vsel %vm908_vm5, %v1023_v54, 0  ;;  %v1010_v22 = vmul.f32 1.442695, %v1009_v52 }
 0x3ef   : >> { %2801 = vmatpush3.bf16.msra.mxu0 %v1028_v56 }
 0x3f0   : >> { %2812 = vmatprep.subr.bf16.mxu0 %v3448_v38  ;;  %3187 = vpow2.f32 %v1013_v55 }
 0x3f1   : >> { %v1124_v41 = vpop.xlane.xlu0 %1123 }
 0x3f2   : >> { %v3821_v57 = vmax.f32 %v3400_v35, %v1124_v41  }
 0x3f4   : >> { %v1126_v58 = vsub.f32 %v3400_v35, %v3821_v57  ;;  %v1129_v59 = vsub.f32 %v1121_v25, %v3821_v57 }
 0x3f6   : >> { %v1130_v36 = vmul.f32 1.442695, %v1129_v59  ;;  %v1127_v23 = vmul.f32 1.442695, %v1126_v58 }
 0x3f8   : >> { %3189 = vpow2.f32 %v1130_v36 }
 0x3f9   : >> { %v1241_v60 = vpop.xlane.xlu0 %1240 }
 0x3fa   : >> { %v3827_v61 = vmax.f32 %v3396_v34, %v1241_v60   ;;  %v3188_v62 = vpop.eup %3187 }
 0x3fb   : >> { %v1016_v2 = vsel %vm835_vm3, %v3188_v62, 0.0  ;;  %v1021_v5 = vpack.c.bf16 %v3188_v62, %v3188_v62 }
 0x3fc   : >> { %v1243_v63 = vsub.f32 %v3396_v34, %v3827_v61  ;;  %v1246_v1 = vsub.f32 %v1238_v44, %v3827_v61  ;;  %1017 = vadd.xlane.f32.xlu0 %v1016_v2  ;;  %v1257_v34 = vpop.permute.xlu1 %1256 }
 0x3fd   : >> { %v1140_v6 = vpop.permute.xlu0 %1139  ;;  %2803 = vmatmul.mubr.msk.bf16.vlgmr.msra.gmra.mrb[4].mxu0 %vm835_vm3, %v1021_v5  ;;  %v1262_v14 = vsel %vm908_vm5, %v1257_v34, 0  ;;  %v4208_v34 = vmov %v3827_v61 }
 0x3fe   : >> { %v1247_v35 = vmul.f32 1.442695, %v1246_v1  ;;  %v1145_v7 = vsel %vm908_vm5, %v1140_v6, 0  ;;  %2814 = vmatprep.mubr.msk.bf16.mxu0 %vm3449_vm2, %v3448_v38  ;;  %v1244_v29 = vmul.f32 1.442695, %v1243_v63 }
 0x3ff   : >> { %2813 = vmatpush3.bf16.msra.mxu0 %v1145_v7 }
 0x400   : >> { %2824 = vmatprep.subr.bf16.mxu0 %v3448_v38  ;;  %3191 = vpow2.f32 %v1247_v35  ;;  %v4209_v35 = vmov %v3821_v57 }
 0x401   : >> { %3193 = vpow2.f32 %v1010_v22 }
 0x402   : >> { %v3190_v11 = vpop.eup %3189  ;;  %3195 = vpow2.f32 %v1127_v23 }
 0x403   : >> { %v1133_v12 = vsel %vm835_vm3, %v3190_v11, 0.0  ;;  %v1138_v15 = vpack.c.bf16 %v3190_v11, %v3190_v11  ;;  %3197 = vpow2.f32 %v1244_v29  ;;  %v4203_v29 = vmov %v4198_v13 }
 0x404   : >> { %1134 = vadd.xlane.f32.xlu0 %v1133_v12 }
 0x405   : >> { %2815 = vmatmul.mubr.msk.bf16.vlgmr.msra.gmra.mrb[8].mxu0 %vm835_vm3, %v1138_v15 }
 0x406   : >> { %2825 = vmatpush3.bf16.msra.mxu0 %v1262_v14  ;;  %2826 = vmatprep.mubr.msk.bf16.mxu0 %vm3449_vm2, %v3448_v38 }
 0x40a   : >> { %v3192_v16 = vpop.eup %3191 }
 0x40b   : >> { %v1250_v18 = vsel %vm835_vm3, %v3192_v16, 0.0  ;;  %v1255_v19 = vpack.c.bf16 %v3192_v16, %v3192_v16  ;;  %v3194_v24 = vpop.eup %3193 }
 0x40c   : >> { %1251 = vadd.xlane.f32.xlu1 %v1250_v18  ;;  %v1015_v38 = vmul.f32 %v3388_v32, %v3194_v24  ;;  %v3196_v40 = vpop.eup %3195  ;;  %v1020_v48 = vmul.f32 %v3372_v28, %v3194_v24 }
 0x40d   : >> { %2827 = vmatmul.mubr.msk.bf16.vlgmr.msra.gmra.mrb[12].mxu0 %vm835_vm3, %v1255_v19  ;;  %v1132_v42 = vmul.f32 %v3384_v31, %v3196_v40  ;;  %v3198_v46 = vpop.eup %3197  ;;  %v1137_v54 = vmul.f32 %v3368_v27, %v3196_v40 }
 0x40e   : >> { %v1249_v33 = vmul.f32 %v3380_v30, %v3198_v46  ;;  %v1254_v59 = vmul.f32 %v3364_v26, %v3198_v46 }
 0x422   : >> { %v896_v21 = vpop.xlane.xlu1 %895 }
 0x423   : >> { %v897_v25 = vadd.f32 %v896_v21, %v893_v20   ;;  %v4215_v21 = vmov (%p3856_p8), %v4198_v13 }
 0x489   : >> { %v1018_v37 = vpop.xlane.xlu0 %1017 }
 0x48a   : >> { %v1019_v39 = vadd.f32 %v1018_v37, %v1015_v38   ;;  %v4211_v37 = vmov %v3768_v51 }
 0x48c   : > { %v4218_v24 = vmov (%p3856_p8), %v1019_v39 }
 0x491   : >> { %v1135_v44 = vpop.xlane.xlu0 %1134 }
 0x492   : >> { %v1136_v45 = vadd.f32 %v1135_v44, %v1132_v42  }
 0x494   : > { %v4217_v23 = vmov (%p3856_p8), %v1136_v45 }
 0x499   : >> { %v1252_v10 = vpop.xlane.xlu1 %1251 }
 0x49a   : >> { %v1253_v47 = vadd.f32 %v1252_v10, %v1249_v33   ;;  %v4207_v33 = vmov %v897_v25 }
 0x49c   : > { %v4216_v22 = vmov (%p3856_p8), %v1253_v47 }
 0x4d0   : >> { %v1064_v49 = vpop.f32.mrb[4].mxu0 }
 0x4d1   : >> { %v1070_v43 = vadd.f32 %v1064_v49, %v1020_v48   ;;  %v2804_v52 = vpop.f32.mrb[5].mxu0 }
 0x4d2   : >> { %v1067_v53 = vpop.f32.mrb[6].mxu0 }
 0x4d3   : >> { %v2805_v32 = vpop.f32.mrb[7].mxu0  ;;  %v4202_v28 = vmov %v1070_v43  ;;  %v4214_v20 = vmov (%p3856_p8), %v1070_v43 }
 0x4d4   : >> { %v4206_v32 = vmov %v1019_v39 }
 0x4d8   : >> { %v1181_v55 = vpop.f32.mrb[8].mxu0 }
 0x4d9   : >> { %v1187_v56 = vadd.f32 %v1181_v55, %v1137_v54   ;;  %v2816_v41 = vpop.f32.mrb[9].mxu0 }
 0x4da   : >> { %v1184_v31 = vpop.f32.mrb[10].mxu0 }
 0x4db   : >> { %v2817_v58 = vpop.f32.mrb[11].mxu0  ;;  %v4201_v27 = vmov %v1187_v56  ;;  %v4205_v31 = vmov %v1136_v45  ;;  %v4213_v19 = vmov (%p3856_p8), %v1187_v56 }
 0x4dd   : > { %813 = sbr.rel (!%p3856_p8) target bundleno = 250 (0xfa), region = 148 }
 0x4e0   : >> { %v1298_v36 = vpop.f32.mrb[12].mxu0 }
 0x4e1   : >> { %v1304_v60 = vadd.f32 %v1298_v36, %v1254_v59   ;;  %v2828_v30 = vpop.f32.mrb[13].mxu0  ;;  %v4210_v36 = vmov %v3813_v50 }
 0x4e2   : >> { %v1301_v62 = vpop.f32.mrb[14].mxu0  ;;  %v4204_v30 = vmov %v1253_v47 }
 0x4e3   : >> { %v2829_v63 = vpop.f32.mrb[15].mxu0  ;;  %v4200_v26 = vmov %v1304_v60  ;;  %v4212_v18 = vmov (%p3856_p8), %v1304_v60 }
 0x4e4 PF: > { %2830 = vmatprep.subr.bf16.mxu1 %v3446_v0  ;;  %s4219_s18 = sld [smem:[#allocation12_spill]]  ;;  %vm1321_vm6 = vcmask 1043456   ;;  %2832 = vmatprep.mubr.msk.bf16.mxu1 %vm3447_vm0, %v3446_v0  ;;  %3208 = vrcp.f32 %v3444_v25  ;;  %vm1317_vm7 = vcmask 64512   ;;  %v3199_v32 = vld [vmem:[%s4158_s9] sm:$0xff]   ;;  %v3200_v3 = vld [vmem:[%s4158_s9 + $0x8] sm:$0xff]   ;;  %vm1680_vm8 = vcmask 80896   ;;  %v3444_v25 = vphi %v3668_v25, %v897_v25   ;;  %v3440_v24 = vphi %v3666_v24, %v4218_v24   ;;  %v3436_v23 = vphi %v3664_v23, %v4217_v23   ;;  %v3432_v22 = vphi %v3662_v22, %v4216_v22   ;;  %v3428_v21 = vphi %v3660_v21, %v4215_v21   ;;  %v3424_v20 = vphi %v3658_v20, %v4214_v20   ;;  %v3420_v19 = vphi %v3656_v19, %v4213_v19   ;;  %v3416_v18 = vphi %v3654_v18, %v4212_v18  }
 0x4e5   : > { %2842 = vmatprep.subr.bf16.mxu0 %v3446_v0  ;;  %3210 = vrcp.f32 %v3440_v24  ;;  %2844 = vmatprep.mubr.msk.bf16.mxu0 %vm3447_vm0, %v3446_v0  ;;  %v2674_v31 = vld [vmem:[%s4156_s7] ss:$0 sm:$0xff]  ;;  %s3457_s14 = smov 96   ;;  %s3458_s26 = smov 120   ;;  %vm1698_vm9 = vcmask 1044480   ;;  %vm2408_vm10 = vcmask 523264  }
 0x4e6   : > { %3212 = vrcp.f32 %v3436_v23  ;;  %v2675_v36 = vld [vmem:[%s4157_s8] ss:$0 sm:$0xff]  ;;  %s3459_s28 = smov 112   ;;  %s3460_s29 = smov 88   ;;  %vm2484_vm11 = vcmask 257024  }
 0x4e7   : > { %3214 = vrcp.f32 %v3432_v22  ;;  %v2676_v63 = vld [vmem:[%s4159_s10] ss:$0 sm:$0xff]  ;;  %s3461_s24 = smov 80   ;;  %s3462_s0 = smov 104  }
 0x4e8   : > { %s3463_s19 = smov 72   ;;  %s4220_s5 = sld [smem:[#allocation13_spill]] }
 0x4e9   : > { %s4222_s3 = sld [smem:[#allocation15_spill]]  ;;  %s4223_s30 = sld [smem:[#allocation16_spill]] }
 0x4ea   : > { %v1316_v8 = vld [vmem:[%s4219_s18] sm:$0xf]  ;;  %v1420_v17 = vld [vmem:[%s4219_s18 + $0x8] sm:$0xf]  ;;  %v1369_v28 = vld [vmem:[%s4219_s18 + $0x4] sm:$0xf] }
 0x4eb   : > { %v1323_v9 = vsel %vm1321_vm6, %v1316_v8, 0  ;;  %v1425_v26 = vsel %vm1321_vm6, %v1420_v17, 0  ;;  %v1374_v61 = vsel %vm1321_vm6, %v1369_v28, 0  ;;  %v1471_v6 = vld [vmem:[%s4219_s18 + $0xc] sm:$0xf] }
 0x4ec   : > { %2831 = vmatpush3.bf16.msra.mxu1 %v1323_v9  ;;  %2843 = vmatpush3.bf16.msra.mxu0 %v1425_v26  ;;  %v1476_v34 = vsel %vm1321_vm6, %v1471_v6, 0 }
 0x4ed   : > { %2836 = vmatprep.subr.bf16.mxu1 %v3446_v0  ;;  %2854 = vmatprep.subr.bf16.mxu0 %v3446_v0 }
 0x4ee   : > { %v3209_v27 = vpop.eup %3208 }
 0x4ef   : > { %v3211_v51 = vpop.eup %3210  ;;  %v1314_v13 = vmul.f32 %v3428_v21, %v3209_v27 }
 0x4f0   : > { %v3213_v50 = vpop.eup %3212  ;;  %v1367_v2 = vmul.f32 %v3424_v20, %v3211_v51 }
 0x4f1   : > { %v1315_v57 = vpack.c.bf16 %v1314_v13, %v1314_v13  ;;  %v1418_v1 = vmul.f32 %v3420_v19, %v3213_v50  ;;  %v3215_v7 = vpop.eup %3214 }
 0x4f2   : > { %v1368_v35 = vpack.c.bf16 %v1367_v2, %v1367_v2  ;;  %v1469_v11 = vmul.f32 %v3416_v18, %v3215_v7  ;;  %v2669_v18 = vld [vmem:[%s4155_s6] ss:$0 sm:$0xff] }
 0x4f3   : > { %2833 = vmatmul.mubr.msk.bf16.vlgmr.msra.gmra.mrb[0].mxu1 %vm1317_vm7, %v1315_v57  ;;  %v1419_v5 = vpack.c.bf16 %v1418_v1, %v1418_v1 }
 0x4f4   : > { %2837 = vmatpush3.bf16.msra.mxu1 %v1374_v61  ;;  %2838 = vmatprep.mubr.msk.bf16.mxu1 %vm3447_vm0, %v3446_v0  ;;  %v1470_v12 = vpack.c.bf16 %v1469_v11, %v1469_v11 }
 0x4f5   : > { %2848 = vmatprep.subr.bf16.mxu1 %v3446_v0  ;;  %2845 = vmatmul.mubr.msk.bf16.vlgmr.msra.gmra.mrb[0].mxu0 %vm1317_vm7, %v1419_v5 }
 0x4f6   : > { %2858 = vmatprep.mubr.msk.bf16.mxu0 %vm3447_vm0, %v3446_v0  ;;  %2855 = vmatpush3.bf16.msra.mxu0 %v3199_v32 }
 0x4f7   : > { %2856 = vmatprep.subr.bf16.mxu0 %v3446_v0 }
 0x4fa   : > { %2857 = vmatpush3.bf16.msra.mxu0 %v3200_v3 }
 0x4fb   : > { %2839 = vmatmul.mubr.msk.bf16.vlgmr.msra.gmra.mrb[4].mxu1 %vm1317_vm7, %v1368_v35  ;;  %2868 = vmatprep.subr.bf16.mxu0 %v3446_v0 }
 0x4fc   : > { %2849 = vmatpush3.bf16.msra.mxu1 %v1476_v34  ;;  %2850 = vmatprep.mubr.msk.bf16.mxu1 %vm3447_vm0, %v3446_v0 }
 0x4fd   : > { %2862 = vmatprep.subr.bf16.mxu1 %v3446_v0 }
 0x503   : > { %2851 = vmatmul.mubr.msk.bf16.vlgmr.msra.gmra.mrb[8].mxu1 %vm1317_vm7, %v1470_v12 }
 0x504   : > { %2864 = vmatprep.mubr.msk.bf16.mxu1 %vm3447_vm0, %v3446_v0 }
 0x5c6   : > { %v1359_v14 = vpop.f32.mrb[0].mxu1 }
 0x5c7   : > { %v2834_v15 = vpop.f32.mrb[1].mxu1  ;;  %v1365_v23 = vadd.f32 %v2669_v18, %v1359_v14  ;;  %v1743_v18 = vld [vmem:[%s4160_s11] sm:$0xf] }
 0x5c8   : > { %v1362_v16 = vpop.f32.mrb[2].mxu1  ;;  %v1461_v19 = vpop.f32.mrb[0].mxu0 }
 0x5c9   : > { %v2835_v20 = vpop.f32.mrb[3].mxu1  ;;  %v2846_v21 = vpop.f32.mrb[1].mxu0 }
 0x5ca   : > { %v1464_v25 = vpop.f32.mrb[2].mxu0 }
 0x5cb   : > { %v2847_v22 = vpop.f32.mrb[3].mxu0  ;;  %v1748_v25 = vsel %vm1321_vm6, %v1743_v18, 0 }
 0x5ce   : > { %v1410_v24 = vpop.f32.mrb[4].mxu1 }
 0x5cf   : > { %v1416_v29 = vadd.f32 %v1410_v24, %v1365_v23  ;;  %v2840_v38 = vpop.f32.mrb[5].mxu1 }
 0x5d0   : > { %v1413_v37 = vpop.f32.mrb[6].mxu1 }
 0x5d1   : > { %v1467_v39 = vadd.f32 %v1461_v19, %v1416_v29  ;;  %v2841_v40 = vpop.f32.mrb[7].mxu1 }
 0x5d6   : > { %v1512_v42 = vpop.f32.mrb[8].mxu1 }
 0x5d7   : > { %v1518_v44 = vadd.f32 %v1512_v42, %v1467_v39  ;;  %v2852_v45 = vpop.f32.mrb[9].mxu1 }
 0x5d8   : > { %v1515_v46 = vpop.f32.mrb[10].mxu1 }
 0x5d9   : > { %v1521_v33 = vadd.f32 %v1518_v44, %v731_v4  ;;  %v2853_v10 = vpop.f32.mrb[11].mxu1  ;;  %v3972_v4 = vld [vmem:[%s3626_s22] sm:$0x1f]  }
 0x5da   : > { %v1638_v54 = vsel %vm1317_vm7, %v3972_v4, 0 }
 0x5db   : > { %v1522_v47 = vsel %vm755_vm1, %v1521_v33, 0.0  ;;  %2863 = vmatpush3.bf16.xpose.msra.mxu1 %v1638_v54 }
 0x5dc   : > { %1523 = vadd.xlane.f32.xlu0 %v1522_v47  ;;  %2874 = vmatprep.subr.bf16.mxu1 %v3446_v0 }
 0x669   : > { %v1524_v48 = vpop.xlane.xlu0 %1523 }
 0x66a   : > { %v1526_v49 = vmul.f32 0.03125, %v1524_v48 }
 0x66c   : > { %v1527_v43 = vsub.f32 %v1521_v33, %v1526_v49 }
 0x66e   : > { %v1528_v52 = vmul.f32 %v1527_v43, %v1527_v43 }
 0x670   : > { %v1529_v53 = vsel %vm755_vm1, %v1528_v52, 0.0 }
 0x671   : > { %1530 = vadd.xlane.f32.xlu0 %v1529_v53 }
 0x687   : > { %1693 = vrot.lane.b32.xlu0 %v3972_v4, %s3457_s14  ;;  %s4221_s14 = sld [smem:[#allocation14_spill]] }
 0x6fe   : > { %v1531_v55 = vpop.xlane.xlu0 %1530 }
 0x6ff   : > { %v1532_v56 = vmul.f32 0.03125, %v1531_v55 }
 0x701   : > { %v1533_v41 = vadd.f32 1e-05, %v1532_v56 }
 0x702   : > { %v1694_v34 = vpop.permute.xlu0 %1693 }
 0x703   : > { %3216 = vrsqrt.f32 %v1533_v41  ;;  %v1700_v11 = vsel %vm1698_vm9, %v1694_v34, 0 }
 0x70d   : > { %v3217_v58 = vpop.eup %3216 }
 0x70e   : > { %v1541_v59 = vmul.f32 %v3217_v58, %v2674_v31 }
 0x710   : > { %v1542_v60 = vmul.f32 %v1541_v59, %v1527_v43  ;;  %v1903_v59 = vld [vmem:[%s4160_s11 + $0x4] sm:$0xf] }
 0x712   : > { %v3983_v30 = vadd.f32 %v2675_v36, %v1542_v60  ;;  %v1908_v36 = vsel %vm1321_vm6, %v1903_v59, 0 }
 0x714   : > { %v1550_v62 = vpack.c.bf16 %v3983_v30, %v3983_v30 }
 0x716   : > { %2859 = vmatmul.mubr.msk.bf16.vlgmr.msra.gmra.mrb[4].mxu0 %vm755_vm1, %v1550_v62 }
 0x717   : > { %2870 = vmatprep.mubr.msk.bf16.mxu0 %vm3447_vm0, %v3446_v0  ;;  %2869 = vmatpush3.bf16.msra.mxu0 %v1700_v11 }
 0x718   : > { %2880 = vmatprep.subr.bf16.mxu0 %v3446_v0 }
 0x7e9   : > { %v1613_v8 = vpop.f32.mrb[4].mxu0 }
 0x7ea   : > { %v1614_v9 = vadd.f32 %v2676_v63, %v1613_v8  ;;  %v2860_v17 = vpop.f32.mrb[5].mxu0 }
 0x7eb   : > { %v1616_v26 = vpop.f32.mrb[6].mxu0 }
 0x7ec   : > { %v1619_v27 = vmul.f32 0.35355338, %v1614_v9  ;;  %v2861_v28 = vpop.f32.mrb[7].mxu0 }
 0x7ee   : > { %v3993_v51 = vpack.c.bf16 %v1619_v27, %v1619_v27 }
 0x7f0   : > { %2865 = vmatmul.mubr.msk.bf16.vlgmr.msra.gmra.mrb[12].mxu1 %vm1317_vm7, %v3993_v51 }
 0x7f1   : > { %2876 = vmatprep.mubr.msk.bf16.mxu1 %vm3447_vm0, %v3446_v0  ;;  %2875 = vmatpush3.bf16.msra.mxu1 %v1748_v25 }
 0x7f2   : > { %2886 = vmatprep.subr.bf16.mxu1 %v3446_v0 }
 0x8c3   : > { %v1674_v13 = vpop.f32.mrb[12].mxu1 }
 0x8c4   : > { %v2866_v50 = vpop.f32.mrb[13].mxu1  ;;  %v1681_v57 = vsel %vm1680_vm8, %v1674_v13, -inf }
 0x8c5   : > { %1682 = vmax.xlane.f32.xlu1 %v1681_v57  ;;  %v1677_v61 = vpop.f32.mrb[14].mxu1 }
 0x8c6   : > { %v2867_v1 = vpop.f32.mrb[15].mxu1 }
 0x952   : > { %v1683_v2 = vpop.xlane.xlu1 %1682 }
 0x953   : > { %v1684_v5 = vsub.f32 %v1674_v13, %v1683_v2 }
 0x955   : > { %v1685_v6 = vmul.f32 1.442695, %v1684_v5 }
 0x957   : > { %3218 = vpow2.f32 %v1685_v6 }
 0x961   : > { %v3219_v35 = vpop.eup %3218 }
 0x962   : > { %v1687_v7 = vsel %vm1680_vm8, %v3219_v35, 0.0 }
 0x963   : > { %1688 = vadd.xlane.f32.xlu1 %v1687_v7 }
 0x974   : > { %1794 = vrot.lane.b32.xlu1 %v3972_v4, %s3458_s26 }
 0x978   : > { %1792 = vrot.lane.b32.xlu1 %v3993_v51, %s3458_s26 }
 0x9f0   : > { %v1689_v12 = vpop.xlane.xlu1 %1688 }
 0x9f1   : > { %3220 = vrcp.f32 %v1689_v12 }
 0x9f4   : > { %v1795_v16 = vpop.permute.xlu1 %1794 }
 0x9f5   : > { %v1800_v19 = vsel %vm1317_vm7, %v1795_v16, 0 }
 0x9f8   : > { %v1793_v21 = vpop.permute.xlu1 %1792 }
 0x9fb   : > { %v3221_v14 = vpop.eup %3220 }
 0x9fc   : > { %v1691_v15 = vmul.f32 %v3221_v14, %v3219_v35 }
 0x9fe   : > { %v1692_v20 = vpack.c.bf16 %v1691_v15, %v1691_v15 }
 0xa00   : > { %2871 = vmatmul.mubr.msk.bf16.vlgmr.msra.gmra.mrb[8].mxu0 %vm1680_vm8, %v1692_v20 }
 0xa01   : > { %2881 = vmatpush3.bf16.xpose.msra.mxu0 %v1800_v19  ;;  %2882 = vmatprep.mubr.msk.bf16.mxu0 %vm3447_vm0, %v3446_v0 }
 0xa02   : > { %2892 = vmatprep.subr.bf16.mxu0 %v3446_v0 }
 0xa08   : > { %2883 = vmatmul.mubr.msk.bf16.vlgmr.msra.gmra.mrb[12].mxu0 %vm1317_vm7, %v1793_v21 }
 0xa09   : > { %2894 = vmatprep.mubr.msk.bf16.mxu0 %vm3447_vm0, %v3446_v0  ;;  %2893 = vmatpush3.bf16.msra.mxu0 %v1908_v36 }
 0xa0a   : > { %2904 = vmatprep.subr.bf16.mxu0 %v3446_v0 }
 0xad3   : > { %v1736_v22 = vpop.f32.mrb[8].mxu0 }
 0xad4   : > { %v1742_v23 = vpack.c.bf16 %v1736_v22, %v1736_v22  ;;  %v2872_v24 = vpop.f32.mrb[9].mxu0  ;;  %v2062_v22 = vld [vmem:[%s4160_s11 + $0x8] sm:$0xf] }
 0xad5   : > { %v1739_v29 = vpop.f32.mrb[10].mxu0 }
 0xad6   : > { %v2873_v38 = vpop.f32.mrb[11].mxu0  ;;  %2877 = vmatmul.mubr.msk.bf16.vlgmr.msra.gmra.mrb[16].mxu1 %vm1317_vm7, %v1742_v23  ;;  %v2067_v23 = vsel %vm1321_vm6, %v2062_v22, 0  ;;  %v2697_v22 = vld [vmem:[%s4221_s14] ss:$0 sm:$0xff] }
 0xad7   : > { %2888 = vmatprep.mubr.msk.bf16.mxu1 %vm3447_vm0, %v3446_v0 }
 0xadb   : > { %v1836_v37 = vpop.f32.mrb[12].mxu0 }
 0xadc   : > { %v2884_v39 = vpop.f32.mrb[13].mxu0  ;;  %v1842_v40 = vsel %vm1680_vm8, %v1836_v37, -inf }
 0xadd   : > { %1843 = vmax.xlane.f32.xlu1 %v1842_v40  ;;  %v1839_v42 = vpop.f32.mrb[14].mxu0 }
 0xade   : > { %v2885_v44 = vpop.f32.mrb[15].mxu0 }
 0xaee   : > { %1953 = vrot.lane.b32.xlu1 %v3972_v4, %s3459_s28 }
 0xaf2   : > { %1951 = vrot.lane.b32.xlu1 %v3993_v51, %s3459_s28 }
 0xb6a   : > { %v1844_v45 = vpop.xlane.xlu1 %1843 }
 0xb6b   : > { %v1845_v46 = vsub.f32 %v1836_v37, %v1844_v45 }
 0xb6d   : > { %v1846_v33 = vmul.f32 1.442695, %v1845_v46 }
 0xb6e   : > { %v1954_v56 = vpop.permute.xlu1 %1953 }
 0xb6f   : > { %3222 = vpow2.f32 %v1846_v33  ;;  %v1959_v41 = vsel %vm1317_vm7, %v1954_v56, 0 }
 0xb72   : > { %v1952_v58 = vpop.permute.xlu1 %1951 }
 0xb79   : > { %v3223_v10 = vpop.eup %3222 }
 0xb7a   : > { %v1848_v47 = vsel %vm1680_vm8, %v3223_v10, 0.0 }
 0xb7b   : > { %1849 = vadd.xlane.f32.xlu0 %v1848_v47 }
 0xb91   : > { %1854 = vrot.lane.b32.xlu0 %v3972_v4, %s3460_s29 }
 0xba9   : > { %v1784_v48 = vpop.f32.mrb[16].mxu1 }
 0xbaa   : > { %v2878_v49 = vpop.f32.mrb[17].mxu1 }
 0xbab   : > { %v1787_v43 = vpop.f32.mrb[18].mxu1 }
 0xbac   : > { %v2879_v52 = vpop.f32.mrb[19].mxu1  ;;  %v2221_v43 = vld [vmem:[%s4160_s11 + $0xc] sm:$0xf] }
 0xbad   : > { %v2226_v52 = vsel %vm1321_vm6, %v2221_v43, 0 }
 0xc08   : > { %v1850_v53 = vpop.xlane.xlu0 %1849 }
 0xc09   : > { %3224 = vrcp.f32 %v1850_v53 }
 0xc0c   : > { %v1855_v32 = vpop.permute.xlu0 %1854 }
 0xc0d   : > { %v1860_v3 = vsel %vm1698_vm9, %v1855_v32, 0 }
 0xc0e   : > { %2887 = vmatpush3.bf16.msra.mxu1 %v1860_v3 }
 0xc0f   : > { %2898 = vmatprep.subr.bf16.mxu1 %v3446_v0 }
 0xc13   : > { %v3225_v54 = vpop.eup %3224 }
 0xc14   : > { %v1852_v55 = vmul.f32 %v3225_v54, %v3223_v10 }
 0xc16   : > { %v1853_v31 = vpack.c.bf16 %v1852_v55, %v1852_v55 }
 0xc18   : > { %2889 = vmatmul.mubr.msk.bf16.vlgmr.msra.gmra.mrb[20].mxu1 %vm1680_vm8, %v1853_v31 }
 0xc19   : > { %2899 = vmatpush3.bf16.xpose.msra.mxu1 %v1959_v41  ;;  %2900 = vmatprep.mubr.msk.bf16.mxu1 %vm3447_vm0, %v3446_v0 }
 0xc1a   : > { %2910 = vmatprep.subr.bf16.mxu1 %v3446_v0 }
 0xc20   : > { %2901 = vmatmul.mubr.msk.bf16.vlgmr.msra.gmra.mrb[24].mxu1 %vm1317_vm7, %v1952_v58 }
 0xc21   : > { %2912 = vmatprep.mubr.msk.bf16.mxu1 %vm3447_vm0, %v3446_v0  ;;  %2911 = vmatpush3.bf16.msra.mxu1 %v2067_v23 }
 0xc22   : > { %2922 = vmatprep.subr.bf16.mxu1 %v3446_v0 }
 0xceb   : > { %v1896_v60 = vpop.f32.mrb[20].mxu1 }
 0xcec   : > { %v1902_v62 = vpack.c.bf16 %v1896_v60, %v1896_v60  ;;  %v2890_v63 = vpop.f32.mrb[21].mxu1 }
 0xced   : > { %v1899_v8 = vpop.f32.mrb[22].mxu1 }
 0xcee   : > { %v2891_v9 = vpop.f32.mrb[23].mxu1  ;;  %2895 = vmatmul.mubr.msk.bf16.vlgmr.msra.gmra.mrb[16].mxu0 %vm1317_vm7, %v1902_v62 }
 0xcef   : > { %2906 = vmatprep.mubr.msk.bf16.mxu0 %vm3447_vm0, %v3446_v0 }
 0xcf3   : > { %v1995_v17 = vpop.f32.mrb[24].mxu1 }
 0xcf4   : > { %v2902_v26 = vpop.f32.mrb[25].mxu1  ;;  %v2001_v27 = vsel %vm1680_vm8, %v1995_v17, -inf }
 0xcf5   : > { %2002 = vmax.xlane.f32.xlu0 %v2001_v27  ;;  %v1998_v28 = vpop.f32.mrb[26].mxu1 }
 0xcf6   : > { %v2903_v13 = vpop.f32.mrb[27].mxu1 }
 0xd0b   : > { %2013 = vrot.lane.b32.xlu0 %v3972_v4, %s3461_s24 }
 0xd0f   : > { %2110 = vrot.lane.b32.xlu0 %v3993_v51, %s3462_s0  ;;  %v2680_v51 = vld [vmem:[%s4161_s12] ss:$0 sm:$0xff] }
 0xd10   : > { %v1790_v35 = vadd.f32 %v2680_v51, %v1784_v48  ;;  %v3203_v51 = vld [vmem:[%s4164_s15 + $0x8] sm:$0xff]  }
 0xd82   : > { %v2003_v50 = vpop.xlane.xlu0 %2002 }
 0xd83   : > { %v2004_v57 = vsub.f32 %v1995_v17, %v2003_v50 }
 0xd85   : > { %v2005_v61 = vmul.f32 1.442695, %v2004_v57 }
 0xd86   : > { %v2014_v1 = vpop.permute.xlu0 %2013 }
 0xd87   : > { %3226 = vpow2.f32 %v2005_v61  ;;  %v2019_v2 = vsel %vm1698_vm9, %v2014_v1, 0 }
 0xd88   : > { %2905 = vmatpush3.bf16.msra.mxu0 %v2019_v2 }
 0xd89   : > { %2916 = vmatprep.subr.bf16.mxu0 %v3446_v0 }
 0xd8a   : > { %v2111_v25 = vpop.permute.xlu0 %2110 }
 0xd91   : > { %v3227_v5 = vpop.eup %3226 }
 0xd92   : > { %v2007_v6 = vsel %vm1680_vm8, %v3227_v5, 0.0 }
 0xd93   : > { %2008 = vadd.xlane.f32.xlu1 %v2007_v6  ;;  %v3202_v6 = vld [vmem:[%s4164_s15] sm:$0xff]  }
 0xda4   : > { %2112 = vrot.lane.b32.xlu1 %v3972_v4, %s3462_s0  ;;  %s4224_s0 = sld [smem:[#allocation17_spill]] }
 0xdc1   : > { %v1944_v7 = vpop.f32.mrb[16].mxu0 }
 0xdc2   : > { %v1950_v34 = vadd.f32 %v1944_v7, %v1790_v35  ;;  %v2896_v11 = vpop.f32.mrb[17].mxu0  ;;  %v3205_v35 = vld [vmem:[%s4166_s17 + $0x8] sm:$0xff]  }
 0xdc3   : > { %v1947_v12 = vpop.f32.mrb[18].mxu0 }
 0xdc4   : > { %v2897_v14 = vpop.f32.mrb[19].mxu0  ;;  %v2694_v12 = vld [vmem:[%s4162_s13] ss:$0 sm:$0xff] }
 0xe20   : > { %v2009_v15 = vpop.xlane.xlu1 %2008 }
 0xe21   : > { %3228 = vrcp.f32 %v2009_v15 }
 0xe24   : > { %v2113_v19 = vpop.permute.xlu1 %2112 }
 0xe25   : > { %v2118_v21 = vsel %vm1317_vm7, %v2113_v19, 0 }
 0xe2b   : > { %v3229_v16 = vpop.eup %3228 }
 0xe2c   : > { %v2011_v20 = vmul.f32 %v3229_v16, %v3227_v5  ;;  %v2695_v16 = vld [vmem:[%s4220_s5] ss:$0 sm:$0xff] }
 0xe2e   : > { %v2012_v18 = vpack.c.bf16 %v2011_v20, %v2011_v20 }
 0xe30   : > { %2907 = vmatmul.mubr.msk.bf16.vlgmr.msra.gmra.mrb[20].mxu0 %vm1680_vm8, %v2012_v18  ;;  %v3206_v18 = vld [vmem:[%s4166_s17 + $0x10] sm:$0xff]  }
 0xe31   : > { %2917 = vmatpush3.bf16.xpose.msra.mxu0 %v2118_v21  ;;  %2918 = vmatprep.mubr.msk.bf16.mxu0 %vm3447_vm0, %v3446_v0 }
 0xe32   : > { %2928 = vmatprep.subr.bf16.mxu0 %v3446_v0 }
 0xe38   : > { %2919 = vmatmul.mubr.msk.bf16.vlgmr.msra.gmra.mrb[24].mxu0 %vm1317_vm7, %v2111_v25  ;;  %v3207_v25 = vld [vmem:[%s4166_s17 + $0x18] sm:$0xff]  }
 0xe39   : > { %2930 = vmatprep.mubr.msk.bf16.mxu0 %vm3447_vm0, %v3446_v0  ;;  %2929 = vmatpush3.bf16.msra.mxu0 %v2226_v52 }
 0xe3a   : > { %2942 = vmatprep.subr.bf16.mxu0 %v3446_v0 }
 0xf03   : > { %v2055_v24 = vpop.f32.mrb[20].mxu0 }
 0xf04   : > { %v2061_v29 = vpack.c.bf16 %v2055_v24, %v2055_v24  ;;  %v2908_v38 = vpop.f32.mrb[21].mxu0 }
 0xf05   : > { %v2058_v37 = vpop.f32.mrb[22].mxu0 }
 0xf06   : > { %v2909_v39 = vpop.f32.mrb[23].mxu0  ;;  %2913 = vmatmul.mubr.msk.bf16.vlgmr.msra.gmra.mrb[28].mxu1 %vm1317_vm7, %v2061_v29 }
 0xf07   : > { %2924 = vmatprep.mubr.msk.bf16.mxu1 %vm3447_vm0, %v3446_v0 }
 0xf0b   : > { %v2154_v40 = vpop.f32.mrb[24].mxu0 }
 0xf0c   : > { %v2920_v42 = vpop.f32.mrb[25].mxu0  ;;  %v2160_v44 = vsel %vm1680_vm8, %v2154_v40, -inf }
 0xf0d   : > { %2161 = vmax.xlane.f32.xlu1 %v2160_v44  ;;  %v2157_v45 = vpop.f32.mrb[26].mxu0 }
 0xf0e   : > { %v2921_v46 = vpop.f32.mrb[27].mxu0 }
 0xf9a   : > { %v2162_v33 = vpop.xlane.xlu1 %2161 }
 0xf9b   : > { %v2163_v10 = vsub.f32 %v2154_v40, %v2162_v33 }
 0xf9d   : > { %v2164_v47 = vmul.f32 1.442695, %v2163_v10 }
 0xf9f   : > { %3230 = vpow2.f32 %v2164_v47 }
 0xfa9   : > { %v3231_v48 = vpop.eup %3230 }
 0xfaa   : > { %v2166_v49 = vsel %vm1680_vm8, %v3231_v48, 0.0 }
 0xfab   : > { %2167 = vadd.xlane.f32.xlu0 %v2166_v49 }
 0xfc1   : > { %2172 = vrot.lane.b32.xlu0 %v3972_v4, %s3463_s19 }
 0xfd9   : > { %v2103_v53 = vpop.f32.mrb[28].mxu1 }
 0xfda   : > { %v2109_v32 = vadd.f32 %v2103_v53, %v1950_v34  ;;  %v2914_v3 = vpop.f32.mrb[29].mxu1 }
 0xfdb   : > { %v2106_v54 = vpop.f32.mrb[30].mxu1 }
 0xfdc   : > { %v2915_v55 = vpop.f32.mrb[31].mxu1 }
 0xfdd   : > { %v2706_v55 = vld [vmem:[%s4223_s30] ss:$0 sm:$0xff] }
0x1038   : > { %v2168_v56 = vpop.xlane.xlu0 %2167 }
0x1039   : > { %3232 = vrcp.f32 %v2168_v56 }
0x103c   : > { %v2173_v41 = vpop.permute.xlu0 %2172 }
0x103d   : > { %v2178_v31 = vsel %vm1698_vm9, %v2173_v41, 0 }
0x103e   : > { %2923 = vmatpush3.bf16.msra.mxu1 %v2178_v31  ;;  %v2707_v31 = vld [vmem:[%s4224_s0] ss:$0 sm:$0xff] }
0x103f   : > { %2934 = vmatprep.subr.bf16.mxu1 %v3446_v0 }
0x1043   : > { %v3233_v4 = vpop.eup %3232 }
0x1044   : > { %v2170_v58 = vmul.f32 %v3233_v4, %v3231_v48 }
0x1046   : > { %v2171_v59 = vpack.c.bf16 %v2170_v58, %v2170_v58 }
0x1048   : > { %2925 = vmatmul.mubr.msk.bf16.vlgmr.msra.gmra.mrb[32].mxu1 %vm1680_vm8, %v2171_v59 }
0x1049   : > { %2938 = vmatprep.mubr.msk.bf16.mxu1 %vm3447_vm0, %v3446_v0  ;;  %2935 = vmatpush3.bf16.msra.mxu1 %v3202_v6 }
0x104a   : > { %2936 = vmatprep.subr.bf16.mxu1 %v3446_v0 }
0x104d   : > { %2937 = vmatpush3.bf16.msra.mxu1 %v3203_v51 }
0x111b   : > { %v2214_v36 = vpop.f32.mrb[32].mxu1 }
0x111c   : > { %v2220_v60 = vpack.c.bf16 %v2214_v36, %v2214_v36  ;;  %v2926_v62 = vpop.f32.mrb[33].mxu1 }
0x111d   : > { %v2217_v63 = vpop.f32.mrb[34].mxu1 }
0x111e   : > { %v2927_v8 = vpop.f32.mrb[35].mxu1  ;;  %2931 = vmatmul.mubr.msk.bf16.vlgmr.msra.gmra.mrb[28].mxu0 %vm1317_vm7, %v2220_v60 }
0x111f   : > { %2950 = vmatprep.mubr.msk.bf16.mxu0 %vm3447_vm0, %v3446_v0 }
0x11f1   : > { %v2262_v9 = vpop.f32.mrb[28].mxu0 }
0x11f2   : > { %v2268_v17 = vadd.f32 %v2262_v9, %v2109_v32  ;;  %v2932_v26 = vpop.f32.mrb[29].mxu0 }
0x11f3   : > { %v2265_v27 = vpop.f32.mrb[30].mxu0 }
0x11f4   : > { %v2933_v28 = vpop.f32.mrb[31].mxu0  ;;  %v2271_v13 = vadd.f32 %v2268_v17, %v3983_v30  ;;  %v3204_v30 = vld [vmem:[%s4166_s17] sm:$0xff]  }
0x11f5   : > { %2943 = vmatpush3.bf16.msra.mxu0 %v3204_v30 }
0x11f6   : > { %v2272_v50 = vsel %vm755_vm1, %v2271_v13, 0.0  ;;  %2944 = vmatprep.subr.bf16.mxu0 %v3446_v0 }
0x11f7   : > { %2273 = vadd.xlane.f32.xlu1 %v2272_v50 }
0x11f9   : > { %2945 = vmatpush3.bf16.msra.mxu0 %v3205_v35 }
0x11fa   : > { %2946 = vmatprep.subr.bf16.mxu0 %v3446_v0 }
0x11fd   : > { %2947 = vmatpush3.bf16.msra.mxu0 %v3206_v18 }
0x11fe   : > { %2948 = vmatprep.subr.bf16.mxu0 %v3446_v0  ;;  %v2696_v0 = vld [vmem:[%s4222_s3] ss:$0 sm:$0xff] }
0x1201   : > { %2949 = vmatpush3.bf16.msra.mxu0 %v3207_v25 }
0x1284   : > { %v2274_v57 = vpop.xlane.xlu1 %2273 }
0x1285   : > { %v2275_v61 = vmul.f32 0.03125, %v2274_v57 }
0x1287   : > { %v2276_v1 = vsub.f32 %v2271_v13, %v2275_v61 }
0x1289   : > { %v2277_v2 = vmul.f32 %v2276_v1, %v2276_v1 }
0x128b   : > { %v2278_v5 = vsel %vm755_vm1, %v2277_v2, 0.0 }
0x128c   : > { %2279 = vadd.xlane.f32.xlu1 %v2278_v5 }
0x1319   : > { %v2280_v7 = vpop.xlane.xlu1 %2279 }
0x131a   : > { %v2281_v34 = vmul.f32 0.03125, %v2280_v7 }
0x131c   : > { %v2282_v11 = vadd.f32 1e-05, %v2281_v34 }
0x131e   : > { %3234 = vrsqrt.f32 %v2282_v11 }
0x1328   : > { %v3235_v14 = vpop.eup %3234 }
0x1329   : > { %v2290_v15 = vmul.f32 %v3235_v14, %v2694_v12 }
0x132b   : > { %v2291_v19 = vmul.f32 %v2290_v15, %v2276_v1 }
0x132d   : > { %v2298_v20 = vadd.f32 %v2695_v16, %v2291_v19 }
0x132f   : > { %v2299_v21 = vpack.c.bf16 %v2298_v20, %v2298_v20 }
0x1331   : > { %2939 = vmatmul.mubr.msk.bf16.vlgmr.msra.gmra.mrb[36].mxu1 %vm755_vm1, %v2299_v21 }
0x1404   : > { %v2368_v23 = vpop.f32.mrb[36].mxu1 }
0x1405   : > { %v2369_v24 = vadd.f32 %v2697_v22, %v2368_v23  ;;  %v2940_v29 = vpop.f32.mrb[37].mxu1 }
0x1406   : > { %v2371_v38 = vpop.f32.mrb[38].mxu1 }
0x1407   : > { %v2374_v37 = vmax.f32 %v2369_v24, 0.0  ;;  %v2941_v39 = vpop.f32.mrb[39].mxu1 }
0x1409   : > { %v2375_v40 = vpack.c.bf16 %v2374_v37, %v2374_v37 }
0x140b   : > { %2951 = vmatmul.mubr.msk.bf16.vlgmr.msra.gmra.mrb[32].mxu0 %vm2408_vm10, %v2375_v40 }
0x14de   : > { %v2446_v42 = vpop.f32.mrb[32].mxu0 }
0x14df   : > { %v2452_v44 = vadd.f32 %v2696_v0, %v2446_v42  ;;  %v2952_v45 = vpop.f32.mrb[33].mxu0 }
0x14e0   : > { %v2449_v46 = vpop.f32.mrb[34].mxu0 }
0x14e1   : > { %v2953_v33 = vpop.f32.mrb[35].mxu0  ;;  %v2455_v10 = vadd.f32 %v2452_v44, %v2298_v20 }
0x14e3   : > { %v2456_v47 = vsel %vm755_vm1, %v2455_v10, 0.0 }
0x14e4   : > { %2457 = vadd.xlane.f32.xlu1 %v2456_v47 }
0x1571   : > { %v2458_v48 = vpop.xlane.xlu1 %2457 }
0x1572   : > { %v2459_v49 = vmul.f32 0.03125, %v2458_v48 }
0x1574   : > { %v2460_v43 = vsub.f32 %v2455_v10, %v2459_v49 }
0x1576   : > { %v2461_v52 = vmul.f32 %v2460_v43, %v2460_v43 }
0x1578   : > { %v2462_v53 = vsel %vm755_vm1, %v2461_v52, 0.0 }
0x1579   : > { %2463 = vadd.xlane.f32.xlu1 %v2462_v53 }
0x1606   : > { %v2464_v32 = vpop.xlane.xlu1 %2463 }
0x1607   : > { %v2465_v3 = vmul.f32 0.03125, %v2464_v32 }
0x1609   : > { %v2466_v54 = vadd.f32 1e-05, %v2465_v3 }
0x160b   : > { %3236 = vrsqrt.f32 %v2466_v54 }
0x1615   : > { %v3237_v56 = vpop.eup %3236 }
0x1616   : > { %v2474_v41 = vmul.f32 %v3237_v56, %v2706_v55 }
0x1618   : > { %v2475_v4 = vmul.f32 %v2474_v41, %v2460_v43 }
0x161a   : > { %v2482_v58 = vadd.f32 %v2707_v31, %v2475_v4 }
0x161c   : > { %v2483_v59 = vpack.c.bf16 %v2482_v58, %v2482_v58 }
0x161e   : > { %2485 = vst.msk [vmem:[%s3634_s23] sm:$0xf] %vm2484_vm11, %v2483_v59 }
0x161f PF: > { %s4225_s4 = sld [smem:[#allocation4_spill]]  ;;  %s4226_s2 = sld [smem:[#allocation2_spill]] }
0x1620   : > { %s4227_s25 = sld [smem:[#allocation3_spill]]  ;;  %s4228_s26 = sld [smem:[#allocation5_spill]] }
0x1621   : > { %s4229_s27 = sld [smem:[#allocation6_spill]] }
0x1625   : > { %s31_s3 = sadd.s32 1, %s4225_s4  }
0x1626   : > { %p28_p9 = scmp.ge.s32.totalorder %s31_s3, 6  }
0x1628   :  { %30 = sbr.rel (!%p28_p9) target bundleno = 12 (0xc), region = 159 }

</bundles_post_ra>
